<compile_context>
chip_gen: v7x
topology: tpu7x:2x2x1
jax: 0.10.0
libtpu: 0.0.40
codegen_flags: <defaults>
</compile_context>

<pallas_src>
import math

import jax
import jax.numpy as jnp
from jax.experimental import pallas as pl
from jax.experimental.pallas import tpu as pltpu

# ----------------------------- tiny BERT config ------------------------------
B, S, H = 2, 8, 32          # batch, seq len, hidden size
BS = B * S
NH, HD = 4, 8               # heads, head dim (NH * HD == H)
I = 64                      # intermediate (FFN) size
L = 2                       # number of encoder layers
VOCAB = 128                 # lane-aligned so the one-hot @ table lookup is clean
MAXPOS = 16
NTYPE = 2
NLABELS = 2
EPS = 1e-12                 # BERT LayerNorm eps
_GELU_C = math.sqrt(2.0 / math.pi)

# TODO(synk): sentiment_model.train() enables stochastic dropout in the HF
# model; dropout is treated as identity (eval semantics) here.
# TODO(synk): HF BERT's default hidden_act is the exact erf-based gelu; erf has
# no guaranteed Mosaic lowering, so the tanh-form gelu ("gelu_new") is used.


# ------------------------------- math helpers --------------------------------
def _layernorm(x, g, b):
    mu = jnp.mean(x, axis=-1, keepdims=True)
    var = jnp.mean((x - mu) ** 2, axis=-1, keepdims=True)
    return (x - mu) * jax.lax.rsqrt(var + EPS) * g + b


def _gelu_tanh(x):
    return 0.5 * x * (1.0 + jnp.tanh(_GELU_C * (x + 0.044715 * x * x * x)))


# ------------------------------ fused kernel ---------------------------------
def tabbert_kernel(ids_ref, am_ref,
                   word_ref, pos_ref, type_ref, g0_ref, b0_ref,
                   wq_ref, bq_ref, wk_ref, bk_ref, wv_ref, bv_ref,
                   wo_ref, bo_ref, ln1g_ref, ln1b_ref,
                   w1_ref, b1_ref, w2_ref, b2_ref, ln2g_ref, ln2b_ref,
                   wp_ref, bp_ref, wc_ref, bc_ref,
                   o_ref):
    # ---- embeddings: gather fused into the kernel as one-hot @ table (MXU) ----
    ids = ids_ref[...]                                           # (BS, 1) int32
    onehot = (ids == jax.lax.broadcasted_iota(jnp.int32, (BS, VOCAB), 1)
              ).astype(jnp.float32)                              # (BS, VOCAB)
    we = jnp.dot(onehot, word_ref[...],
                 preferred_element_type=jnp.float32)             # (BS, H)
    pe = pos_ref[:S, :]                                          # (S, H)
    te = type_ref[0:1, :]                                        # (1, H), token_type_ids == 0
    emb3 = we.reshape(B, S, H) + pe[None, :, :] + te             # (B, S, H)
    x = _layernorm(emb3.reshape(BS, H), g0_ref[...], b0_ref[...])

    # ---- additive attention mask, built in-kernel from the raw (B, S) mask ----
    neg = (1.0 - am_ref[...]) * -10000.0                         # (B, S)
    mask3 = neg[:, None, :]                                      # (B, 1, S)

    scale = 1.0 / math.sqrt(HD)
    for l in range(L):                                           # static layer loop
        wo_l = wo_ref[l]                                         # (H, H)
        q = jnp.dot(x, wq_ref[l], preferred_element_type=jnp.float32) + bq_ref[l]
        k = jnp.dot(x, wk_ref[l], preferred_element_type=jnp.float32) + bk_ref[l]
        v = jnp.dot(x, wv_ref[l], preferred_element_type=jnp.float32) + bv_ref[l]

        attn = bo_ref[l]                                         # (1, H), accumulates to (BS, H)
        for h in range(NH):                                      # static head loop
            lo, hi = h * HD, (h + 1) * HD
            qh = q[:, lo:hi].reshape(B, S, HD)
            kh = k[:, lo:hi].reshape(B, S, HD)
            vh = v[:, lo:hi].reshape(B, S, HD)
            sc = jnp.einsum('bqd,bkd->bqk', qh, kh,
                            preferred_element_type=jnp.float32) * scale
            sc = sc + mask3
            sc = sc - jnp.max(sc, axis=-1, keepdims=True)
            p = jnp.exp(sc)
            p = p * pl.reciprocal(jnp.sum(p, axis=-1, keepdims=True), approx=True)
            ch = jnp.einsum('bqk,bkd->bqd', p, vh,
                            preferred_element_type=jnp.float32)  # (B, S, HD)
            # Per-head output projection; accumulation replaces the concatenate.
            attn = attn + jnp.dot(ch.reshape(BS, HD), wo_l[lo:hi, :],
                                  preferred_element_type=jnp.float32)

        x1 = _layernorm(x + attn, ln1g_ref[l], ln1b_ref[l])
        hmid = _gelu_tanh(
            jnp.dot(x1, w1_ref[l], preferred_element_type=jnp.float32) + b1_ref[l])
        ffn = jnp.dot(hmid, w2_ref[l], preferred_element_type=jnp.float32) + b2_ref[l]
        x = _layernorm(x1 + ffn, ln2g_ref[l], ln2b_ref[l])

    # ---- pooler + classifier head (fused; only the CLS row is used) ----
    cls = x.reshape(B, S, H)[:, 0, :]                            # (B, H)
    pooled = jnp.tanh(
        jnp.dot(cls, wp_ref[...], preferred_element_type=jnp.float32) + bp_ref[...])
    logits = jnp.dot(pooled, wc_ref[...],
                     preferred_element_type=jnp.float32) + bc_ref[...]
    m = jnp.max(logits, axis=-1, keepdims=True)
    e = jnp.exp(logits - m)
    o_ref[...] = e / jnp.sum(e, axis=-1, keepdims=True)          # softmax(dim=1), exact


# --------------------------------- forward -----------------------------------
def tabbert_forward(params, input_ids, attention_mask, x_cat=None, x_cont=None):
    # x_cat / x_cont are unused by the reference forward (dead code after return).
    ids = input_ids.astype(jnp.int32).reshape(BS, 1)
    am = attention_mask.astype(jnp.float32)

    inputs = [
        ids, am,
        params['word_emb'], params['pos_emb'], params['type_emb'],
        params['emb_ln_g'], params['emb_ln_b'],
        params['wq'], params['bq'], params['wk'], params['bk'],
        params['wv'], params['bv'], params['wo'], params['bo'],
        params['ln1_g'], params['ln1_b'],
        params['w1'], params['b1'], params['w2'], params['b2'],
        params['ln2_g'], params['ln2_b'],
        params['pool_w'], params['pool_b'], params['cls_w'], params['cls_b'],
    ]
    vmem = pl.BlockSpec(memory_space=pltpu.MemorySpace.VMEM)
    probs = pl.pallas_call(
        tabbert_kernel,
        out_shape=jax.ShapeDtypeStruct((B, NLABELS), jnp.float32),
        in_specs=[vmem] * len(inputs),
        out_specs=vmem,
    )(*inputs)
    return probs[:, 1]                                           # (B,) == P(label=1)


# ------------------------------ parameter init --------------------------------
def init_params(key):
    keys = iter(jax.random.split(key, 16))

    def nrm(shape):
        return 0.02 * jax.random.normal(next(keys), shape, jnp.float32)

    def zeros(shape):
        return jnp.zeros(shape, jnp.float32)

    def ones(shape):
        return jnp.ones(shape, jnp.float32)

    # Per-layer weights stacked with a leading L axis; biases / LN params kept
    # 2-D (1, H)-shaped so the kernel only manipulates rank>=2 arrays.
    return {
        'word_emb': nrm((VOCAB, H)),
        'pos_emb': nrm((MAXPOS, H)),
        'type_emb': nrm((NTYPE, H)),
        'emb_ln_g': ones((1, H)), 'emb_ln_b': zeros((1, H)),
        'wq': nrm((L, H, H)), 'bq': zeros((L, 1, H)),
        'wk': nrm((L, H, H)), 'bk': zeros((L, 1, H)),
        'wv': nrm((L, H, H)), 'bv': zeros((L, 1, H)),
        'wo': nrm((L, H, H)), 'bo': zeros((L, 1, H)),
        'ln1_g': ones((L, 1, H)), 'ln1_b': zeros((L, 1, H)),
        'w1': nrm((L, H, I)), 'b1': zeros((L, 1, I)),
        'w2': nrm((L, I, H)), 'b2': zeros((L, 1, H)),
        'ln2_g': ones((L, 1, H)), 'ln2_b': zeros((L, 1, H)),
        'pool_w': nrm((H, H)), 'pool_b': zeros((1, H)),
        'cls_w': nrm((H, NLABELS)), 'cls_b': zeros((1, NLABELS)),
    }


# ----------------------------------- main -------------------------------------
if __name__ == "__main__":
    key = jax.random.PRNGKey(0)
    pkey, ikey, ckey, fkey = jax.random.split(key, 4)

    params = init_params(pkey)
    input_ids = jax.random.randint(ikey, (B, S), 0, VOCAB, dtype=jnp.int32)
    attention_mask = jnp.ones((B, S), dtype=jnp.int32).at[1, S - 2:].set(0)
    x_cat = jax.random.randint(ckey, (B, 3), 0, 5, dtype=jnp.int32)   # unused
    x_cont = jax.random.normal(fkey, (B, 4), jnp.float32)             # unused

    out = tabbert_forward(params, input_ids, attention_mask, x_cat, x_cont)
    out = jax.block_until_ready(out)

    assert out.shape == (B,)
    assert bool(jnp.all((out >= 0.0) & (out <= 1.0)))
    print("KERNEL_OK")
</pallas_src>

<mosaic_0001>
module attributes {stable_mosaic.version = 11 : i64} {
  func.func @tabbert_kernel(%arg0: memref<16x1xi32, #tpu.memory_space<vmem>>, %arg1: memref<2x8xf32, #tpu.memory_space<vmem>>, %arg2: memref<128x32xf32, #tpu.memory_space<vmem>>, %arg3: memref<16x32xf32, #tpu.memory_space<vmem>>, %arg4: memref<2x32xf32, #tpu.memory_space<vmem>>, %arg5: memref<1x32xf32, #tpu.memory_space<vmem>>, %arg6: memref<1x32xf32, #tpu.memory_space<vmem>>, %arg7: memref<2x32x32xf32, #tpu.memory_space<vmem>>, %arg8: memref<2x1x32xf32, #tpu.memory_space<vmem>>, %arg9: memref<2x32x32xf32, #tpu.memory_space<vmem>>, %arg10: memref<2x1x32xf32, #tpu.memory_space<vmem>>, %arg11: memref<2x32x32xf32, #tpu.memory_space<vmem>>, %arg12: memref<2x1x32xf32, #tpu.memory_space<vmem>>, %arg13: memref<2x32x32xf32, #tpu.memory_space<vmem>>, %arg14: memref<2x1x32xf32, #tpu.memory_space<vmem>>, %arg15: memref<2x1x32xf32, #tpu.memory_space<vmem>>, %arg16: memref<2x1x32xf32, #tpu.memory_space<vmem>>, %arg17: memref<2x32x64xf32, #tpu.memory_space<vmem>>, %arg18: memref<2x1x64xf32, #tpu.memory_space<vmem>>, %arg19: memref<2x64x32xf32, #tpu.memory_space<vmem>>, %arg20: memref<2x1x32xf32, #tpu.memory_space<vmem>>, %arg21: memref<2x1x32xf32, #tpu.memory_space<vmem>>, %arg22: memref<2x1x32xf32, #tpu.memory_space<vmem>>, %arg23: memref<32x32xf32, #tpu.memory_space<vmem>>, %arg24: memref<1x32xf32, #tpu.memory_space<vmem>>, %arg25: memref<32x2xf32, #tpu.memory_space<vmem>>, %arg26: memref<1x2xf32, #tpu.memory_space<vmem>>, %arg27: memref<2x2xf32, #tpu.memory_space<vmem>>) attributes {dimension_semantics = [], scalar_prefetch = 0 : i64, scratch_operands = 0 : i64, tpu.core_type = #tpu.core_type<tc>} {
    %c0 = arith.constant 0 : index
    %c0_0 = arith.constant 0 : index
    %0 = vector.load %arg0[%c0, %c0_0] : memref<16x1xi32, #tpu.memory_space<vmem>>, vector<16x1xi32>
    %1 = tpu.iota {dimensions = array<i32: 1>} : vector<16x128xi32>
    %2 = vector.broadcast %0 : vector<16x1xi32> to vector<16x128xi32>
    %3 = arith.cmpi eq, %2, %1 : vector<16x128xi32>
    %4 = arith.extui %3 : vector<16x128xi1> to vector<16x128xi32>
    %5 = arith.sitofp %4 : vector<16x128xi32> to vector<16x128xf32>
    %c0_1 = arith.constant 0 : index
    %c0_2 = arith.constant 0 : index
    %6 = vector.load %arg2[%c0_1, %c0_2] : memref<128x32xf32, #tpu.memory_space<vmem>>, vector<128x32xf32>
    %cst = arith.constant dense<0.000000e+00> : vector<16x32xf32>
    %7 = tpu.matmul %5, %6, %cst {dimension_numbers = #tpu.dot_dimension_numbers<[1], [0], [0], [1], [0, 0, 1, 1], [], []>} : vector<16x128xf32>, vector<128x32xf32>, vector<16x32xf32> -> vector<16x32xf32>
    %c0_3 = arith.constant 0 : index
    %c0_4 = arith.constant 0 : index
    %8 = vector.load %arg3[%c0_3, %c0_4] : memref<16x32xf32, #tpu.memory_space<vmem>>, vector<8x32xf32>
    %c0_5 = arith.constant 0 : index
    %c0_6 = arith.constant 0 : index
    %9 = vector.load %arg4[%c0_5, %c0_6] : memref<2x32xf32, #tpu.memory_space<vmem>>, vector<1x32xf32>
    %10 = vector.shape_cast %7 : vector<16x32xf32> to vector<2x8x32xf32>
    %11 = vector.shape_cast %8 : vector<8x32xf32> to vector<1x8x32xf32>
    %12 = vector.broadcast %11 : vector<1x8x32xf32> to vector<2x8x32xf32>
    %13 = arith.addf %10, %12 : vector<2x8x32xf32>
    %14 = vector.shape_cast %9 : vector<1x32xf32> to vector<1x1x32xf32>
    %15 = vector.broadcast %14 : vector<1x1x32xf32> to vector<2x8x32xf32>
    %16 = arith.addf %13, %15 : vector<2x8x32xf32>
    %17 = vector.shape_cast %16 : vector<2x8x32xf32> to vector<16x32xf32>
    %c0_7 = arith.constant 0 : index
    %c0_8 = arith.constant 0 : index
    %18 = vector.load %arg5[%c0_7, %c0_8] : memref<1x32xf32, #tpu.memory_space<vmem>>, vector<1x32xf32>
    %c0_9 = arith.constant 0 : index
    %c0_10 = arith.constant 0 : index
    %19 = vector.load %arg6[%c0_9, %c0_10] : memref<1x32xf32, #tpu.memory_space<vmem>>, vector<1x32xf32>
    %cst_11 = arith.constant dense<0.000000e+00> : vector<16xf32>
    %20 = vector.multi_reduction <add>, %17, %cst_11 [1] : vector<16x32xf32> to vector<16xf32>
    %21 = vector.shape_cast %20 : vector<16xf32> to vector<16x1xf32>
    %cst_12 = arith.constant 3.200000e+01 : f32
    %22 = vector.broadcast %cst_12 : f32 to vector<16x1xf32>
    %23 = arith.divf %21, %22 : vector<16x1xf32>
    %24 = vector.broadcast %23 : vector<16x1xf32> to vector<16x32xf32>
    %25 = arith.subf %17, %24 : vector<16x32xf32>
    %26 = arith.mulf %25, %25 : vector<16x32xf32>
    %cst_13 = arith.constant dense<0.000000e+00> : vector<16xf32>
    %27 = vector.multi_reduction <add>, %26, %cst_13 [1] : vector<16x32xf32> to vector<16xf32>
    %28 = vector.shape_cast %27 : vector<16xf32> to vector<16x1xf32>
    %cst_14 = arith.constant 3.200000e+01 : f32
    %29 = vector.broadcast %cst_14 : f32 to vector<16x1xf32>
    %30 = arith.divf %28, %29 : vector<16x1xf32>
    %31 = vector.broadcast %23 : vector<16x1xf32> to vector<16x32xf32>
    %32 = arith.subf %17, %31 : vector<16x32xf32>
    %cst_15 = arith.constant 9.99999996E-13 : f32
    %33 = vector.broadcast %cst_15 : f32 to vector<16x1xf32>
    %34 = arith.addf %30, %33 : vector<16x1xf32>
    %35 = math.rsqrt %34 : vector<16x1xf32>
    %36 = vector.broadcast %35 : vector<16x1xf32> to vector<16x32xf32>
    %37 = arith.mulf %32, %36 : vector<16x32xf32>
    %38 = vector.broadcast %18 : vector<1x32xf32> to vector<16x32xf32>
    %39 = arith.mulf %37, %38 : vector<16x32xf32>
    %40 = vector.broadcast %19 : vector<1x32xf32> to vector<16x32xf32>
    %41 = arith.addf %39, %40 : vector<16x32xf32>
    %c0_16 = arith.constant 0 : index
    %c0_17 = arith.constant 0 : index
    %42 = vector.load %arg1[%c0_16, %c0_17] : memref<2x8xf32, #tpu.memory_space<vmem>>, vector<2x8xf32>
    %cst_18 = arith.constant 1.000000e+00 : f32
    %43 = vector.broadcast %cst_18 : f32 to vector<2x8xf32>
    %44 = arith.subf %43, %42 : vector<2x8xf32>
    %cst_19 = arith.constant -1.000000e+04 : f32
    %45 = vector.broadcast %cst_19 : f32 to vector<2x8xf32>
    %46 = arith.mulf %44, %45 : vector<2x8xf32>
    %47 = vector.shape_cast %46 : vector<2x8xf32> to vector<2x1x8xf32>
    %c0_20 = arith.constant 0 : index
    %c0_21 = arith.constant 0 : index
    %c0_22 = arith.constant 0 : index
    %48 = vector.load %arg13[%c0_20, %c0_21, %c0_22] : memref<2x32x32xf32, #tpu.memory_space<vmem>>, vector<1x32x32xf32>
    %49 = vector.shape_cast %48 : vector<1x32x32xf32> to vector<32x32xf32>
    %c0_23 = arith.constant 0 : index
    %c0_24 = arith.constant 0 : index
    %c0_25 = arith.constant 0 : index
    %50 = vector.load %arg7[%c0_23, %c0_24, %c0_25] : memref<2x32x32xf32, #tpu.memory_space<vmem>>, vector<1x32x32xf32>
    %51 = vector.shape_cast %50 : vector<1x32x32xf32> to vector<32x32xf32>
    %cst_26 = arith.constant dense<0.000000e+00> : vector<16x32xf32>
    %52 = tpu.matmul %41, %51, %cst_26 {dimension_numbers = #tpu.dot_dimension_numbers<[1], [0], [0], [1], [0, 0, 1, 1], [], []>} : vector<16x32xf32>, vector<32x32xf32>, vector<16x32xf32> -> vector<16x32xf32>
    %c0_27 = arith.constant 0 : index
    %c0_28 = arith.constant 0 : index
    %c0_29 = arith.constant 0 : index
    %53 = vector.load %arg8[%c0_27, %c0_28, %c0_29] : memref<2x1x32xf32, #tpu.memory_space<vmem>>, vector<1x1x32xf32>
    %54 = vector.shape_cast %53 : vector<1x1x32xf32> to vector<1x32xf32>
    %55 = vector.broadcast %54 : vector<1x32xf32> to vector<16x32xf32>
    %56 = arith.addf %52, %55 : vector<16x32xf32>
    %c0_30 = arith.constant 0 : index
    %c0_31 = arith.constant 0 : index
    %c0_32 = arith.constant 0 : index
    %57 = vector.load %arg9[%c0_30, %c0_31, %c0_32] : memref<2x32x32xf32, #tpu.memory_space<vmem>>, vector<1x32x32xf32>
    %58 = vector.shape_cast %57 : vector<1x32x32xf32> to vector<32x32xf32>
    %cst_33 = arith.constant dense<0.000000e+00> : vector<16x32xf32>
    %59 = tpu.matmul %41, %58, %cst_33 {dimension_numbers = #tpu.dot_dimension_numbers<[1], [0], [0], [1], [0, 0, 1, 1], [], []>} : vector<16x32xf32>, vector<32x32xf32>, vector<16x32xf32> -> vector<16x32xf32>
    %c0_34 = arith.constant 0 : index
    %c0_35 = arith.constant 0 : index
    %c0_36 = arith.constant 0 : index
    %60 = vector.load %arg10[%c0_34, %c0_35, %c0_36] : memref<2x1x32xf32, #tpu.memory_space<vmem>>, vector<1x1x32xf32>
    %61 = vector.shape_cast %60 : vector<1x1x32xf32> to vector<1x32xf32>
    %62 = vector.broadcast %61 : vector<1x32xf32> to vector<16x32xf32>
    %63 = arith.addf %59, %62 : vector<16x32xf32>
    %c0_37 = arith.constant 0 : index
    %c0_38 = arith.constant 0 : index
    %c0_39 = arith.constant 0 : index
    %64 = vector.load %arg11[%c0_37, %c0_38, %c0_39] : memref<2x32x32xf32, #tpu.memory_space<vmem>>, vector<1x32x32xf32>
    %65 = vector.shape_cast %64 : vector<1x32x32xf32> to vector<32x32xf32>
    %cst_40 = arith.constant dense<0.000000e+00> : vector<16x32xf32>
    %66 = tpu.matmul %41, %65, %cst_40 {dimension_numbers = #tpu.dot_dimension_numbers<[1], [0], [0], [1], [0, 0, 1, 1], [], []>} : vector<16x32xf32>, vector<32x32xf32>, vector<16x32xf32> -> vector<16x32xf32>
    %c0_41 = arith.constant 0 : index
    %c0_42 = arith.constant 0 : index
    %c0_43 = arith.constant 0 : index
    %67 = vector.load %arg12[%c0_41, %c0_42, %c0_43] : memref<2x1x32xf32, #tpu.memory_space<vmem>>, vector<1x1x32xf32>
    %68 = vector.shape_cast %67 : vector<1x1x32xf32> to vector<1x32xf32>
    %69 = vector.broadcast %68 : vector<1x32xf32> to vector<16x32xf32>
    %70 = arith.addf %66, %69 : vector<16x32xf32>
    %c0_44 = arith.constant 0 : index
    %c0_45 = arith.constant 0 : index
    %c0_46 = arith.constant 0 : index
    %71 = vector.load %arg14[%c0_44, %c0_45, %c0_46] : memref<2x1x32xf32, #tpu.memory_space<vmem>>, vector<1x1x32xf32>
    %72 = vector.shape_cast %71 : vector<1x1x32xf32> to vector<1x32xf32>
    %73 = vector.extract_strided_slice %56 {offsets = [0, 0], sizes = [16, 8], strides = [1, 1]} : vector<16x32xf32> to vector<16x8xf32>
    %74 = vector.shape_cast %73 : vector<16x8xf32> to vector<2x8x8xf32>
    %75 = vector.extract_strided_slice %63 {offsets = [0, 0], sizes = [16, 8], strides = [1, 1]} : vector<16x32xf32> to vector<16x8xf32>
    %76 = vector.shape_cast %75 : vector<16x8xf32> to vector<2x8x8xf32>
    %77 = vector.extract_strided_slice %70 {offsets = [0, 0], sizes = [16, 8], strides = [1, 1]} : vector<16x32xf32> to vector<16x8xf32>
    %78 = vector.shape_cast %77 : vector<16x8xf32> to vector<2x8x8xf32>
    "tpu.trace_start"() <{level = 10 : i32, message = "bqd,bkd->bqk"}> : () -> ()
    %cst_47 = arith.constant dense<0.000000e+00> : vector<2x8x8xf32>
    %79 = tpu.matmul %74, %76, %cst_47 {dimension_numbers = #tpu.dot_dimension_numbers<[2], [2], [1], [1], [0, 0, 0, 1, 1, 1], [0], [0]>} : vector<2x8x8xf32>, vector<2x8x8xf32>, vector<2x8x8xf32> -> vector<2x8x8xf32>
    "tpu.trace_stop"() : () -> ()
    %cst_48 = arith.constant 0.353553385 : f32
    %80 = vector.broadcast %cst_48 : f32 to vector<2x8x8xf32>
    %81 = arith.mulf %79, %80 : vector<2x8x8xf32>
    %82 = vector.broadcast %47 : vector<2x1x8xf32> to vector<2x8x8xf32>
    %83 = arith.addf %81, %82 : vector<2x8x8xf32>
    %cst_49 = arith.constant dense<0xFF800000> : vector<2x8xf32>
    %84 = vector.multi_reduction <maximumf>, %83, %cst_49 [2] : vector<2x8x8xf32> to vector<2x8xf32>
    %85 = vector.shape_cast %84 : vector<2x8xf32> to vector<2x8x1xf32>
    %86 = vector.broadcast %85 : vector<2x8x1xf32> to vector<2x8x8xf32>
    %87 = arith.subf %83, %86 : vector<2x8x8xf32>
    %88 = math.exp %87 : vector<2x8x8xf32>
    %cst_50 = arith.constant dense<0.000000e+00> : vector<2x8xf32>
    %89 = vector.multi_reduction <add>, %88, %cst_50 [2] : vector<2x8x8xf32> to vector<2x8xf32>
    %90 = vector.shape_cast %89 : vector<2x8xf32> to vector<2x8x1xf32>
    %91 = tpu.reciprocal %90 {approx = true} : vector<2x8x1xf32> -> vector<2x8x1xf32>
    %92 = vector.broadcast %91 : vector<2x8x1xf32> to vector<2x8x8xf32>
    %93 = arith.mulf %88, %92 : vector<2x8x8xf32>
    "tpu.trace_start"() <{level = 10 : i32, message = "bqk,bkd->bqd"}> : () -> ()
    %cst_51 = arith.constant dense<0.000000e+00> : vector<2x8x8xf32>
    %94 = tpu.matmul %93, %78, %cst_51 {dimension_numbers = #tpu.dot_dimension_numbers<[2], [1], [1], [2], [0, 0, 0, 1, 1, 2], [0], [0]>} : vector<2x8x8xf32>, vector<2x8x8xf32>, vector<2x8x8xf32> -> vector<2x8x8xf32>
    "tpu.trace_stop"() : () -> ()
    %95 = vector.shape_cast %94 : vector<2x8x8xf32> to vector<16x8xf32>
    %96 = vector.extract_strided_slice %49 {offsets = [0, 0], sizes = [8, 32], strides = [1, 1]} : vector<32x32xf32> to vector<8x32xf32>
    %cst_52 = arith.constant dense<0.000000e+00> : vector<16x32xf32>
    %97 = tpu.matmul %95, %96, %cst_52 {dimension_numbers = #tpu.dot_dimension_numbers<[1], [0], [0], [1], [0, 0, 1, 1], [], []>} : vector<16x8xf32>, vector<8x32xf32>, vector<16x32xf32> -> vector<16x32xf32>
    %98 = vector.broadcast %72 : vector<1x32xf32> to vector<16x32xf32>
    %99 = arith.addf %98, %97 : vector<16x32xf32>
    %100 = vector.extract_strided_slice %56 {offsets = [0, 8], sizes = [16, 8], strides = [1, 1]} : vector<16x32xf32> to vector<16x8xf32>
    %101 = vector.shape_cast %100 : vector<16x8xf32> to vector<2x8x8xf32>
    %102 = vector.extract_strided_slice %63 {offsets = [0, 8], sizes = [16, 8], strides = [1, 1]} : vector<16x32xf32> to vector<16x8xf32>
    %103 = vector.shape_cast %102 : vector<16x8xf32> to vector<2x8x8xf32>
    %104 = vector.extract_strided_slice %70 {offsets = [0, 8], sizes = [16, 8], strides = [1, 1]} : vector<16x32xf32> to vector<16x8xf32>
    %105 = vector.shape_cast %104 : vector<16x8xf32> to vector<2x8x8xf32>
    "tpu.trace_start"() <{level = 10 : i32, message = "bqd,bkd->bqk"}> : () -> ()
    %cst_53 = arith.constant dense<0.000000e+00> : vector<2x8x8xf32>
    %106 = tpu.matmul %101, %103, %cst_53 {dimension_numbers = #tpu.dot_dimension_numbers<[2], [2], [1], [1], [0, 0, 0, 1, 1, 1], [0], [0]>} : vector<2x8x8xf32>, vector<2x8x8xf32>, vector<2x8x8xf32> -> vector<2x8x8xf32>
    "tpu.trace_stop"() : () -> ()
    %cst_54 = arith.constant 0.353553385 : f32
    %107 = vector.broadcast %cst_54 : f32 to vector<2x8x8xf32>
    %108 = arith.mulf %106, %107 : vector<2x8x8xf32>
    %109 = vector.broadcast %47 : vector<2x1x8xf32> to vector<2x8x8xf32>
    %110 = arith.addf %108, %109 : vector<2x8x8xf32>
    %cst_55 = arith.constant dense<0xFF800000> : vector<2x8xf32>
    %111 = vector.multi_reduction <maximumf>, %110, %cst_55 [2] : vector<2x8x8xf32> to vector<2x8xf32>
    %112 = vector.shape_cast %111 : vector<2x8xf32> to vector<2x8x1xf32>
    %113 = vector.broadcast %112 : vector<2x8x1xf32> to vector<2x8x8xf32>
    %114 = arith.subf %110, %113 : vector<2x8x8xf32>
    %115 = math.exp %114 : vector<2x8x8xf32>
    %cst_56 = arith.constant dense<0.000000e+00> : vector<2x8xf32>
    %116 = vector.multi_reduction <add>, %115, %cst_56 [2] : vector<2x8x8xf32> to vector<2x8xf32>
    %117 = vector.shape_cast %116 : vector<2x8xf32> to vector<2x8x1xf32>
    %118 = tpu.reciprocal %117 {approx = true} : vector<2x8x1xf32> -> vector<2x8x1xf32>
    %119 = vector.broadcast %118 : vector<2x8x1xf32> to vector<2x8x8xf32>
    %120 = arith.mulf %115, %119 : vector<2x8x8xf32>
    "tpu.trace_start"() <{level = 10 : i32, message = "bqk,bkd->bqd"}> : () -> ()
    %cst_57 = arith.constant dense<0.000000e+00> : vector<2x8x8xf32>
    %121 = tpu.matmul %120, %105, %cst_57 {dimension_numbers = #tpu.dot_dimension_numbers<[2], [1], [1], [2], [0, 0, 0, 1, 1, 2], [0], [0]>} : vector<2x8x8xf32>, vector<2x8x8xf32>, vector<2x8x8xf32> -> vector<2x8x8xf32>
    "tpu.trace_stop"() : () -> ()
    %122 = vector.shape_cast %121 : vector<2x8x8xf32> to vector<16x8xf32>
    %123 = vector.extract_strided_slice %49 {offsets = [8, 0], sizes = [8, 32], strides = [1, 1]} : vector<32x32xf32> to vector<8x32xf32>
    %cst_58 = arith.constant dense<0.000000e+00> : vector<16x32xf32>
    %124 = tpu.matmul %122, %123, %cst_58 {dimension_numbers = #tpu.dot_dimension_numbers<[1], [0], [0], [1], [0, 0, 1, 1], [], []>} : vector<16x8xf32>, vector<8x32xf32>, vector<16x32xf32> -> vector<16x32xf32>
    %125 = arith.addf %99, %124 : vector<16x32xf32>
    %126 = vector.extract_strided_slice %56 {offsets = [0, 16], sizes = [16, 8], strides = [1, 1]} : vector<16x32xf32> to vector<16x8xf32>
    %127 = vector.shape_cast %126 : vector<16x8xf32> to vector<2x8x8xf32>
    %128 = vector.extract_strided_slice %63 {offsets = [0, 16], sizes = [16, 8], strides = [1, 1]} : vector<16x32xf32> to vector<16x8xf32>
    %129 = vector.shape_cast %128 : vector<16x8xf32> to vector<2x8x8xf32>
    %130 = vector.extract_strided_slice %70 {offsets = [0, 16], sizes = [16, 8], strides = [1, 1]} : vector<16x32xf32> to vector<16x8xf32>
    %131 = vector.shape_cast %130 : vector<16x8xf32> to vector<2x8x8xf32>
    "tpu.trace_start"() <{level = 10 : i32, message = "bqd,bkd->bqk"}> : () -> ()
    %cst_59 = arith.constant dense<0.000000e+00> : vector<2x8x8xf32>
    %132 = tpu.matmul %127, %129, %cst_59 {dimension_numbers = #tpu.dot_dimension_numbers<[2], [2], [1], [1], [0, 0, 0, 1, 1, 1], [0], [0]>} : vector<2x8x8xf32>, vector<2x8x8xf32>, vector<2x8x8xf32> -> vector<2x8x8xf32>
    "tpu.trace_stop"() : () -> ()
    %cst_60 = arith.constant 0.353553385 : f32
    %133 = vector.broadcast %cst_60 : f32 to vector<2x8x8xf32>
    %134 = arith.mulf %132, %133 : vector<2x8x8xf32>
    %135 = vector.broadcast %47 : vector<2x1x8xf32> to vector<2x8x8xf32>
    %136 = arith.addf %134, %135 : vector<2x8x8xf32>
    %cst_61 = arith.constant dense<0xFF800000> : vector<2x8xf32>
    %137 = vector.multi_reduction <maximumf>, %136, %cst_61 [2] : vector<2x8x8xf32> to vector<2x8xf32>
    %138 = vector.shape_cast %137 : vector<2x8xf32> to vector<2x8x1xf32>
    %139 = vector.broadcast %138 : vector<2x8x1xf32> to vector<2x8x8xf32>
    %140 = arith.subf %136, %139 : vector<2x8x8xf32>
    %141 = math.exp %140 : vector<2x8x8xf32>
    %cst_62 = arith.constant dense<0.000000e+00> : vector<2x8xf32>
    %142 = vector.multi_reduction <add>, %141, %cst_62 [2] : vector<2x8x8xf32> to vector<2x8xf32>
    %143 = vector.shape_cast %142 : vector<2x8xf32> to vector<2x8x1xf32>
    %144 = tpu.reciprocal %143 {approx = true} : vector<2x8x1xf32> -> vector<2x8x1xf32>
    %145 = vector.broadcast %144 : vector<2x8x1xf32> to vector<2x8x8xf32>
    %146 = arith.mulf %141, %145 : vector<2x8x8xf32>
    "tpu.trace_start"() <{level = 10 : i32, message = "bqk,bkd->bqd"}> : () -> ()
    %cst_63 = arith.constant dense<0.000000e+00> : vector<2x8x8xf32>
    %147 = tpu.matmul %146, %131, %cst_63 {dimension_numbers = #tpu.dot_dimension_numbers<[2], [1], [1], [2], [0, 0, 0, 1, 1, 2], [0], [0]>} : vector<2x8x8xf32>, vector<2x8x8xf32>, vector<2x8x8xf32> -> vector<2x8x8xf32>
    "tpu.trace_stop"() : () -> ()
    %148 = vector.shape_cast %147 : vector<2x8x8xf32> to vector<16x8xf32>
    %149 = vector.extract_strided_slice %49 {offsets = [16, 0], sizes = [8, 32], strides = [1, 1]} : vector<32x32xf32> to vector<8x32xf32>
    %cst_64 = arith.constant dense<0.000000e+00> : vector<16x32xf32>
    %150 = tpu.matmul %148, %149, %cst_64 {dimension_numbers = #tpu.dot_dimension_numbers<[1], [0], [0], [1], [0, 0, 1, 1], [], []>} : vector<16x8xf32>, vector<8x32xf32>, vector<16x32xf32> -> vector<16x32xf32>
    %151 = arith.addf %125, %150 : vector<16x32xf32>
    %152 = vector.extract_strided_slice %56 {offsets = [0, 24], sizes = [16, 8], strides = [1, 1]} : vector<16x32xf32> to vector<16x8xf32>
    %153 = vector.shape_cast %152 : vector<16x8xf32> to vector<2x8x8xf32>
    %154 = vector.extract_strided_slice %63 {offsets = [0, 24], sizes = [16, 8], strides = [1, 1]} : vector<16x32xf32> to vector<16x8xf32>
    %155 = vector.shape_cast %154 : vector<16x8xf32> to vector<2x8x8xf32>
    %156 = vector.extract_strided_slice %70 {offsets = [0, 24], sizes = [16, 8], strides = [1, 1]} : vector<16x32xf32> to vector<16x8xf32>
    %157 = vector.shape_cast %156 : vector<16x8xf32> to vector<2x8x8xf32>
    "tpu.trace_start"() <{level = 10 : i32, message = "bqd,bkd->bqk"}> : () -> ()
    %cst_65 = arith.constant dense<0.000000e+00> : vector<2x8x8xf32>
    %158 = tpu.matmul %153, %155, %cst_65 {dimension_numbers = #tpu.dot_dimension_numbers<[2], [2], [1], [1], [0, 0, 0, 1, 1, 1], [0], [0]>} : vector<2x8x8xf32>, vector<2x8x8xf32>, vector<2x8x8xf32> -> vector<2x8x8xf32>
    "tpu.trace_stop"() : () -> ()
    %cst_66 = arith.constant 0.353553385 : f32
    %159 = vector.broadcast %cst_66 : f32 to vector<2x8x8xf32>
    %160 = arith.mulf %158, %159 : vector<2x8x8xf32>
    %161 = vector.broadcast %47 : vector<2x1x8xf32> to vector<2x8x8xf32>
    %162 = arith.addf %160, %161 : vector<2x8x8xf32>
    %cst_67 = arith.constant dense<0xFF800000> : vector<2x8xf32>
    %163 = vector.multi_reduction <maximumf>, %162, %cst_67 [2] : vector<2x8x8xf32> to vector<2x8xf32>
    %164 = vector.shape_cast %163 : vector<2x8xf32> to vector<2x8x1xf32>
    %165 = vector.broadcast %164 : vector<2x8x1xf32> to vector<2x8x8xf32>
    %166 = arith.subf %162, %165 : vector<2x8x8xf32>
    %167 = math.exp %166 : vector<2x8x8xf32>
    %cst_68 = arith.constant dense<0.000000e+00> : vector<2x8xf32>
    %168 = vector.multi_reduction <add>, %167, %cst_68 [2] : vector<2x8x8xf32> to vector<2x8xf32>
    %169 = vector.shape_cast %168 : vector<2x8xf32> to vector<2x8x1xf32>
    %170 = tpu.reciprocal %169 {approx = true} : vector<2x8x1xf32> -> vector<2x8x1xf32>
    %171 = vector.broadcast %170 : vector<2x8x1xf32> to vector<2x8x8xf32>
    %172 = arith.mulf %167, %171 : vector<2x8x8xf32>
    "tpu.trace_start"() <{level = 10 : i32, message = "bqk,bkd->bqd"}> : () -> ()
    %cst_69 = arith.constant dense<0.000000e+00> : vector<2x8x8xf32>
    %173 = tpu.matmul %172, %157, %cst_69 {dimension_numbers = #tpu.dot_dimension_numbers<[2], [1], [1], [2], [0, 0, 0, 1, 1, 2], [0], [0]>} : vector<2x8x8xf32>, vector<2x8x8xf32>, vector<2x8x8xf32> -> vector<2x8x8xf32>
    "tpu.trace_stop"() : () -> ()
    %174 = vector.shape_cast %173 : vector<2x8x8xf32> to vector<16x8xf32>
    %175 = vector.extract_strided_slice %49 {offsets = [24, 0], sizes = [8, 32], strides = [1, 1]} : vector<32x32xf32> to vector<8x32xf32>
    %cst_70 = arith.constant dense<0.000000e+00> : vector<16x32xf32>
    %176 = tpu.matmul %174, %175, %cst_70 {dimension_numbers = #tpu.dot_dimension_numbers<[1], [0], [0], [1], [0, 0, 1, 1], [], []>} : vector<16x8xf32>, vector<8x32xf32>, vector<16x32xf32> -> vector<16x32xf32>
    %177 = arith.addf %151, %176 : vector<16x32xf32>
    %178 = arith.addf %41, %177 : vector<16x32xf32>
    %c0_71 = arith.constant 0 : index
    %c0_72 = arith.constant 0 : index
    %c0_73 = arith.constant 0 : index
    %179 = vector.load %arg15[%c0_71, %c0_72, %c0_73] : memref<2x1x32xf32, #tpu.memory_space<vmem>>, vector<1x1x32xf32>
    %180 = vector.shape_cast %179 : vector<1x1x32xf32> to vector<1x32xf32>
    %c0_74 = arith.constant 0 : index
    %c0_75 = arith.constant 0 : index
    %c0_76 = arith.constant 0 : index
    %181 = vector.load %arg16[%c0_74, %c0_75, %c0_76] : memref<2x1x32xf32, #tpu.memory_space<vmem>>, vector<1x1x32xf32>
    %182 = vector.shape_cast %181 : vector<1x1x32xf32> to vector<1x32xf32>
    %cst_77 = arith.constant dense<0.000000e+00> : vector<16xf32>
    %183 = vector.multi_reduction <add>, %178, %cst_77 [1] : vector<16x32xf32> to vector<16xf32>
    %184 = vector.shape_cast %183 : vector<16xf32> to vector<16x1xf32>
    %cst_78 = arith.constant 3.200000e+01 : f32
    %185 = vector.broadcast %cst_78 : f32 to vector<16x1xf32>
    %186 = arith.divf %184, %185 : vector<16x1xf32>
    %187 = vector.broadcast %186 : vector<16x1xf32> to vector<16x32xf32>
    %188 = arith.subf %178, %187 : vector<16x32xf32>
    %189 = arith.mulf %188, %188 : vector<16x32xf32>
    %cst_79 = arith.constant dense<0.000000e+00> : vector<16xf32>
    %190 = vector.multi_reduction <add>, %189, %cst_79 [1] : vector<16x32xf32> to vector<16xf32>
    %191 = vector.shape_cast %190 : vector<16xf32> to vector<16x1xf32>
    %cst_80 = arith.constant 3.200000e+01 : f32
    %192 = vector.broadcast %cst_80 : f32 to vector<16x1xf32>
    %193 = arith.divf %191, %192 : vector<16x1xf32>
    %194 = vector.broadcast %186 : vector<16x1xf32> to vector<16x32xf32>
    %195 = arith.subf %178, %194 : vector<16x32xf32>
    %cst_81 = arith.constant 9.99999996E-13 : f32
    %196 = vector.broadcast %cst_81 : f32 to vector<16x1xf32>
    %197 = arith.addf %193, %196 : vector<16x1xf32>
    %198 = math.rsqrt %197 : vector<16x1xf32>
    %199 = vector.broadcast %198 : vector<16x1xf32> to vector<16x32xf32>
    %200 = arith.mulf %195, %199 : vector<16x32xf32>
    %201 = vector.broadcast %180 : vector<1x32xf32> to vector<16x32xf32>
    %202 = arith.mulf %200, %201 : vector<16x32xf32>
    %203 = vector.broadcast %182 : vector<1x32xf32> to vector<16x32xf32>
    %204 = arith.addf %202, %203 : vector<16x32xf32>
    %c0_82 = arith.constant 0 : index
    %c0_83 = arith.constant 0 : index
    %c0_84 = arith.constant 0 : index
    %205 = vector.load %arg17[%c0_82, %c0_83, %c0_84] : memref<2x32x64xf32, #tpu.memory_space<vmem>>, vector<1x32x64xf32>
    %206 = vector.shape_cast %205 : vector<1x32x64xf32> to vector<32x64xf32>
    %cst_85 = arith.constant dense<0.000000e+00> : vector<16x64xf32>
    %207 = tpu.matmul %204, %206, %cst_85 {dimension_numbers = #tpu.dot_dimension_numbers<[1], [0], [0], [1], [0, 0, 1, 1], [], []>} : vector<16x32xf32>, vector<32x64xf32>, vector<16x64xf32> -> vector<16x64xf32>
    %c0_86 = arith.constant 0 : index
    %c0_87 = arith.constant 0 : index
    %c0_88 = arith.constant 0 : index
    %208 = vector.load %arg18[%c0_86, %c0_87, %c0_88] : memref<2x1x64xf32, #tpu.memory_space<vmem>>, vector<1x1x64xf32>
    %209 = vector.shape_cast %208 : vector<1x1x64xf32> to vector<1x64xf32>
    %210 = vector.broadcast %209 : vector<1x64xf32> to vector<16x64xf32>
    %211 = arith.addf %207, %210 : vector<16x64xf32>
    %cst_89 = arith.constant 5.000000e-01 : f32
    %212 = vector.broadcast %cst_89 : f32 to vector<16x64xf32>
    %213 = arith.mulf %212, %211 : vector<16x64xf32>
    %cst_90 = arith.constant 4.471500e-02 : f32
    %214 = vector.broadcast %cst_90 : f32 to vector<16x64xf32>
    %215 = arith.mulf %214, %211 : vector<16x64xf32>
    %216 = arith.mulf %215, %211 : vector<16x64xf32>
    %217 = arith.mulf %216, %211 : vector<16x64xf32>
    %218 = arith.addf %211, %217 : vector<16x64xf32>
    %cst_91 = arith.constant 0.797884583 : f32
    %219 = vector.broadcast %cst_91 : f32 to vector<16x64xf32>
    %220 = arith.mulf %219, %218 : vector<16x64xf32>
    %221 = math.tanh %220 : vector<16x64xf32>
    %cst_92 = arith.constant 1.000000e+00 : f32
    %222 = vector.broadcast %cst_92 : f32 to vector<16x64xf32>
    %223 = arith.addf %222, %221 : vector<16x64xf32>
    %224 = arith.mulf %213, %223 : vector<16x64xf32>
    %c0_93 = arith.constant 0 : index
    %c0_94 = arith.constant 0 : index
    %c0_95 = arith.constant 0 : index
    %225 = vector.load %arg19[%c0_93, %c0_94, %c0_95] : memref<2x64x32xf32, #tpu.memory_space<vmem>>, vector<1x64x32xf32>
    %226 = vector.shape_cast %225 : vector<1x64x32xf32> to vector<64x32xf32>
    %cst_96 = arith.constant dense<0.000000e+00> : vector<16x32xf32>
    %227 = tpu.matmul %224, %226, %cst_96 {dimension_numbers = #tpu.dot_dimension_numbers<[1], [0], [0], [1], [0, 0, 1, 1], [], []>} : vector<16x64xf32>, vector<64x32xf32>, vector<16x32xf32> -> vector<16x32xf32>
    %c0_97 = arith.constant 0 : index
    %c0_98 = arith.constant 0 : index
    %c0_99 = arith.constant 0 : index
    %228 = vector.load %arg20[%c0_97, %c0_98, %c0_99] : memref<2x1x32xf32, #tpu.memory_space<vmem>>, vector<1x1x32xf32>
    %229 = vector.shape_cast %228 : vector<1x1x32xf32> to vector<1x32xf32>
    %230 = vector.broadcast %229 : vector<1x32xf32> to vector<16x32xf32>
    %231 = arith.addf %227, %230 : vector<16x32xf32>
    %232 = arith.addf %204, %231 : vector<16x32xf32>
    %c0_100 = arith.constant 0 : index
    %c0_101 = arith.constant 0 : index
    %c0_102 = arith.constant 0 : index
    %233 = vector.load %arg21[%c0_100, %c0_101, %c0_102] : memref<2x1x32xf32, #tpu.memory_space<vmem>>, vector<1x1x32xf32>
    %234 = vector.shape_cast %233 : vector<1x1x32xf32> to vector<1x32xf32>
    %c0_103 = arith.constant 0 : index
    %c0_104 = arith.constant 0 : index
    %c0_105 = arith.constant 0 : index
    %235 = vector.load %arg22[%c0_103, %c0_104, %c0_105] : memref<2x1x32xf32, #tpu.memory_space<vmem>>, vector<1x1x32xf32>
    %236 = vector.shape_cast %235 : vector<1x1x32xf32> to vector<1x32xf32>
    %cst_106 = arith.constant dense<0.000000e+00> : vector<16xf32>
    %237 = vector.multi_reduction <add>, %232, %cst_106 [1] : vector<16x32xf32> to vector<16xf32>
    %238 = vector.shape_cast %237 : vector<16xf32> to vector<16x1xf32>
    %cst_107 = arith.constant 3.200000e+01 : f32
    %239 = vector.broadcast %cst_107 : f32 to vector<16x1xf32>
    %240 = arith.divf %238, %239 : vector<16x1xf32>
    %241 = vector.broadcast %240 : vector<16x1xf32> to vector<16x32xf32>
    %242 = arith.subf %232, %241 : vector<16x32xf32>
    %243 = arith.mulf %242, %242 : vector<16x32xf32>
    %cst_108 = arith.constant dense<0.000000e+00> : vector<16xf32>
    %244 = vector.multi_reduction <add>, %243, %cst_108 [1] : vector<16x32xf32> to vector<16xf32>
    %245 = vector.shape_cast %244 : vector<16xf32> to vector<16x1xf32>
    %cst_109 = arith.constant 3.200000e+01 : f32
    %246 = vector.broadcast %cst_109 : f32 to vector<16x1xf32>
    %247 = arith.divf %245, %246 : vector<16x1xf32>
    %248 = vector.broadcast %240 : vector<16x1xf32> to vector<16x32xf32>
    %249 = arith.subf %232, %248 : vector<16x32xf32>
    %cst_110 = arith.constant 9.99999996E-13 : f32
    %250 = vector.broadcast %cst_110 : f32 to vector<16x1xf32>
    %251 = arith.addf %247, %250 : vector<16x1xf32>
    %252 = math.rsqrt %251 : vector<16x1xf32>
    %253 = vector.broadcast %252 : vector<16x1xf32> to vector<16x32xf32>
    %254 = arith.mulf %249, %253 : vector<16x32xf32>
    %255 = vector.broadcast %234 : vector<1x32xf32> to vector<16x32xf32>
    %256 = arith.mulf %254, %255 : vector<16x32xf32>
    %257 = vector.broadcast %236 : vector<1x32xf32> to vector<16x32xf32>
    %258 = arith.addf %256, %257 : vector<16x32xf32>
    %c1 = arith.constant 1 : index
    %c0_111 = arith.constant 0 : index
    %c0_112 = arith.constant 0 : index
    %259 = vector.load %arg13[%c1, %c0_111, %c0_112] : memref<2x32x32xf32, #tpu.memory_space<vmem>>, vector<1x32x32xf32>
    %260 = vector.shape_cast %259 : vector<1x32x32xf32> to vector<32x32xf32>
    %c1_113 = arith.constant 1 : index
    %c0_114 = arith.constant 0 : index
    %c0_115 = arith.constant 0 : index
    %261 = vector.load %arg7[%c1_113, %c0_114, %c0_115] : memref<2x32x32xf32, #tpu.memory_space<vmem>>, vector<1x32x32xf32>
    %262 = vector.shape_cast %261 : vector<1x32x32xf32> to vector<32x32xf32>
    %cst_116 = arith.constant dense<0.000000e+00> : vector<16x32xf32>
    %263 = tpu.matmul %258, %262, %cst_116 {dimension_numbers = #tpu.dot_dimension_numbers<[1], [0], [0], [1], [0, 0, 1, 1], [], []>} : vector<16x32xf32>, vector<32x32xf32>, vector<16x32xf32> -> vector<16x32xf32>
    %c1_117 = arith.constant 1 : index
    %c0_118 = arith.constant 0 : index
    %c0_119 = arith.constant 0 : index
    %264 = vector.load %arg8[%c1_117, %c0_118, %c0_119] : memref<2x1x32xf32, #tpu.memory_space<vmem>>, vector<1x1x32xf32>
    %265 = vector.shape_cast %264 : vector<1x1x32xf32> to vector<1x32xf32>
    %266 = vector.broadcast %265 : vector<1x32xf32> to vector<16x32xf32>
    %267 = arith.addf %263, %266 : vector<16x32xf32>
    %c1_120 = arith.constant 1 : index
    %c0_121 = arith.constant 0 : index
    %c0_122 = arith.constant 0 : index
    %268 = vector.load %arg9[%c1_120, %c0_121, %c0_122] : memref<2x32x32xf32, #tpu.memory_space<vmem>>, vector<1x32x32xf32>
    %269 = vector.shape_cast %268 : vector<1x32x32xf32> to vector<32x32xf32>
    %cst_123 = arith.constant dense<0.000000e+00> : vector<16x32xf32>
    %270 = tpu.matmul %258, %269, %cst_123 {dimension_numbers = #tpu.dot_dimension_numbers<[1], [0], [0], [1], [0, 0, 1, 1], [], []>} : vector<16x32xf32>, vector<32x32xf32>, vector<16x32xf32> -> vector<16x32xf32>
    %c1_124 = arith.constant 1 : index
    %c0_125 = arith.constant 0 : index
    %c0_126 = arith.constant 0 : index
    %271 = vector.load %arg10[%c1_124, %c0_125, %c0_126] : memref<2x1x32xf32, #tpu.memory_space<vmem>>, vector<1x1x32xf32>
    %272 = vector.shape_cast %271 : vector<1x1x32xf32> to vector<1x32xf32>
    %273 = vector.broadcast %272 : vector<1x32xf32> to vector<16x32xf32>
    %274 = arith.addf %270, %273 : vector<16x32xf32>
    %c1_127 = arith.constant 1 : index
    %c0_128 = arith.constant 0 : index
    %c0_129 = arith.constant 0 : index
    %275 = vector.load %arg11[%c1_127, %c0_128, %c0_129] : memref<2x32x32xf32, #tpu.memory_space<vmem>>, vector<1x32x32xf32>
    %276 = vector.shape_cast %275 : vector<1x32x32xf32> to vector<32x32xf32>
    %cst_130 = arith.constant dense<0.000000e+00> : vector<16x32xf32>
    %277 = tpu.matmul %258, %276, %cst_130 {dimension_numbers = #tpu.dot_dimension_numbers<[1], [0], [0], [1], [0, 0, 1, 1], [], []>} : vector<16x32xf32>, vector<32x32xf32>, vector<16x32xf32> -> vector<16x32xf32>
    %c1_131 = arith.constant 1 : index
    %c0_132 = arith.constant 0 : index
    %c0_133 = arith.constant 0 : index
    %278 = vector.load %arg12[%c1_131, %c0_132, %c0_133] : memref<2x1x32xf32, #tpu.memory_space<vmem>>, vector<1x1x32xf32>
    %279 = vector.shape_cast %278 : vector<1x1x32xf32> to vector<1x32xf32>
    %280 = vector.broadcast %279 : vector<1x32xf32> to vector<16x32xf32>
    %281 = arith.addf %277, %280 : vector<16x32xf32>
    %c1_134 = arith.constant 1 : index
    %c0_135 = arith.constant 0 : index
    %c0_136 = arith.constant 0 : index
    %282 = vector.load %arg14[%c1_134, %c0_135, %c0_136] : memref<2x1x32xf32, #tpu.memory_space<vmem>>, vector<1x1x32xf32>
    %283 = vector.shape_cast %282 : vector<1x1x32xf32> to vector<1x32xf32>
    %284 = vector.extract_strided_slice %267 {offsets = [0, 0], sizes = [16, 8], strides = [1, 1]} : vector<16x32xf32> to vector<16x8xf32>
    %285 = vector.shape_cast %284 : vector<16x8xf32> to vector<2x8x8xf32>
    %286 = vector.extract_strided_slice %274 {offsets = [0, 0], sizes = [16, 8], strides = [1, 1]} : vector<16x32xf32> to vector<16x8xf32>
    %287 = vector.shape_cast %286 : vector<16x8xf32> to vector<2x8x8xf32>
    %288 = vector.extract_strided_slice %281 {offsets = [0, 0], sizes = [16, 8], strides = [1, 1]} : vector<16x32xf32> to vector<16x8xf32>
    %289 = vector.shape_cast %288 : vector<16x8xf32> to vector<2x8x8xf32>
    "tpu.trace_start"() <{level = 10 : i32, message = "bqd,bkd->bqk"}> : () -> ()
    %cst_137 = arith.constant dense<0.000000e+00> : vector<2x8x8xf32>
    %290 = tpu.matmul %285, %287, %cst_137 {dimension_numbers = #tpu.dot_dimension_numbers<[2], [2], [1], [1], [0, 0, 0, 1, 1, 1], [0], [0]>} : vector<2x8x8xf32>, vector<2x8x8xf32>, vector<2x8x8xf32> -> vector<2x8x8xf32>
    "tpu.trace_stop"() : () -> ()
    %cst_138 = arith.constant 0.353553385 : f32
    %291 = vector.broadcast %cst_138 : f32 to vector<2x8x8xf32>
    %292 = arith.mulf %290, %291 : vector<2x8x8xf32>
    %293 = vector.broadcast %47 : vector<2x1x8xf32> to vector<2x8x8xf32>
    %294 = arith.addf %292, %293 : vector<2x8x8xf32>
    %cst_139 = arith.constant dense<0xFF800000> : vector<2x8xf32>
    %295 = vector.multi_reduction <maximumf>, %294, %cst_139 [2] : vector<2x8x8xf32> to vector<2x8xf32>
    %296 = vector.shape_cast %295 : vector<2x8xf32> to vector<2x8x1xf32>
    %297 = vector.broadcast %296 : vector<2x8x1xf32> to vector<2x8x8xf32>
    %298 = arith.subf %294, %297 : vector<2x8x8xf32>
    %299 = math.exp %298 : vector<2x8x8xf32>
    %cst_140 = arith.constant dense<0.000000e+00> : vector<2x8xf32>
    %300 = vector.multi_reduction <add>, %299, %cst_140 [2] : vector<2x8x8xf32> to vector<2x8xf32>
    %301 = vector.shape_cast %300 : vector<2x8xf32> to vector<2x8x1xf32>
    %302 = tpu.reciprocal %301 {approx = true} : vector<2x8x1xf32> -> vector<2x8x1xf32>
    %303 = vector.broadcast %302 : vector<2x8x1xf32> to vector<2x8x8xf32>
    %304 = arith.mulf %299, %303 : vector<2x8x8xf32>
    "tpu.trace_start"() <{level = 10 : i32, message = "bqk,bkd->bqd"}> : () -> ()
    %cst_141 = arith.constant dense<0.000000e+00> : vector<2x8x8xf32>
    %305 = tpu.matmul %304, %289, %cst_141 {dimension_numbers = #tpu.dot_dimension_numbers<[2], [1], [1], [2], [0, 0, 0, 1, 1, 2], [0], [0]>} : vector<2x8x8xf32>, vector<2x8x8xf32>, vector<2x8x8xf32> -> vector<2x8x8xf32>
    "tpu.trace_stop"() : () -> ()
    %306 = vector.shape_cast %305 : vector<2x8x8xf32> to vector<16x8xf32>
    %307 = vector.extract_strided_slice %260 {offsets = [0, 0], sizes = [8, 32], strides = [1, 1]} : vector<32x32xf32> to vector<8x32xf32>
    %cst_142 = arith.constant dense<0.000000e+00> : vector<16x32xf32>
    %308 = tpu.matmul %306, %307, %cst_142 {dimension_numbers = #tpu.dot_dimension_numbers<[1], [0], [0], [1], [0, 0, 1, 1], [], []>} : vector<16x8xf32>, vector<8x32xf32>, vector<16x32xf32> -> vector<16x32xf32>
    %309 = vector.broadcast %283 : vector<1x32xf32> to vector<16x32xf32>
    %310 = arith.addf %309, %308 : vector<16x32xf32>
    %311 = vector.extract_strided_slice %267 {offsets = [0, 8], sizes = [16, 8], strides = [1, 1]} : vector<16x32xf32> to vector<16x8xf32>
    %312 = vector.shape_cast %311 : vector<16x8xf32> to vector<2x8x8xf32>
    %313 = vector.extract_strided_slice %274 {offsets = [0, 8], sizes = [16, 8], strides = [1, 1]} : vector<16x32xf32> to vector<16x8xf32>
    %314 = vector.shape_cast %313 : vector<16x8xf32> to vector<2x8x8xf32>
    %315 = vector.extract_strided_slice %281 {offsets = [0, 8], sizes = [16, 8], strides = [1, 1]} : vector<16x32xf32> to vector<16x8xf32>
    %316 = vector.shape_cast %315 : vector<16x8xf32> to vector<2x8x8xf32>
    "tpu.trace_start"() <{level = 10 : i32, message = "bqd,bkd->bqk"}> : () -> ()
    %cst_143 = arith.constant dense<0.000000e+00> : vector<2x8x8xf32>
    %317 = tpu.matmul %312, %314, %cst_143 {dimension_numbers = #tpu.dot_dimension_numbers<[2], [2], [1], [1], [0, 0, 0, 1, 1, 1], [0], [0]>} : vector<2x8x8xf32>, vector<2x8x8xf32>, vector<2x8x8xf32> -> vector<2x8x8xf32>
    "tpu.trace_stop"() : () -> ()
    %cst_144 = arith.constant 0.353553385 : f32
    %318 = vector.broadcast %cst_144 : f32 to vector<2x8x8xf32>
    %319 = arith.mulf %317, %318 : vector<2x8x8xf32>
    %320 = vector.broadcast %47 : vector<2x1x8xf32> to vector<2x8x8xf32>
    %321 = arith.addf %319, %320 : vector<2x8x8xf32>
    %cst_145 = arith.constant dense<0xFF800000> : vector<2x8xf32>
    %322 = vector.multi_reduction <maximumf>, %321, %cst_145 [2] : vector<2x8x8xf32> to vector<2x8xf32>
    %323 = vector.shape_cast %322 : vector<2x8xf32> to vector<2x8x1xf32>
    %324 = vector.broadcast %323 : vector<2x8x1xf32> to vector<2x8x8xf32>
    %325 = arith.subf %321, %324 : vector<2x8x8xf32>
    %326 = math.exp %325 : vector<2x8x8xf32>
    %cst_146 = arith.constant dense<0.000000e+00> : vector<2x8xf32>
    %327 = vector.multi_reduction <add>, %326, %cst_146 [2] : vector<2x8x8xf32> to vector<2x8xf32>
    %328 = vector.shape_cast %327 : vector<2x8xf32> to vector<2x8x1xf32>
    %329 = tpu.reciprocal %328 {approx = true} : vector<2x8x1xf32> -> vector<2x8x1xf32>
    %330 = vector.broadcast %329 : vector<2x8x1xf32> to vector<2x8x8xf32>
    %331 = arith.mulf %326, %330 : vector<2x8x8xf32>
    "tpu.trace_start"() <{level = 10 : i32, message = "bqk,bkd->bqd"}> : () -> ()
    %cst_147 = arith.constant dense<0.000000e+00> : vector<2x8x8xf32>
    %332 = tpu.matmul %331, %316, %cst_147 {dimension_numbers = #tpu.dot_dimension_numbers<[2], [1], [1], [2], [0, 0, 0, 1, 1, 2], [0], [0]>} : vector<2x8x8xf32>, vector<2x8x8xf32>, vector<2x8x8xf32> -> vector<2x8x8xf32>
    "tpu.trace_stop"() : () -> ()
    %333 = vector.shape_cast %332 : vector<2x8x8xf32> to vector<16x8xf32>
    %334 = vector.extract_strided_slice %260 {offsets = [8, 0], sizes = [8, 32], strides = [1, 1]} : vector<32x32xf32> to vector<8x32xf32>
    %cst_148 = arith.constant dense<0.000000e+00> : vector<16x32xf32>
    %335 = tpu.matmul %333, %334, %cst_148 {dimension_numbers = #tpu.dot_dimension_numbers<[1], [0], [0], [1], [0, 0, 1, 1], [], []>} : vector<16x8xf32>, vector<8x32xf32>, vector<16x32xf32> -> vector<16x32xf32>
    %336 = arith.addf %310, %335 : vector<16x32xf32>
    %337 = vector.extract_strided_slice %267 {offsets = [0, 16], sizes = [16, 8], strides = [1, 1]} : vector<16x32xf32> to vector<16x8xf32>
    %338 = vector.shape_cast %337 : vector<16x8xf32> to vector<2x8x8xf32>
    %339 = vector.extract_strided_slice %274 {offsets = [0, 16], sizes = [16, 8], strides = [1, 1]} : vector<16x32xf32> to vector<16x8xf32>
    %340 = vector.shape_cast %339 : vector<16x8xf32> to vector<2x8x8xf32>
    %341 = vector.extract_strided_slice %281 {offsets = [0, 16], sizes = [16, 8], strides = [1, 1]} : vector<16x32xf32> to vector<16x8xf32>
    %342 = vector.shape_cast %341 : vector<16x8xf32> to vector<2x8x8xf32>
    "tpu.trace_start"() <{level = 10 : i32, message = "bqd,bkd->bqk"}> : () -> ()
    %cst_149 = arith.constant dense<0.000000e+00> : vector<2x8x8xf32>
    %343 = tpu.matmul %338, %340, %cst_149 {dimension_numbers = #tpu.dot_dimension_numbers<[2], [2], [1], [1], [0, 0, 0, 1, 1, 1], [0], [0]>} : vector<2x8x8xf32>, vector<2x8x8xf32>, vector<2x8x8xf32> -> vector<2x8x8xf32>
    "tpu.trace_stop"() : () -> ()
    %cst_150 = arith.constant 0.353553385 : f32
    %344 = vector.broadcast %cst_150 : f32 to vector<2x8x8xf32>
    %345 = arith.mulf %343, %344 : vector<2x8x8xf32>
    %346 = vector.broadcast %47 : vector<2x1x8xf32> to vector<2x8x8xf32>
    %347 = arith.addf %345, %346 : vector<2x8x8xf32>
    %cst_151 = arith.constant dense<0xFF800000> : vector<2x8xf32>
    %348 = vector.multi_reduction <maximumf>, %347, %cst_151 [2] : vector<2x8x8xf32> to vector<2x8xf32>
    %349 = vector.shape_cast %348 : vector<2x8xf32> to vector<2x8x1xf32>
    %350 = vector.broadcast %349 : vector<2x8x1xf32> to vector<2x8x8xf32>
    %351 = arith.subf %347, %350 : vector<2x8x8xf32>
    %352 = math.exp %351 : vector<2x8x8xf32>
    %cst_152 = arith.constant dense<0.000000e+00> : vector<2x8xf32>
    %353 = vector.multi_reduction <add>, %352, %cst_152 [2] : vector<2x8x8xf32> to vector<2x8xf32>
    %354 = vector.shape_cast %353 : vector<2x8xf32> to vector<2x8x1xf32>
    %355 = tpu.reciprocal %354 {approx = true} : vector<2x8x1xf32> -> vector<2x8x1xf32>
    %356 = vector.broadcast %355 : vector<2x8x1xf32> to vector<2x8x8xf32>
    %357 = arith.mulf %352, %356 : vector<2x8x8xf32>
    "tpu.trace_start"() <{level = 10 : i32, message = "bqk,bkd->bqd"}> : () -> ()
    %cst_153 = arith.constant dense<0.000000e+00> : vector<2x8x8xf32>
    %358 = tpu.matmul %357, %342, %cst_153 {dimension_numbers = #tpu.dot_dimension_numbers<[2], [1], [1], [2], [0, 0, 0, 1, 1, 2], [0], [0]>} : vector<2x8x8xf32>, vector<2x8x8xf32>, vector<2x8x8xf32> -> vector<2x8x8xf32>
    "tpu.trace_stop"() : () -> ()
    %359 = vector.shape_cast %358 : vector<2x8x8xf32> to vector<16x8xf32>
    %360 = vector.extract_strided_slice %260 {offsets = [16, 0], sizes = [8, 32], strides = [1, 1]} : vector<32x32xf32> to vector<8x32xf32>
    %cst_154 = arith.constant dense<0.000000e+00> : vector<16x32xf32>
    %361 = tpu.matmul %359, %360, %cst_154 {dimension_numbers = #tpu.dot_dimension_numbers<[1], [0], [0], [1], [0, 0, 1, 1], [], []>} : vector<16x8xf32>, vector<8x32xf32>, vector<16x32xf32> -> vector<16x32xf32>
    %362 = arith.addf %336, %361 : vector<16x32xf32>
    %363 = vector.extract_strided_slice %267 {offsets = [0, 24], sizes = [16, 8], strides = [1, 1]} : vector<16x32xf32> to vector<16x8xf32>
    %364 = vector.shape_cast %363 : vector<16x8xf32> to vector<2x8x8xf32>
    %365 = vector.extract_strided_slice %274 {offsets = [0, 24], sizes = [16, 8], strides = [1, 1]} : vector<16x32xf32> to vector<16x8xf32>
    %366 = vector.shape_cast %365 : vector<16x8xf32> to vector<2x8x8xf32>
    %367 = vector.extract_strided_slice %281 {offsets = [0, 24], sizes = [16, 8], strides = [1, 1]} : vector<16x32xf32> to vector<16x8xf32>
    %368 = vector.shape_cast %367 : vector<16x8xf32> to vector<2x8x8xf32>
    "tpu.trace_start"() <{level = 10 : i32, message = "bqd,bkd->bqk"}> : () -> ()
    %cst_155 = arith.constant dense<0.000000e+00> : vector<2x8x8xf32>
    %369 = tpu.matmul %364, %366, %cst_155 {dimension_numbers = #tpu.dot_dimension_numbers<[2], [2], [1], [1], [0, 0, 0, 1, 1, 1], [0], [0]>} : vector<2x8x8xf32>, vector<2x8x8xf32>, vector<2x8x8xf32> -> vector<2x8x8xf32>
    "tpu.trace_stop"() : () -> ()
    %cst_156 = arith.constant 0.353553385 : f32
    %370 = vector.broadcast %cst_156 : f32 to vector<2x8x8xf32>
    %371 = arith.mulf %369, %370 : vector<2x8x8xf32>
    %372 = vector.broadcast %47 : vector<2x1x8xf32> to vector<2x8x8xf32>
    %373 = arith.addf %371, %372 : vector<2x8x8xf32>
    %cst_157 = arith.constant dense<0xFF800000> : vector<2x8xf32>
    %374 = vector.multi_reduction <maximumf>, %373, %cst_157 [2] : vector<2x8x8xf32> to vector<2x8xf32>
    %375 = vector.shape_cast %374 : vector<2x8xf32> to vector<2x8x1xf32>
    %376 = vector.broadcast %375 : vector<2x8x1xf32> to vector<2x8x8xf32>
    %377 = arith.subf %373, %376 : vector<2x8x8xf32>
    %378 = math.exp %377 : vector<2x8x8xf32>
    %cst_158 = arith.constant dense<0.000000e+00> : vector<2x8xf32>
    %379 = vector.multi_reduction <add>, %378, %cst_158 [2] : vector<2x8x8xf32> to vector<2x8xf32>
    %380 = vector.shape_cast %379 : vector<2x8xf32> to vector<2x8x1xf32>
    %381 = tpu.reciprocal %380 {approx = true} : vector<2x8x1xf32> -> vector<2x8x1xf32>
    %382 = vector.broadcast %381 : vector<2x8x1xf32> to vector<2x8x8xf32>
    %383 = arith.mulf %378, %382 : vector<2x8x8xf32>
    "tpu.trace_start"() <{level = 10 : i32, message = "bqk,bkd->bqd"}> : () -> ()
    %cst_159 = arith.constant dense<0.000000e+00> : vector<2x8x8xf32>
    %384 = tpu.matmul %383, %368, %cst_159 {dimension_numbers = #tpu.dot_dimension_numbers<[2], [1], [1], [2], [0, 0, 0, 1, 1, 2], [0], [0]>} : vector<2x8x8xf32>, vector<2x8x8xf32>, vector<2x8x8xf32> -> vector<2x8x8xf32>
    "tpu.trace_stop"() : () -> ()
    %385 = vector.shape_cast %384 : vector<2x8x8xf32> to vector<16x8xf32>
    %386 = vector.extract_strided_slice %260 {offsets = [24, 0], sizes = [8, 32], strides = [1, 1]} : vector<32x32xf32> to vector<8x32xf32>
    %cst_160 = arith.constant dense<0.000000e+00> : vector<16x32xf32>
    %387 = tpu.matmul %385, %386, %cst_160 {dimension_numbers = #tpu.dot_dimension_numbers<[1], [0], [0], [1], [0, 0, 1, 1], [], []>} : vector<16x8xf32>, vector<8x32xf32>, vector<16x32xf32> -> vector<16x32xf32>
    %388 = arith.addf %362, %387 : vector<16x32xf32>
    %389 = arith.addf %258, %388 : vector<16x32xf32>
    %c1_161 = arith.constant 1 : index
    %c0_162 = arith.constant 0 : index
    %c0_163 = arith.constant 0 : index
    %390 = vector.load %arg15[%c1_161, %c0_162, %c0_163] : memref<2x1x32xf32, #tpu.memory_space<vmem>>, vector<1x1x32xf32>
    %391 = vector.shape_cast %390 : vector<1x1x32xf32> to vector<1x32xf32>
    %c1_164 = arith.constant 1 : index
    %c0_165 = arith.constant 0 : index
    %c0_166 = arith.constant 0 : index
    %392 = vector.load %arg16[%c1_164, %c0_165, %c0_166] : memref<2x1x32xf32, #tpu.memory_space<vmem>>, vector<1x1x32xf32>
    %393 = vector.shape_cast %392 : vector<1x1x32xf32> to vector<1x32xf32>
    %cst_167 = arith.constant dense<0.000000e+00> : vector<16xf32>
    %394 = vector.multi_reduction <add>, %389, %cst_167 [1] : vector<16x32xf32> to vector<16xf32>
    %395 = vector.shape_cast %394 : vector<16xf32> to vector<16x1xf32>
    %cst_168 = arith.constant 3.200000e+01 : f32
    %396 = vector.broadcast %cst_168 : f32 to vector<16x1xf32>
    %397 = arith.divf %395, %396 : vector<16x1xf32>
    %398 = vector.broadcast %397 : vector<16x1xf32> to vector<16x32xf32>
    %399 = arith.subf %389, %398 : vector<16x32xf32>
    %400 = arith.mulf %399, %399 : vector<16x32xf32>
    %cst_169 = arith.constant dense<0.000000e+00> : vector<16xf32>
    %401 = vector.multi_reduction <add>, %400, %cst_169 [1] : vector<16x32xf32> to vector<16xf32>
    %402 = vector.shape_cast %401 : vector<16xf32> to vector<16x1xf32>
    %cst_170 = arith.constant 3.200000e+01 : f32
    %403 = vector.broadcast %cst_170 : f32 to vector<16x1xf32>
    %404 = arith.divf %402, %403 : vector<16x1xf32>
    %405 = vector.broadcast %397 : vector<16x1xf32> to vector<16x32xf32>
    %406 = arith.subf %389, %405 : vector<16x32xf32>
    %cst_171 = arith.constant 9.99999996E-13 : f32
    %407 = vector.broadcast %cst_171 : f32 to vector<16x1xf32>
    %408 = arith.addf %404, %407 : vector<16x1xf32>
    %409 = math.rsqrt %408 : vector<16x1xf32>
    %410 = vector.broadcast %409 : vector<16x1xf32> to vector<16x32xf32>
    %411 = arith.mulf %406, %410 : vector<16x32xf32>
    %412 = vector.broadcast %391 : vector<1x32xf32> to vector<16x32xf32>
    %413 = arith.mulf %411, %412 : vector<16x32xf32>
    %414 = vector.broadcast %393 : vector<1x32xf32> to vector<16x32xf32>
    %415 = arith.addf %413, %414 : vector<16x32xf32>
    %c1_172 = arith.constant 1 : index
    %c0_173 = arith.constant 0 : index
    %c0_174 = arith.constant 0 : index
    %416 = vector.load %arg17[%c1_172, %c0_173, %c0_174] : memref<2x32x64xf32, #tpu.memory_space<vmem>>, vector<1x32x64xf32>
    %417 = vector.shape_cast %416 : vector<1x32x64xf32> to vector<32x64xf32>
    %cst_175 = arith.constant dense<0.000000e+00> : vector<16x64xf32>
    %418 = tpu.matmul %415, %417, %cst_175 {dimension_numbers = #tpu.dot_dimension_numbers<[1], [0], [0], [1], [0, 0, 1, 1], [], []>} : vector<16x32xf32>, vector<32x64xf32>, vector<16x64xf32> -> vector<16x64xf32>
    %c1_176 = arith.constant 1 : index
    %c0_177 = arith.constant 0 : index
    %c0_178 = arith.constant 0 : index
    %419 = vector.load %arg18[%c1_176, %c0_177, %c0_178] : memref<2x1x64xf32, #tpu.memory_space<vmem>>, vector<1x1x64xf32>
    %420 = vector.shape_cast %419 : vector<1x1x64xf32> to vector<1x64xf32>
    %421 = vector.broadcast %420 : vector<1x64xf32> to vector<16x64xf32>
    %422 = arith.addf %418, %421 : vector<16x64xf32>
    %cst_179 = arith.constant 5.000000e-01 : f32
    %423 = vector.broadcast %cst_179 : f32 to vector<16x64xf32>
    %424 = arith.mulf %423, %422 : vector<16x64xf32>
    %cst_180 = arith.constant 4.471500e-02 : f32
    %425 = vector.broadcast %cst_180 : f32 to vector<16x64xf32>
    %426 = arith.mulf %425, %422 : vector<16x64xf32>
    %427 = arith.mulf %426, %422 : vector<16x64xf32>
    %428 = arith.mulf %427, %422 : vector<16x64xf32>
    %429 = arith.addf %422, %428 : vector<16x64xf32>
    %cst_181 = arith.constant 0.797884583 : f32
    %430 = vector.broadcast %cst_181 : f32 to vector<16x64xf32>
    %431 = arith.mulf %430, %429 : vector<16x64xf32>
    %432 = math.tanh %431 : vector<16x64xf32>
    %cst_182 = arith.constant 1.000000e+00 : f32
    %433 = vector.broadcast %cst_182 : f32 to vector<16x64xf32>
    %434 = arith.addf %433, %432 : vector<16x64xf32>
    %435 = arith.mulf %424, %434 : vector<16x64xf32>
    %c1_183 = arith.constant 1 : index
    %c0_184 = arith.constant 0 : index
    %c0_185 = arith.constant 0 : index
    %436 = vector.load %arg19[%c1_183, %c0_184, %c0_185] : memref<2x64x32xf32, #tpu.memory_space<vmem>>, vector<1x64x32xf32>
    %437 = vector.shape_cast %436 : vector<1x64x32xf32> to vector<64x32xf32>
    %cst_186 = arith.constant dense<0.000000e+00> : vector<16x32xf32>
    %438 = tpu.matmul %435, %437, %cst_186 {dimension_numbers = #tpu.dot_dimension_numbers<[1], [0], [0], [1], [0, 0, 1, 1], [], []>} : vector<16x64xf32>, vector<64x32xf32>, vector<16x32xf32> -> vector<16x32xf32>
    %c1_187 = arith.constant 1 : index
    %c0_188 = arith.constant 0 : index
    %c0_189 = arith.constant 0 : index
    %439 = vector.load %arg20[%c1_187, %c0_188, %c0_189] : memref<2x1x32xf32, #tpu.memory_space<vmem>>, vector<1x1x32xf32>
    %440 = vector.shape_cast %439 : vector<1x1x32xf32> to vector<1x32xf32>
    %441 = vector.broadcast %440 : vector<1x32xf32> to vector<16x32xf32>
    %442 = arith.addf %438, %441 : vector<16x32xf32>
    %443 = arith.addf %415, %442 : vector<16x32xf32>
    %c1_190 = arith.constant 1 : index
    %c0_191 = arith.constant 0 : index
    %c0_192 = arith.constant 0 : index
    %444 = vector.load %arg21[%c1_190, %c0_191, %c0_192] : memref<2x1x32xf32, #tpu.memory_space<vmem>>, vector<1x1x32xf32>
    %445 = vector.shape_cast %444 : vector<1x1x32xf32> to vector<1x32xf32>
    %c1_193 = arith.constant 1 : index
    %c0_194 = arith.constant 0 : index
    %c0_195 = arith.constant 0 : index
    %446 = vector.load %arg22[%c1_193, %c0_194, %c0_195] : memref<2x1x32xf32, #tpu.memory_space<vmem>>, vector<1x1x32xf32>
    %447 = vector.shape_cast %446 : vector<1x1x32xf32> to vector<1x32xf32>
    %cst_196 = arith.constant dense<0.000000e+00> : vector<16xf32>
    %448 = vector.multi_reduction <add>, %443, %cst_196 [1] : vector<16x32xf32> to vector<16xf32>
    %449 = vector.shape_cast %448 : vector<16xf32> to vector<16x1xf32>
    %cst_197 = arith.constant 3.200000e+01 : f32
    %450 = vector.broadcast %cst_197 : f32 to vector<16x1xf32>
    %451 = arith.divf %449, %450 : vector<16x1xf32>
    %452 = vector.broadcast %451 : vector<16x1xf32> to vector<16x32xf32>
    %453 = arith.subf %443, %452 : vector<16x32xf32>
    %454 = arith.mulf %453, %453 : vector<16x32xf32>
    %cst_198 = arith.constant dense<0.000000e+00> : vector<16xf32>
    %455 = vector.multi_reduction <add>, %454, %cst_198 [1] : vector<16x32xf32> to vector<16xf32>
    %456 = vector.shape_cast %455 : vector<16xf32> to vector<16x1xf32>
    %cst_199 = arith.constant 3.200000e+01 : f32
    %457 = vector.broadcast %cst_199 : f32 to vector<16x1xf32>
    %458 = arith.divf %456, %457 : vector<16x1xf32>
    %459 = vector.broadcast %451 : vector<16x1xf32> to vector<16x32xf32>
    %460 = arith.subf %443, %459 : vector<16x32xf32>
    %cst_200 = arith.constant 9.99999996E-13 : f32
    %461 = vector.broadcast %cst_200 : f32 to vector<16x1xf32>
    %462 = arith.addf %458, %461 : vector<16x1xf32>
    %463 = math.rsqrt %462 : vector<16x1xf32>
    %464 = vector.broadcast %463 : vector<16x1xf32> to vector<16x32xf32>
    %465 = arith.mulf %460, %464 : vector<16x32xf32>
    %466 = vector.broadcast %445 : vector<1x32xf32> to vector<16x32xf32>
    %467 = arith.mulf %465, %466 : vector<16x32xf32>
    %468 = vector.broadcast %447 : vector<1x32xf32> to vector<16x32xf32>
    %469 = arith.addf %467, %468 : vector<16x32xf32>
    %470 = vector.shape_cast %469 : vector<16x32xf32> to vector<2x8x32xf32>
    %471 = vector.extract_strided_slice %470 {offsets = [0, 0, 0], sizes = [2, 1, 32], strides = [1, 1, 1]} : vector<2x8x32xf32> to vector<2x1x32xf32>
    %472 = vector.shape_cast %471 : vector<2x1x32xf32> to vector<2x32xf32>
    %c0_201 = arith.constant 0 : index
    %c0_202 = arith.constant 0 : index
    %473 = vector.load %arg23[%c0_201, %c0_202] : memref<32x32xf32, #tpu.memory_space<vmem>>, vector<32x32xf32>
    %cst_203 = arith.constant dense<0.000000e+00> : vector<2x32xf32>
    %474 = tpu.matmul %472, %473, %cst_203 {dimension_numbers = #tpu.dot_dimension_numbers<[1], [0], [0], [1], [0, 0, 1, 1], [], []>} : vector<2x32xf32>, vector<32x32xf32>, vector<2x32xf32> -> vector<2x32xf32>
    %c0_204 = arith.constant 0 : index
    %c0_205 = arith.constant 0 : index
    %475 = vector.load %arg24[%c0_204, %c0_205] : memref<1x32xf32, #tpu.memory_space<vmem>>, vector<1x32xf32>
    %476 = vector.broadcast %475 : vector<1x32xf32> to vector<2x32xf32>
    %477 = arith.addf %474, %476 : vector<2x32xf32>
    %478 = math.tanh %477 : vector<2x32xf32>
    %c0_206 = arith.constant 0 : index
    %c0_207 = arith.constant 0 : index
    %479 = vector.load %arg25[%c0_206, %c0_207] : memref<32x2xf32, #tpu.memory_space<vmem>>, vector<32x2xf32>
    %cst_208 = arith.constant dense<0.000000e+00> : vector<2x2xf32>
    %480 = tpu.matmul %478, %479, %cst_208 {dimension_numbers = #tpu.dot_dimension_numbers<[1], [0], [0], [1], [0, 0, 1, 1], [], []>} : vector<2x32xf32>, vector<32x2xf32>, vector<2x2xf32> -> vector<2x2xf32>
    %c0_209 = arith.constant 0 : index
    %c0_210 = arith.constant 0 : index
    %481 = vector.load %arg26[%c0_209, %c0_210] : memref<1x2xf32, #tpu.memory_space<vmem>>, vector<1x2xf32>
    %482 = vector.broadcast %481 : vector<1x2xf32> to vector<2x2xf32>
    %483 = arith.addf %480, %482 : vector<2x2xf32>
    %cst_211 = arith.constant dense<0xFF800000> : vector<2xf32>
    %484 = vector.multi_reduction <maximumf>, %483, %cst_211 [1] : vector<2x2xf32> to vector<2xf32>
    %485 = vector.shape_cast %484 : vector<2xf32> to vector<2x1xf32>
    %486 = vector.broadcast %485 : vector<2x1xf32> to vector<2x2xf32>
    %487 = arith.subf %483, %486 : vector<2x2xf32>
    %488 = math.exp %487 : vector<2x2xf32>
    %cst_212 = arith.constant dense<0.000000e+00> : vector<2xf32>
    %489 = vector.multi_reduction <add>, %488, %cst_212 [1] : vector<2x2xf32> to vector<2xf32>
    %490 = vector.shape_cast %489 : vector<2xf32> to vector<2x1xf32>
    %491 = vector.broadcast %490 : vector<2x1xf32> to vector<2x2xf32>
    %492 = arith.divf %488, %491 : vector<2x2xf32>
    %c0_213 = arith.constant 0 : index
    %c0_214 = arith.constant 0 : index
    %493 = vector.load %arg27[%c0_213, %c0_214] : memref<2x2xf32, #tpu.memory_space<vmem>>, vector<2x2xf32>
    tpu.vector_store %arg27[%c0_213, %c0_214], %492 {strides = array<i32>} : memref<2x2xf32, #tpu.memory_space<vmem>>, vector<2x2xf32>,
    return
  }
}

</mosaic_0001>

<bundles_post_ra>
// kernel: tpu_custom_call.1
= control target key start
LH: loop header
LB: loop body
LE: loop exit
PB: predicated region body
PF: predicated region fallthrough
CT: control target
= control target key end

     0   :  { %s7064_s0 = inlined_call_operand.vmem [shape: s32[16,1], index: 0, kind: input, shape index: {}]   ;;  %s7065_s1 = inlined_call_operand.vmem [shape: f32[2,8], index: 1, kind: input, shape index: {}]   ;;  %s7066_s2 = inlined_call_operand.vmem [shape: f32[128,32], index: 2, kind: input, shape index: {}]   ;;  %s7067_s3 = inlined_call_operand.hbm [shape: f32[16,32], index: 3, kind: input, shape index: {}]   ;;  %s7068_s4 = inlined_call_operand.hbm [shape: f32[2,32], index: 4, kind: input, shape index: {}]   ;;  %s7069_s5 = inlined_call_operand.hbm [shape: f32[1,32], index: 5, kind: input, shape index: {}]   ;;  %s7070_s6 = inlined_call_operand.hbm [shape: f32[1,32], index: 6, kind: input, shape index: {}]   ;;  %s7071_s7 = inlined_call_operand.vmem [shape: f32[2,32,32], index: 7, kind: input, shape index: {}]   ;;  %s7072_s8 = inlined_call_operand.vmem [shape: f32[2,1,32], index: 8, kind: input, shape index: {}]   ;;  %s7073_s9 = inlined_call_operand.vmem [shape: f32[2,32,32], index: 9, kind: input, shape index: {}]   ;;  %s7074_s10 = inlined_call_operand.vmem [shape: f32[2,1,32], index: 10, kind: input, shape index: {}]   ;;  %s7075_s11 = inlined_call_operand.vmem [shape: f32[2,32,32], index: 11, kind: input, shape index: {}]   ;;  %s7076_s12 = inlined_call_operand.vmem [shape: f32[2,1,32], index: 12, kind: input, shape index: {}]   ;;  %s7077_s13 = inlined_call_operand.vmem [shape: f32[2,32,32], index: 13, kind: input, shape index: {}]   ;;  %s7078_s14 = inlined_call_operand.vmem [shape: f32[2,1,32], index: 14, kind: input, shape index: {}]   ;;  %s7079_s15 = inlined_call_operand.vmem [shape: f32[2,1,32], index: 15, kind: input, shape index: {}]   ;;  %s7080_s16 = inlined_call_operand.vmem [shape: f32[2,1,32], index: 16, kind: input, shape index: {}]   ;;  %s7081_s17 = inlined_call_operand.vmem [shape: f32[2,32,64], index: 17, kind: input, shape index: {}]   ;;  %s7082_s18 = inlined_call_operand.vmem [shape: f32[2,1,64], index: 18, kind: input, shape index: {}]   ;;  %s7083_s19 = inlined_call_operand.vmem [shape: f32[2,64,32], index: 19, kind: input, shape index: {}]   ;;  %s7084_s20 = inlined_call_operand.vmem [shape: f32[2,1,32], index: 20, kind: input, shape index: {}]   ;;  %s7085_s21 = inlined_call_operand.vmem [shape: f32[2,1,32], index: 21, kind: input, shape index: {}]   ;;  %s7086_s22 = inlined_call_operand.vmem [shape: f32[2,1,32], index: 22, kind: input, shape index: {}]   ;;  %s7087_s23 = inlined_call_operand.vmem [shape: f32[32,32], index: 23, kind: input, shape index: {}]   ;;  %s7088_s24 = inlined_call_operand.vmem [shape: f32[1,32], index: 24, kind: input, shape index: {}]   ;;  %s7089_s25 = inlined_call_operand.vmem [shape: f32[32,2], index: 25, kind: input, shape index: {}]   ;;  %s7090_s26 = inlined_call_operand.vmem [shape: f32[1,2], index: 26, kind: input, shape index: {}]   ;;  %s7091_s27 = inlined_call_operand.hbm [shape: f32[2,2], index: 27, kind: output, shape index: {}]  }
   0x1   :  { %7104 = sst [smem:[#allocation15_spill]] %s7064_s0 }
   0x2   :  { %7105 = sst [smem:[#allocation16_spill]] %s7065_s1 }
   0x3   :  { %7106 = sst [smem:[#allocation17_spill]] %s7066_s2 }
   0x4   :  { %7107 = sst [smem:[#allocation18_spill]] %s7067_s3 }
   0x5   :  { %7108 = sst [smem:[#allocation19_spill]] %s7068_s4 }
   0x6   :  { %7109 = sst [smem:[#allocation20_spill]] %s7069_s5 }
   0x7   :  { %7110 = sst [smem:[#allocation21_spill]] %s7070_s6 }
   0x8   :  { %7111 = sst [smem:[#allocation22_spill]] %s7071_s7 }
   0x9   :  { %7112 = sst [smem:[#allocation23_spill]] %s7072_s8 }
   0xa   :  { %7113 = sst [smem:[#allocation24_spill]] %s7073_s9 }
   0xb   :  { %7114 = sst [smem:[#allocation25_spill]] %s7074_s10 }
   0xc   :  { %7115 = sst [smem:[#allocation26_spill]] %s7075_s11 }
   0xd   :  { %7116 = sst [smem:[#allocation27_spill]] %s7088_s24 }
   0xe   :  { %7117 = sst [smem:[#allocation28_spill]] %s7090_s26 }
   0xf   :  { %7118 = sst [smem:[#allocation29_spill]] %s7091_s27 }
  0x10   :  { %32 = vsyncpa [#allocation3], 0 }
  0x11   :  { %33 = vsyncpa [#allocation6], 0 }
  0x12   :  { %34 = vsyncpa [#allocation9], 0 }
  0x13   :  { %35 = vsyncpa [#allocation4], 0  ;;  %s6131_s7 = smov [#allocation5]   ;;  %s6132_s8 = smov [#allocation2]  }
  0x14   :  { %s60_s4 = sshll.u32 %s6131_s7, 4  ;;  %s47_s30 = sshll.u32 %s6132_s8, 4  ;;  %s61_s4 = int_to_ptr.vmem [resolvable:$true] %s60_s4  ;;  %s6287_s30 = int_to_ptr.vmem [resolvable:$true] %s47_s30 }
  0x15   :  { %s7119_s28 = sld [smem:[#allocation19_spill]] }
  0x1b   :  { %s6013_s0 = scalar_lea.hbm %s7119_s28, 32 }
  0x1c   :  { %p6014_p0 = scmp.ne.s32.totalorder %s7119_s28, %s6013_s0  ;;  %p6017_p1 = scmp.lt.u32.totalorder %s6013_s0, %s7119_s28 }
  0x1e   :  { %p6019_p2 = pnand %p6017_p1, %p6014_p0 }
  0x20   :  { %6022 = shalt.err (!%p6019_p2)
}
  0x21   :  { %s6023_s11 = scalar_lea.vmem %s61_s4, 32  ;;  %p6028_p4 = scmp.lt.s32.totalorder %s61_s4, %s61_s4 }
  0x22   :  { %p6024_p3 = scmp.ne.s32.totalorder %s61_s4, %s6023_s11  ;;  %p6029_p5 = scmp.lt.s32.totalorder %s6023_s11, %s6023_s11 }
  0x24   :  { %p6030_p6 = por %p6029_p5, %p6028_p4 }
  0x26   :  { %p6031_p7 = pnand %p6030_p6, %p6024_p3 }
  0x28   :  { %6034 = shalt.err (!%p6031_p7)
}
  0x29   :  { %63 = dma.hbm_to_vmem [thread:$0]  %s7119_s28, 32, %s61_s4, [#allocation6]  }
  0x2a   :  { %s7120_s9 = sld [smem:[#allocation18_spill]] }
  0x30   :  { %s6035_s5 = scalar_lea.hbm %s7120_s9, 256 }
  0x31   :  { %p6036_p8 = scmp.ne.s32.totalorder %s7120_s9, %s6035_s5  ;;  %p6039_p9 = scmp.lt.u32.totalorder %s6035_s5, %s7120_s9 }
  0x33   :  { %p6041_p10 = pnand %p6039_p9, %p6036_p8 }
  0x35   :  { %6044 = shalt.err (!%p6041_p10)
}
  0x36   :  { %s6045_s6 = scalar_lea.vmem %s6287_s30, 256  ;;  %p6050_p12 = scmp.lt.s32.totalorder %s6287_s30, %s6287_s30 }
  0x37   :  { %p6046_p11 = scmp.ne.s32.totalorder %s6287_s30, %s6045_s6  ;;  %p6051_p13 = scmp.lt.s32.totalorder %s6045_s6, %s6045_s6 }
  0x39   :  { %p6052_p0 = por %p6051_p13, %p6050_p12 }
  0x3b   :  { %p6053_p1 = pnand %p6052_p0, %p6046_p11 }
  0x3d   :  { %6056 = shalt.err (!%p6053_p1)
}
  0x3e   :  { %s6133_s4 = smov 128   ;;  %s6134_s28 = smov 8  }
  0x3f   :  { %53 = dma.hbm_to_vmem [thread:$0]  %s7120_s9, 256, %s6287_s30, [#allocation3], %s6133_s4, %s6133_s4, %s6134_s28  }
  0x40   :  { %s6135_s3 = smov [#allocation7]   ;;  %s6136_s8 = smov [#allocation8]  }
  0x41   :  { %s70_s7 = sshll.u32 %s6135_s3, 4  ;;  %s80_s5 = sshll.u32 %s6136_s8, 4  ;;  %s71_s7 = int_to_ptr.vmem [resolvable:$true] %s70_s7  ;;  %s81_s5 = int_to_ptr.vmem [resolvable:$true] %s80_s5 }
  0x42   :  { %s7121_s0 = sld [smem:[#allocation20_spill]] }
  0x48   :  { %s6057_s1 = scalar_lea.hbm %s7121_s0, 16 }
  0x49   :  { %p6058_p2 = scmp.ne.s32.totalorder %s7121_s0, %s6057_s1  ;;  %p6061_p3 = scmp.lt.u32.totalorder %s6057_s1, %s7121_s0 }
  0x4b   :  { %p6063_p4 = pnand %p6061_p3, %p6058_p2 }
  0x4d   :  { %6066 = shalt.err (!%p6063_p4)
}
  0x4e   :  { %s6067_s30 = scalar_lea.vmem %s71_s7, 16  ;;  %s6071_s9 = scalar_lea.vmem %s71_s7, 32 }
  0x4f   :  { %p6068_p5 = scmp.ne.s32.totalorder %s71_s7, %s6067_s30  ;;  %p6072_p6 = scmp.lt.s32.totalorder %s71_s7, %s71_s7 }
  0x50   :  { %p6073_p7 = scmp.lt.s32.totalorder %s6071_s9, %s6067_s30 }
  0x52   :  { %p6074_p8 = por %p6073_p7, %p6072_p6 }
  0x54   :  { %p6075_p9 = pnand %p6074_p8, %p6068_p5 }
  0x56   :  { %6078 = shalt.err (!%p6075_p9)
}
  0x57   :  { %73 = dma.hbm_to_vmem [thread:$0]  %s7121_s0, 16, %s71_s7, [#allocation6]  }
  0x58   :  { %s7122_s2 = sld [smem:[#allocation21_spill]] }
  0x5e   :  { %s6079_s3 = scalar_lea.hbm %s7122_s2, 16 }
  0x5f   :  { %p6080_p10 = scmp.ne.s32.totalorder %s7122_s2, %s6079_s3  ;;  %p6083_p11 = scmp.lt.u32.totalorder %s6079_s3, %s7122_s2 }
  0x61   :  { %p6085_p12 = pnand %p6083_p11, %p6080_p10 }
  0x63   :  { %6088 = shalt.err (!%p6085_p12)
}
  0x64   :  { %s6089_s29 = scalar_lea.vmem %s81_s5, 16  ;;  %s6093_s1 = scalar_lea.vmem %s81_s5, 32 }
  0x65   :  { %p6090_p13 = scmp.ne.s32.totalorder %s81_s5, %s6089_s29  ;;  %p6094_p0 = scmp.lt.s32.totalorder %s81_s5, %s81_s5 }
  0x66   :  { %p6095_p1 = scmp.lt.s32.totalorder %s6093_s1, %s6089_s29 }
  0x68   :  { %p6096_p2 = por %p6095_p1, %p6094_p0 }
  0x6a   :  { %p6097_p3 = pnand %p6096_p2, %p6090_p13 }
  0x6c   :  { %6100 = shalt.err (!%p6097_p3)
}
  0x6d   :  { %83 = dma.hbm_to_vmem [thread:$0]  %s7122_s2, 16, %s81_s5, [#allocation9]  }
  0x6e   :  { %6123 = dma.done.wait [#allocation3], 256  }
  0x6f   :  { %6124 = vsyncadd [#allocation3], 4294967040 }
  0x70   :  { %6125 = dma.done.wait [#allocation6], 48  }
  0x71   :  { %6126 = vsyncadd [#allocation6], 4294967248 }
  0x72   :  { %6127 = dma.done.wait [#allocation9], 16  }
  0x73   :  { %6128 = vsyncadd [#allocation9], 4294967280  ;;  %v6137_v0 = vmov 0   ;;  %s7123_s9 = sld [smem:[#allocation15_spill]]  ;;  %s7124_s27 = sld [smem:[#allocation17_spill]]  ;;  %v138_v27 = vlaneseq  ;;  %v6138_v30 = vmov 1.0  }
  0x74   :  { %5914 = vset.pattern.permute.xlu0 %v6137_v0  ;;  %v243_v32 = vld [vmem:[#allocation2] sm:$0xff]  ;;  %v5026_v35 = vld [vmem:[#allocation5] ss:$0 sm:$0xff]  ;;  %vm255_vm2 = vcmask 261120   ;;  %s7125_s28 = sld [smem:[#allocation22_spill]]  ;;  %s7126_s29 = sld [smem:[#allocation24_spill]] }
  0x75   :  { %v139_v28 = vand.u32 127, %v138_v27  ;;  %s7127_s11 = sld [smem:[#allocation26_spill]]  ;;  %vm6140_vm3 = vmmov 0   ;;  %s7128_s7 = sld [smem:[#allocation23_spill]]  ;;  %vm594_vm4 = vcmask 64512   ;;  %vm2442_vm5 = vcmask 523264  }
  0x76   :  { %s6141_s0 = smov 120   ;;  %s7130_s2 = sld [smem:[#allocation16_spill]]  ;;  %vm4833_vm6 = vcmask 1041409   ;;  %vm4992_vm7 = vcmask 9216  }
  0x77   :  { %s6143_s8 = smov 112   ;;  %s6144_s10 = smov 104  }
  0x78   :  { %s7132_s4 = sld [smem:[#allocation28_spill]] }
  0x79   :  { %v136_v1 = vld [vmem:[%s7123_s9] sm:$0xff]  ;;  %v153_v3 = vld [vmem:[%s7124_s27 + $0x8] sm:$0xff]  ;;  %v154_v4 = vld [vmem:[%s7124_s27 + $0x10] sm:$0xff] }
  0x7a   :  { %v152_v2 = vld [vmem:[%s7124_s27] sm:$0xff]  ;;  %141 = vperm.xlu0 %5914, %v136_v1   ;;  %v155_v5 = vld [vmem:[%s7124_s27 + $0x18] sm:$0xff]  ;;  %v137_v6 = vld [vmem:[%s7123_s9 + $0x8] sm:$0xff]  ;;  %s7129_s9 = sld [smem:[#allocation25_spill]] }
  0x7b   :  { %v5742_v7 = vpack.c.bf16 %v153_v3, %v152_v2  ;;  %v5746_v8 = vpack.c.bf16 %v155_v5, %v154_v4  ;;  %v156_v9 = vld [vmem:[%s7124_s27 + $0x20] sm:$0xff]  ;;  %v157_v10 = vld [vmem:[%s7124_s27 + $0x28] sm:$0xff]  ;;  %v158_v12 = vld [vmem:[%s7124_s27 + $0x30] sm:$0xff] }
  0x7c   :  { %v5750_v11 = vpack.c.bf16 %v157_v10, %v156_v9  ;;  %v159_v13 = vld [vmem:[%s7124_s27 + $0x38] sm:$0xff]  ;;  %v160_v15 = vld [vmem:[%s7124_s27 + $0x40] sm:$0xff]  ;;  %v161_v16 = vld [vmem:[%s7124_s27 + $0x48] sm:$0xff] }
  0x7d   :  { %5743 = vmatprep.subr.bf16.mxu0 %v5742_v7  ;;  %v5754_v14 = vpack.c.bf16 %v159_v13, %v158_v12  ;;  %v5758_v17 = vpack.c.bf16 %v161_v16, %v160_v15  ;;  %v162_v18 = vld [vmem:[%s7124_s27 + $0x50] sm:$0xff]  ;;  %v163_v19 = vld [vmem:[%s7124_s27 + $0x58] sm:$0xff]  ;;  %v164_v21 = vld [vmem:[%s7124_s27 + $0x60] sm:$0xff] }
  0x7e   :  { %144 = vperm.xlu0 %5914, %v137_v6   ;;  %5745 = vmatpush3.bf16.msra.mxu0 %v5742_v7  ;;  %v5762_v20 = vpack.c.bf16 %v163_v19, %v162_v18  ;;  %v165_v22 = vld [vmem:[%s7124_s27 + $0x68] sm:$0xff]  ;;  %v166_v24 = vld [vmem:[%s7124_s27 + $0x70] sm:$0xff]  ;;  %v167_v25 = vld [vmem:[%s7124_s27 + $0x78] sm:$0xff] }
  0x7f   :  { %5747 = vmatprep.subr.bf16.mxu0 %v5746_v8  ;;  %v5766_v23 = vpack.c.bf16 %v165_v22, %v164_v21  ;;  %v5770_v26 = vpack.c.bf16 %v167_v25, %v166_v24  ;;  %v329_v52 = vld [vmem:[%s7125_s28] sm:$0xff]  ;;  %v330_v53 = vld [vmem:[%s7125_s28 + $0x8] sm:$0xff]  ;;  %v331_v54 = vld [vmem:[%s7125_s28 + $0x10] sm:$0xff]  ;;  %v6139_v22 = vmov 0.0  }
  0x80   :  { %v5774_v55 = vpack.c.bf16 %v330_v53, %v329_v52  ;;  %v332_v56 = vld [vmem:[%s7125_s28 + $0x18] sm:$0xff]  ;;  %v421_v58 = vld [vmem:[%s7126_s29] sm:$0xff]  ;;  %v422_v59 = vld [vmem:[%s7126_s29 + $0x8] sm:$0xff] }
  0x81   :  { %v5778_v57 = vpack.c.bf16 %v332_v56, %v331_v54  ;;  %v5782_v60 = vpack.c.bf16 %v422_v59, %v421_v58  ;;  %v5027_v4 = vld [vmem:[#allocation7] ss:$0 sm:$0xff]  ;;  %v5028_v6 = vld [vmem:[#allocation8] ss:$0 sm:$0xff]  ;;  %v424_v12 = vld [vmem:[%s7126_s29 + $0x18] sm:$0xff] }
  0x82   :  { %5749 = vmatpush3.bf16.msra.mxu0 %v5746_v8  ;;  %5775 = vmatprep.subr.bf16.mxu1 %v5774_v55  ;;  %v507_v16 = vld [vmem:[%s7127_s11] sm:$0xff]  ;;  %v509_v19 = vld [vmem:[%s7127_s11 + $0x10] sm:$0xff] }
  0x83   :  { %5751 = vmatprep.subr.bf16.mxu0 %v5750_v11  ;;  %5777 = vmatpush3.bf16.msra.mxu1 %v5774_v55 }
  0x84   :  { %5779 = vmatprep.subr.bf16.mxu1 %v5778_v57 }
  0x86   :  { %5753 = vmatpush3.bf16.msra.mxu0 %v5750_v11  ;;  %v423_v11 = vld [vmem:[%s7126_s29 + $0x10] sm:$0xff] }
  0x87   :  { %5755 = vmatprep.subr.bf16.mxu0 %v5754_v14  ;;  %5781 = vmatpush3.bf16.msra.mxu1 %v5778_v57  ;;  %v5786_v15 = vpack.c.bf16 %v424_v12, %v423_v11 }
  0x88   :  { %5783 = vmatprep.subr.bf16.mxu1 %v5782_v60 }
  0x8a   :  { %5757 = vmatpush3.bf16.msra.mxu0 %v5754_v14 }
  0x8b   :  { %5759 = vmatprep.subr.bf16.mxu0 %v5758_v17 }
  0x8e   :  { %5761 = vmatpush3.bf16.msra.mxu0 %v5758_v17  ;;  %v508_v17 = vld [vmem:[%s7127_s11 + $0x8] sm:$0xff] }
  0x8f   :  { %5763 = vmatprep.subr.bf16.mxu0 %v5762_v20  ;;  %v5790_v18 = vpack.c.bf16 %v508_v17, %v507_v16 }
  0x92   :  { %5765 = vmatpush3.bf16.msra.mxu0 %v5762_v20  ;;  %v510_v20 = vld [vmem:[%s7127_s11 + $0x18] sm:$0xff] }
  0x93   :  { %5767 = vmatprep.subr.bf16.mxu0 %v5766_v23  ;;  %v5794_v21 = vpack.c.bf16 %v510_v20, %v509_v19 }
  0x96   :  { %5769 = vmatpush3.bf16.msra.mxu0 %v5766_v23  ;;  %v5029_v23 = vld [vmem:[%s7128_s7] ss:$0 sm:$0xff] }
  0x97   :  { %5771 = vmatprep.subr.bf16.mxu0 %v5770_v26 }
  0x9a   :  { %5773 = vmatpush3.bf16.msra.mxu0 %v5770_v26 }
  0x9b   :  { %5437 = vmatprep.subr.mxu0 %v6139_v22 }
  0xf9   :  { %v142_v29 = vpop.permute.xlu0 %141 }
  0xfa   :  { %vm146_vm0 = vcmp.eq.s32.totalorder %v142_v29, %v139_v28 }
  0xfb   :  { %5391 = vmatprep.mubr.msk.f32.mxu0 %vm146_vm0, %v6138_v30 }
  0xfd   :  { %v145_v31 = vpop.permute.xlu0 %144 }
  0xfe   :  { %vm147_vm1 = vcmp.eq.s32.totalorder %v145_v31, %v139_v28  ;;  %v5032_v28 = vld [vmem:[%s7129_s9] ss:$0 sm:$0xff] }
  0xff   :  { %5392 = vmatmul.mubr.msk.f32.vlgmr.msra.gmra.mrb[0].mxu0 %vm147_vm1, %v6138_v30 }
 0x100   :  { %5439 = vmatprep.mubr.msk.f32.mxu0 %vm6140_vm3, %v6139_v22 }
 0x1d2   :  { %v5393_v33 = vpop.f32.mrb[0].mxu0 }
 0x1d3   :  { %v234_v34 = vpop.f32.mrb[1].mxu0  ;;  %v246_v36 = vadd.f32 %v5393_v33, %v243_v32  ;;  %v5035_v33 = vld [vmem:[%s7076_s12] ss:$0 sm:$0xff] }
 0x1d4   :  { %v245_v37 = vadd.f32 %v243_v32, %v234_v34 }
 0x1d5   :  { %v252_v40 = vadd.f32 %v5026_v35, %v246_v36 }
 0x1d6   :  { %v251_v38 = vadd.f32 %v5026_v35, %v245_v37 }
 0x1d7   :  { %v259_v41 = vsel %vm255_vm2, %v252_v40, 0.0 }
 0x1d8   :  { %v256_v39 = vsel %vm255_vm2, %v251_v38, 0.0 }
 0x1d9   :  { %257 = vadd.xlane.f32.xlu1 %v256_v39  ;;  %v6142_v39 = vmov 1966171168  }
 0x1dd   :  { %260 = vadd.xlane.f32.xlu1 %v259_v41  ;;  %v299_v41 = vld [vmem:[%s7130_s2] sm:$0x3] }
 0x266   :  { %v258_v42 = vpop.xlane.xlu1 %257 }
 0x267   :  { %v263_v43 = vmul.f32 0.03125, %v258_v42  ;;  %v300_v42 = vsub.f32 1.0, %v299_v41 }
 0x269   :  { %v265_v44 = vsub.f32 %v251_v38, %v263_v43 }
 0x26a   :  { %v261_v45 = vpop.xlane.xlu1 %260 }
 0x26b   :  { %v264_v46 = vmul.f32 0.03125, %v261_v45  ;;  %v267_v47 = vmul.f32 %v265_v44, %v265_v44  ;;  %v301_v45 = vmul.f32 -10000.0, %v300_v42 }
 0x26d   :  { %v266_v48 = vsub.f32 %v252_v40, %v264_v46  ;;  %v269_v49 = vsel %vm255_vm2, %v267_v47, 0.0  ;;  %v304_v40 = vunpack.c.l.s4 %v6142_v39 }
 0x26e   :  { %270 = vadd.xlane.f32.xlu0 %v269_v49 }
 0x26f   :  { %v268_v50 = vmul.f32 %v266_v48, %v266_v48  ;;  %v305_v43 = vunpack.c.0.s8 %v304_v40 }
 0x271   :  { %v272_v51 = vsel %vm255_vm2, %v268_v50, 0.0 }
 0x272   :  { %273 = vadd.xlane.f32.xlu1 %v272_v51 }
 0x2fb   :  { %v271_v61 = vpop.xlane.xlu0 %270 }
 0x2fc   :  { %v275_v62 = vmul.f32 0.03125, %v271_v61 }
 0x2fe   :  { %v277_v63 = vadd.f32 1e-12, %v275_v62 }
 0x2ff   :  { %v274_v0 = vpop.xlane.xlu1 %273 }
 0x300   :  { %5915 = vrsqrt.f32 %v277_v63  ;;  %v276_v1 = vmul.f32 0.03125, %v274_v0 }
 0x302   :  { %v278_v2 = vadd.f32 1e-12, %v276_v1 }
 0x304   :  { %5917 = vrsqrt.f32 %v278_v2 }
 0x30a   :  { %v5916_v3 = vpop.eup %5915 }
 0x30b   :  { %v281_v5 = vmul.f32 %v5916_v3, %v265_v44  ;;  %v307_v44 = vshrl.u32 %v138_v27, 7 }
 0x30d   :  { %v289_v7 = vmul.f32 %v5027_v4, %v281_v5  ;;  %v308_v46 = vsub.s32 %v305_v43, %v307_v44  ;;  %v751_v50 = vsub.s32 0, %v307_v44 }
 0x30e   :  { %v5918_v8 = vpop.eup %5917 }
 0x30f   :  { %v6419_v9 = vadd.f32 %v5028_v6, %v289_v7  ;;  %v282_v10 = vmul.f32 %v5918_v8, %v266_v48  ;;  %v309_v47 = vrot.slane %v301_v45, %v308_v46 }
 0x311   :  { %5402 = vmatprep.mubr.msk.f32.mxu1 %vm255_vm2, %v6419_v9  ;;  %v290_v13 = vmul.f32 %v5027_v4, %v282_v10  ;;  %v310_v48 = vcombine.high %v309_v47, %v309_v47  ;;  %v317_v49 = vrot.slane %v309_v47, %v308_v46  ;;  %v325_v10 = vld [vmem:[%s7077_s13] sm:$0xff] }
 0x313   :  { %v6429_v14 = vadd.f32 %v5028_v6, %v290_v13  ;;  %v324_v51 = vrot.slane %v310_v48, %v308_v46  ;;  %v6503_v52 = vrot.slane %v317_v49, %v751_v50 }
 0x315   :  { %5403 = vmatmul.mubr.msk.f32.vlgmr.msra.gmra.mrb[0].mxu1 %vm255_vm2, %v6429_v14  ;;  %v6505_v56 = vrot.slane %v324_v51, %v751_v50 }
 0x316   :  { %5785 = vmatpush3.bf16.msra.mxu1 %v5782_v60  ;;  %5413 = vmatprep.mubr.msk.f32.mxu1 %vm255_vm2, %v6419_v9 }
 0x317   :  { %5787 = vmatprep.subr.bf16.mxu1 %v5786_v15 }
 0x31a   :  { %5789 = vmatpush3.bf16.msra.mxu1 %v5786_v15 }
 0x31b   :  { %5791 = vmatprep.subr.bf16.mxu1 %v5790_v18 }
 0x31d   :  { %5414 = vmatmul.mubr.msk.f32.vlgmr.msra.gmra.mrb[2].mxu1 %vm255_vm2, %v6429_v14 }
 0x31e   :  { %5793 = vmatpush3.bf16.msra.mxu1 %v5790_v18  ;;  %5424 = vmatprep.mubr.msk.f32.mxu1 %vm255_vm2, %v6419_v9 }
 0x31f   :  { %5795 = vmatprep.subr.bf16.mxu1 %v5794_v21 }
 0x322   :  { %5797 = vmatpush3.bf16.msra.mxu1 %v5794_v21 }
 0x323   :  { %5427 = vmatprep.subr.mxu1 %v6139_v22 }
 0x325   :  { %5425 = vmatmul.mubr.msk.f32.vlgmr.msra.gmra.mrb[4].mxu1 %vm255_vm2, %v6429_v14 }
 0x326   :  { %5429 = vmatprep.mubr.msk.f32.mxu1 %vm6140_vm3, %v6139_v22 }
 0x3e8   :  { %v5404_v24 = vpop.f32.mrb[0].mxu1 }
 0x3e9   :  { %v412_v25 = vpop.f32.mrb[1].mxu1  ;;  %v6485_v35 = vadd.f32 %v5404_v24, %v5029_v23 }
 0x3ea   :  { %v6462_v26 = vadd.f32 %v5029_v23, %v412_v25 }
 0x3ec   :  { %1018 = vrot.lane.b32.xlu0 %v6462_v26, %s6141_s0 }
 0x3f0   :  { %v5415_v29 = vpop.f32.mrb[2].mxu1 }
 0x3f1   :  { %v498_v30 = vpop.f32.mrb[3].mxu1  ;;  %v6474_v32 = vadd.f32 %v5415_v29, %v5032_v28 }
 0x3f2   :  { %v6469_v31 = vadd.f32 %v5032_v28, %v498_v30 }
 0x3f4   :  { %5428 = vmatpush3.xpose.msk.msra.mxu1 %vm594_vm4, %v6469_v31 }
 0x3f5   :  { %5432 = vmatprep.subr.mxu1 %v6139_v22 }
 0x3f7   :  { %5430 = vmatmul.mubr.msk.f32.vlgmr.msra.gmra.mrb[6].mxu1 %vm594_vm4, %v6462_v26 }
 0x3f8   :  { %v5426_v34 = vpop.f32.mrb[4].mxu1  ;;  %5433 = vmatpush3.xpose.msk.msra.mxu1 %vm594_vm4, %v6474_v32  ;;  %5434 = vmatprep.mubr.msk.f32.mxu1 %vm6140_vm3, %v6139_v22 }
 0x3f9   :  { %v6487_v36 = vadd.f32 %v5426_v34, %v5035_v33  ;;  %v584_v37 = vpop.f32.mrb[5].mxu1  ;;  %5442 = vmatprep.subr.mxu1 %v6139_v22 }
 0x3fa   :  { %v6490_v38 = vadd.f32 %v5035_v33, %v584_v37 }
 0x3fb   :  { %5435 = vmatmul.mubr.msk.f32.vlgmr.msra.gmra.mrb[8].mxu1 %vm594_vm4, %v6485_v35 }
 0x3fc   :  { %5438 = vmatpush3.msra.mxu0 %v6490_v38  ;;  %5443 = vmatpush3.msra.mxu1 %v6487_v36 }
 0x3fd   :  { %5444 = vmatprep.mubr.msk.f32.mxu1 %vm6140_vm3, %v6139_v22  ;;  %5452 = vmatprep.subr.mxu1 %v6139_v22 }
 0x3fe   :  { %5447 = vmatprep.subr.mxu0 %v325_v10 }
 0x45e   :  { %v1019_v19 = vpop.permute.xlu0 %1018 }
 0x4ca   :  { %v667_v53 = vpop.f32.mrb[6].mxu1 }
 0x4cb   :  { %v747_v54 = vmul.f32 0.35355338, %v667_v53  ;;  %v5431_v55 = vpop.f32.mrb[7].mxu1 }
 0x4cd   :  { %v759_v57 = vadd.f32 %v6503_v52, %v747_v54 }
 0x4ce   :  { %v743_v58 = vpop.f32.mrb[8].mxu1 }
 0x4cf   :  { %v748_v59 = vmul.f32 0.35355338, %v743_v58  ;;  %v5436_v60 = vpop.f32.mrb[9].mxu1  ;;  %v761_v27 = vsel %vm594_vm4, %v759_v57, -inf }
 0x4d0   :  { %762 = vmax.xlane.f32.xlu1 %v761_v27 }
 0x4d1   :  { %v760_v61 = vadd.f32 %v6505_v56, %v748_v59 }
 0x4d3   :  { %v764_v62 = vsel %vm594_vm4, %v760_v61, -inf }
 0x4d4   :  { %765 = vmax.xlane.f32.xlu1 %v764_v62 }
 0x55d   :  { %v763_v63 = vpop.xlane.xlu1 %762 }
 0x55e   :  { %v767_v0 = vsub.f32 %v759_v57, %v763_v63 }
 0x560   :  { %v769_v1 = vmul.f32 1.442695, %v767_v0 }
 0x561   :  { %v766_v2 = vpop.xlane.xlu1 %765 }
 0x562   :  { %5919 = vpow2.f32 %v769_v1  ;;  %v768_v3 = vsub.f32 %v760_v61, %v766_v2 }
 0x564   :  { %v771_v4 = vmul.f32 1.442695, %v768_v3 }
 0x566   :  { %5921 = vpow2.f32 %v771_v4 }
 0x56c   :  { %v5920_v5 = vpop.eup %5919 }
 0x56d   :  { %v773_v6 = vsel %vm594_vm4, %v5920_v5, 0.0 }
 0x56e   :  { %774 = vadd.xlane.f32.xlu1 %v773_v6 }
 0x570   :  { %v5922_v7 = vpop.eup %5921 }
 0x571   :  { %v776_v8 = vsel %vm594_vm4, %v5922_v7, 0.0 }
 0x572   :  { %777 = vadd.xlane.f32.xlu1 %v776_v8 }
 0x583   :  { %1020 = vrot.lane.b32.xlu1 %v6469_v31, %s6141_s0 }
 0x587   :  { %1098 = vrot.lane.b32.xlu1 %v6474_v32, %s6141_s0 }
 0x58b   :  { %1096 = vrot.lane.b32.xlu1 %v6485_v35, %s6141_s0 }
 0x5fb   :  { %v775_v11 = vpop.xlane.xlu1 %774 }
 0x5fc   :  { %5923 = vrcp.f32 %v775_v11 }
 0x5ff   :  { %v778_v12 = vpop.xlane.xlu1 %777 }
 0x600   :  { %5925 = vrcp.f32 %v778_v12 }
 0x603   :  { %v1021_v18 = vpop.permute.xlu1 %1020 }
 0x606   :  { %v5924_v13 = vpop.eup %5923 }
 0x607   :  { %v781_v15 = vmul.f32 %v5924_v13, %v5920_v5  ;;  %v1099_v23 = vpop.permute.xlu1 %1098 }
 0x609   :  { %5440 = vmatmul.mubr.msk.f32.vlgmr.msra.gmra.mrb[2].mxu0 %vm594_vm4, %v781_v15  ;;  %v326_v15 = vld [vmem:[%s7077_s13 + $0x8] sm:$0xff] }
 0x60a   :  { %v5926_v16 = vpop.eup %5925  ;;  %5448 = vmatpush3.msra.mxu0 %v325_v10 }
 0x60b   :  { %v782_v17 = vmul.f32 %v5926_v16, %v5922_v7  ;;  %5457 = vmatprep.subr.mxu0 %v6139_v22  ;;  %v1097_v28 = vpop.permute.xlu1 %1096 }
 0x60d   :  { %5445 = vmatmul.mubr.msk.f32.vlgmr.msra.gmra.mrb[10].mxu1 %vm594_vm4, %v782_v17 }
 0x60e   :  { %5453 = vmatpush3.xpose.msk.msra.mxu1 %vm594_vm4, %v1021_v18  ;;  %5454 = vmatprep.mubr.msk.f32.mxu1 %vm6140_vm3, %v6139_v22 }
 0x60f   :  { %5462 = vmatprep.subr.mxu1 %v6139_v22 }
 0x611   :  { %5455 = vmatmul.mubr.msk.f32.vlgmr.msra.gmra.mrb[12].mxu1 %vm594_vm4, %v1019_v19 }
 0x612   :  { %5464 = vmatprep.mubr.msk.f32.mxu1 %vm6140_vm3, %v6139_v22 }
 0x6dc   :  { %v852_v20 = vpop.f32.mrb[2].mxu0 }
 0x6dd   :  { %v5441_v21 = vpop.f32.mrb[3].mxu0  ;;  %5449 = vmatprep.mubr.msk.f32.mxu0 %vm594_vm4, %v852_v20 }
 0x6e0   :  { %v925_v24 = vpop.f32.mrb[10].mxu1 }
 0x6e1   :  { %v5446_v25 = vpop.f32.mrb[11].mxu1  ;;  %5450 = vmatmul.mubr.msk.f32.vlgmr.msra.gmra.mrb[4].mxu0 %vm594_vm4, %v925_v24 }
 0x6e2   :  { %5458 = vmatpush3.xpose.msk.msra.mxu0 %vm594_vm4, %v1099_v23  ;;  %5459 = vmatprep.mubr.msk.f32.mxu0 %vm6140_vm3, %v6139_v22 }
 0x6e3   :  { %5467 = vmatprep.subr.mxu0 %v6139_v22 }
 0x6e4   :  { %v1092_v29 = vpop.f32.mrb[12].mxu1 }
 0x6e5   :  { %v1174_v30 = vmul.f32 0.35355338, %v1092_v29  ;;  %v5456_v33 = vpop.f32.mrb[13].mxu1  ;;  %5460 = vmatmul.mubr.msk.f32.vlgmr.msra.gmra.mrb[6].mxu0 %vm594_vm4, %v1097_v28 }
 0x6e6   :  { %5469 = vmatprep.mubr.msk.f32.mxu0 %vm6140_vm3, %v6139_v22 }
 0x6e7   :  { %v1176_v34 = vadd.f32 %v1174_v30, %v6503_v52 }
 0x6e9   :  { %v1178_v37 = vsel %vm594_vm4, %v1176_v34, -inf }
 0x6ea   :  { %1179 = vmax.xlane.f32.xlu1 %v1178_v37  ;;  %v327_v37 = vld [vmem:[%s7077_s13 + $0x10] sm:$0xff] }
 0x6fb   :  { %1201 = vrot.lane.b32.xlu1 %v6490_v38, %s6141_s0 }
 0x6ff   :  { %1437 = vrot.lane.b32.xlu1 %v6462_v26, %s6143_s8 }
 0x703   :  { %1517 = vrot.lane.b32.xlu1 %v6474_v32, %s6143_s8 }
 0x777   :  { %v1180_v39 = vpop.xlane.xlu1 %1179 }
 0x778   :  { %v1184_v40 = vsub.f32 %v1176_v34, %v1180_v39 }
 0x77a   :  { %v1186_v41 = vmul.f32 1.442695, %v1184_v40 }
 0x77b   :  { %v1202_v42 = vpop.permute.xlu1 %1201 }
 0x77c   :  { %5927 = vpow2.f32 %v1186_v41  ;;  %5463 = vmatpush3.msra.mxu1 %v1202_v42 }
 0x77d   :  { %5477 = vmatprep.subr.mxu1 %v6139_v22 }
 0x77f   :  { %v1438_v53 = vpop.permute.xlu1 %1437 }
 0x783   :  { %v1518_v57 = vpop.permute.xlu1 %1517 }
 0x786   :  { %v5928_v43 = vpop.eup %5927 }
 0x787   :  { %v1190_v44 = vsel %vm594_vm4, %v5928_v43, 0.0 }
 0x788   :  { %1191 = vadd.xlane.f32.xlu0 %v1190_v44 }
 0x79e   :  { %1439 = vrot.lane.b32.xlu0 %v6469_v31, %s6143_s8 }
 0x7a2   :  { %1515 = vrot.lane.b32.xlu0 %v6485_v35, %s6143_s8 }
 0x7b8   :  { %v1170_v45 = vpop.f32.mrb[6].mxu0 }
 0x7b9   :  { %v1175_v46 = vmul.f32 0.35355338, %v1170_v45  ;;  %v5461_v47 = vpop.f32.mrb[7].mxu0 }
 0x7bb   :  { %v1177_v48 = vadd.f32 %v1175_v46, %v6505_v56 }
 0x7bd   :  { %v1181_v49 = vsel %vm594_vm4, %v1177_v48, -inf }
 0x7be   :  { %1182 = vmax.xlane.f32.xlu1 %v1181_v49 }
 0x815   :  { %v1192_v50 = vpop.xlane.xlu0 %1191 }
 0x816   :  { %5929 = vrcp.f32 %v1192_v50 }
 0x819   :  { %v1440_v55 = vpop.permute.xlu0 %1439 }
 0x81d   :  { %v1516_v58 = vpop.permute.xlu0 %1515 }
 0x820   :  { %v5930_v51 = vpop.eup %5929 }
 0x821   :  { %v1198_v54 = vmul.f32 %v5930_v51, %v5928_v43 }
 0x823   :  { %5465 = vmatmul.mubr.msk.f32.vlgmr.msra.gmra.mrb[14].mxu1 %vm594_vm4, %v1198_v54 }
 0x824   :  { %5478 = vmatpush3.xpose.msk.msra.mxu1 %vm594_vm4, %v1440_v55  ;;  %5479 = vmatprep.mubr.msk.f32.mxu1 %vm6140_vm3, %v6139_v22 }
 0x825   :  { %5482 = vmatprep.subr.mxu1 %v6139_v22 }
 0x827   :  { %5480 = vmatmul.mubr.msk.f32.vlgmr.msra.gmra.mrb[16].mxu1 %vm594_vm4, %v1438_v53 }
 0x828   :  { %5483 = vmatpush3.xpose.msk.msra.mxu1 %vm594_vm4, %v1518_v57  ;;  %5484 = vmatprep.mubr.msk.f32.mxu1 %vm6140_vm3, %v6139_v22 }
 0x829   :  { %5492 = vmatprep.subr.mxu1 %v6139_v22 }
 0x82b   :  { %5485 = vmatmul.mubr.msk.f32.vlgmr.msra.gmra.mrb[18].mxu1 %vm594_vm4, %v1516_v58 }
 0x82c   :  { %5494 = vmatprep.mubr.msk.f32.mxu1 %vm6140_vm3, %v6139_v22 }
 0x84b   :  { %v1183_v59 = vpop.xlane.xlu1 %1182 }
 0x84c   :  { %v1185_v60 = vsub.f32 %v1177_v48, %v1183_v59 }
 0x84e   :  { %v1188_v27 = vmul.f32 1.442695, %v1185_v60 }
 0x850   :  { %5931 = vpow2.f32 %v1188_v27 }
 0x85a   :  { %v5932_v61 = vpop.eup %5931 }
 0x85b   :  { %v1193_v62 = vsel %vm594_vm4, %v5932_v61, 0.0 }
 0x85c   :  { %1194 = vadd.xlane.f32.xlu0 %v1193_v62 }
 0x872   :  { %1278 = vrot.lane.b32.xlu0 %v6487_v36, %s6141_s0 }
 0x876   :  { %1695 = vrot.lane.b32.xlu0 %v6487_v36, %s6143_s8 }
 0x87a   :  { %1856 = vrot.lane.b32.xlu0 %v6469_v31, %s6144_s10 }
 0x87e   :  { %1934 = vrot.lane.b32.xlu0 %v6474_v32, %s6144_s10 }
 0x882   :  { %1854 = vrot.lane.b32.xlu0 %v6462_v26, %s6144_s10 }
 0x8e9   :  { %v1195_v63 = vpop.xlane.xlu0 %1194 }
 0x8ea   :  { %5933 = vrcp.f32 %v1195_v63 }
 0x8ed   :  { %v1279_v0 = vpop.permute.xlu0 %1278 }
 0x8ee   :  { %5468 = vmatpush3.msra.mxu0 %v1279_v0 }
 0x8ef   :  { %5472 = vmatprep.subr.mxu0 %v326_v15 }
 0x8f1   :  { %v1696_v1 = vpop.permute.xlu0 %1695 }
 0x8f2   :  { %5493 = vmatpush3.msra.mxu1 %v1696_v1 }
 0x8f3   :  { %5502 = vmatprep.subr.mxu1 %v6139_v22 }
 0x8f4   :  { %v5934_v2 = vpop.eup %5933 }
 0x8f5   :  { %v1199_v3 = vmul.f32 %v5934_v2, %v5932_v61  ;;  %v1857_v40 = vpop.permute.xlu0 %1856 }
 0x8f6   :  { %v1273_v4 = vpop.f32.mrb[14].mxu1 }
 0x8f7   :  { %v5466_v5 = vpop.f32.mrb[15].mxu1  ;;  %5470 = vmatmul.mubr.msk.f32.vlgmr.msra.gmra.mrb[8].mxu0 %vm594_vm4, %v1199_v3 }
 0x8f8   :  { %5474 = vmatprep.mubr.msk.f32.mxu0 %vm594_vm4, %v1273_v4  ;;  %5473 = vmatpush3.msra.mxu0 %v326_v15 }
 0x8f9   :  { %5487 = vmatprep.subr.mxu0 %v6139_v22  ;;  %v1935_v43 = vpop.permute.xlu0 %1934 }
 0x8fa   :  { %v1511_v31 = vpop.f32.mrb[16].mxu1 }
 0x8fb   :  { %v1593_v32 = vmul.f32 0.35355338, %v1511_v31  ;;  %v5481_v6 = vpop.f32.mrb[17].mxu1 }
 0x8fd   :  { %v1595_v26 = vadd.f32 %v1593_v32, %v6503_v52  ;;  %v1855_v45 = vpop.permute.xlu0 %1854 }
 0x8fe   :  { %v1589_v7 = vpop.f32.mrb[18].mxu1 }
 0x8ff   :  { %v1594_v8 = vmul.f32 0.35355338, %v1589_v7  ;;  %v5486_v10 = vpop.f32.mrb[19].mxu1  ;;  %v1597_v11 = vsel %vm594_vm4, %v1595_v26, -inf }
 0x900   :  { %1598 = vmax.xlane.f32.xlu1 %v1597_v11  ;;  %v328_v10 = vld [vmem:[%s7077_s13 + $0x18] sm:$0xff] }
 0x901   :  { %v1596_v12 = vadd.f32 %v1594_v8, %v6505_v56 }
 0x903   :  { %v1600_v13 = vsel %vm594_vm4, %v1596_v12, -inf }
 0x904   :  { %1601 = vmax.xlane.f32.xlu1 %v1600_v13 }
 0x98d   :  { %v1599_v16 = vpop.xlane.xlu1 %1598 }
 0x98e   :  { %v1603_v17 = vsub.f32 %v1595_v26, %v1599_v16 }
 0x990   :  { %v1605_v18 = vmul.f32 1.442695, %v1603_v17 }
 0x991   :  { %v1602_v19 = vpop.xlane.xlu1 %1601 }
 0x992   :  { %5935 = vpow2.f32 %v1605_v18  ;;  %v1604_v20 = vsub.f32 %v1596_v12, %v1602_v19  ;;  %v5046_v18 = vld [vmem:[%s7078_s14] ss:$0 sm:$0xff] }
 0x994   :  { %v1607_v21 = vmul.f32 1.442695, %v1604_v20 }
 0x996   :  { %5937 = vpow2.f32 %v1607_v21 }
 0x99c   :  { %v5936_v23 = vpop.eup %5935 }
 0x99d   :  { %v1609_v24 = vsel %vm594_vm4, %v5936_v23, 0.0 }
 0x99e   :  { %1610 = vadd.xlane.f32.xlu1 %v1609_v24 }
 0x9a0   :  { %v5938_v25 = vpop.eup %5937 }
 0x9a1   :  { %v1612_v28 = vsel %vm594_vm4, %v5938_v25, 0.0 }
 0x9a2   :  { %1613 = vadd.xlane.f32.xlu1 %v1612_v28 }
 0x9b3   :  { %1619 = vrot.lane.b32.xlu1 %v6490_v38, %s6143_s8 }
 0x9b7   :  { %1932 = vrot.lane.b32.xlu1 %v6485_v35, %s6144_s10 }
 0x9ca   :  { %v1350_v29 = vpop.f32.mrb[8].mxu0 }
 0x9cb   :  { %v5471_v30 = vpop.f32.mrb[9].mxu0  ;;  %5475 = vmatmul.mubr.msk.f32.vlgmr.msra.gmra.mrb[4].mxu0 %vm594_vm4, %v1350_v29 }
 0x9cc   :  { %5489 = vmatprep.mubr.msk.f32.mxu0 %vm6140_vm3, %v6139_v22 }
 0xa2b   :  { %v1611_v33 = vpop.xlane.xlu1 %1610 }
 0xa2c   :  { %5939 = vrcp.f32 %v1611_v33 }
 0xa2f   :  { %v1614_v34 = vpop.xlane.xlu1 %1613 }
 0xa30   :  { %5941 = vrcp.f32 %v1614_v34 }
 0xa33   :  { %v1620_v39 = vpop.permute.xlu1 %1619 }
 0xa34   :  { %5488 = vmatpush3.msra.mxu0 %v1620_v39 }
 0xa35   :  { %5497 = vmatprep.subr.mxu0 %v327_v37 }
 0xa36   :  { %v5940_v35 = vpop.eup %5939 }
 0xa37   :  { %v1617_v41 = vmul.f32 %v5940_v35, %v5936_v23  ;;  %v1933_v50 = vpop.permute.xlu1 %1932 }
 0xa39   :  { %5490 = vmatmul.mubr.msk.f32.vlgmr.msra.gmra.mrb[10].mxu0 %vm594_vm4, %v1617_v41 }
 0xa3a   :  { %v5942_v42 = vpop.eup %5941  ;;  %5498 = vmatpush3.msra.mxu0 %v327_v37 }
 0xa3b   :  { %v1618_v44 = vmul.f32 %v5942_v42, %v5938_v25  ;;  %5507 = vmatprep.subr.mxu0 %v6139_v22 }
 0xa3d   :  { %5495 = vmatmul.mubr.msk.f32.vlgmr.msra.gmra.mrb[20].mxu1 %vm594_vm4, %v1618_v44 }
 0xa3e   :  { %5503 = vmatpush3.xpose.msk.msra.mxu1 %vm594_vm4, %v1857_v40  ;;  %5504 = vmatprep.mubr.msk.f32.mxu1 %vm6140_vm3, %v6139_v22 }
 0xa3f   :  { %5512 = vmatprep.subr.mxu1 %v6139_v22 }
 0xa41   :  { %5505 = vmatmul.mubr.msk.f32.vlgmr.msra.gmra.mrb[22].mxu1 %vm594_vm4, %v1855_v45  ;;  %v2319_v45 = vld [vmem:[%s7081_s17 + $0x10] sm:$0xff] }
 0xa42   :  { %5514 = vmatprep.mubr.msk.f32.mxu1 %vm6140_vm3, %v6139_v22 }
 0xb0c   :  { %v1691_v46 = vpop.f32.mrb[10].mxu0 }
 0xb0d   :  { %v5491_v47 = vpop.f32.mrb[11].mxu0  ;;  %5499 = vmatprep.mubr.msk.f32.mxu0 %vm594_vm4, %v1691_v46  ;;  %v2320_v46 = vld [vmem:[%s7081_s17 + $0x18] sm:$0xff] }
 0xb0e   :  { %v5802_v47 = vpack.c.bf16 %v2320_v46, %v2319_v45 }
 0xb10   :  { %v1767_v48 = vpop.f32.mrb[20].mxu1 }
 0xb11   :  { %v5496_v49 = vpop.f32.mrb[21].mxu1  ;;  %5500 = vmatmul.mubr.msk.f32.vlgmr.msra.gmra.mrb[4].mxu0 %vm594_vm4, %v1767_v48 }
 0xb12   :  { %5508 = vmatpush3.xpose.msk.msra.mxu0 %vm594_vm4, %v1935_v43  ;;  %5509 = vmatprep.mubr.msk.f32.mxu0 %vm6140_vm3, %v6139_v22  ;;  %v2318_v43 = vld [vmem:[%s7081_s17 + $0x8] sm:$0xff] }
 0xb13   :  { %5517 = vmatprep.subr.mxu0 %v6139_v22 }
 0xb14   :  { %v1928_v51 = vpop.f32.mrb[22].mxu1 }
 0xb15   :  { %v2010_v53 = vmul.f32 0.35355338, %v1928_v51  ;;  %v5506_v54 = vpop.f32.mrb[23].mxu1  ;;  %5510 = vmatmul.mubr.msk.f32.vlgmr.msra.gmra.mrb[12].mxu0 %vm594_vm4, %v1933_v50 }
 0xb16   :  { %5519 = vmatprep.mubr.msk.f32.mxu0 %vm6140_vm3, %v6139_v22 }
 0xb17   :  { %v2012_v55 = vadd.f32 %v2010_v53, %v6503_v52 }
 0xb19   :  { %v2014_v57 = vsel %vm594_vm4, %v2012_v55, -inf }
 0xb1a   :  { %2015 = vmax.xlane.f32.xlu0 %v2014_v57  ;;  %v5071_v57 = vld [vmem:[%s7079_s15] ss:$0 sm:$0xff] }
 0xba7   :  { %v2016_v58 = vpop.xlane.xlu0 %2015 }
 0xba8   :  { %v2020_v59 = vsub.f32 %v2012_v55, %v2016_v58 }
 0xbaa   :  { %v2022_v60 = vmul.f32 1.442695, %v2020_v59 }
 0xbac   :  { %5943 = vpow2.f32 %v2022_v60 }
 0xbb6   :  { %v5944_v27 = vpop.eup %5943 }
 0xbb7   :  { %v2026_v61 = vsel %vm594_vm4, %v5944_v27, 0.0 }
 0xbb8   :  { %2027 = vadd.xlane.f32.xlu0 %v2026_v61 }
 0xbe8   :  { %v2006_v62 = vpop.f32.mrb[12].mxu0 }
 0xbe9   :  { %v2011_v63 = vmul.f32 0.35355338, %v2006_v62  ;;  %v5511_v0 = vpop.f32.mrb[13].mxu0 }
 0xbeb   :  { %v2013_v1 = vadd.f32 %v2011_v63, %v6505_v56 }
 0xbed   :  { %v2017_v2 = vsel %vm594_vm4, %v2013_v1, -inf }
 0xbee   :  { %2018 = vmax.xlane.f32.xlu1 %v2017_v2  ;;  %v2428_v2 = vld [vmem:[%s7083_s19 + $0x8] sm:$0xff] }
 0xbff   :  { %2036 = vrot.lane.b32.xlu1 %v6490_v38, %s6144_s10 }
 0xc45   :  { %v2028_v3 = vpop.xlane.xlu0 %2027 }
 0xc46   :  { %5945 = vrcp.f32 %v2028_v3 }
 0xc50   :  { %v5946_v5 = vpop.eup %5945 }
 0xc51   :  { %v2034_v6 = vmul.f32 %v5946_v5, %v5944_v27  ;;  %v5072_v27 = vld [vmem:[%s7080_s16] ss:$0 sm:$0xff]  ;;  %v2430_v5 = vld [vmem:[%s7083_s19 + $0x18] sm:$0xff] }
 0xc7b   :  { %v2019_v4 = vpop.xlane.xlu1 %2018 }
 0xc7c   :  { %v2021_v31 = vsub.f32 %v2013_v1, %v2019_v4  ;;  %v2427_v1 = vld [vmem:[%s7083_s19] sm:$0xff]  ;;  %v2429_v4 = vld [vmem:[%s7083_s19 + $0x10] sm:$0xff] }
 0xc7d   :  { %v5806_v3 = vpack.c.bf16 %v2428_v2, %v2427_v1  ;;  %v5088_v1 = vld [vmem:[%s7125_s28 + $0x38] sm:$0xff]  ;;  %v5103_v2 = vld [vmem:[%s7127_s11 + $0x30] sm:$0xff] }
 0xc7e   :  { %v2024_v32 = vmul.f32 1.442695, %v2021_v31  ;;  %v5810_v31 = vpack.c.bf16 %v2430_v5, %v2429_v4  ;;  %v5104_v4 = vld [vmem:[%s7127_s11 + $0x38] sm:$0xff] }
 0xc7f   :  { %v2037_v26 = vpop.permute.xlu1 %2036  ;;  %v5842_v5 = vpack.c.bf16 %v5104_v4, %v5103_v2  ;;  %v5081_v2 = vld [vmem:[%s7077_s13 + $0x20] sm:$0xff] }
 0xc80   :  { %5947 = vpow2.f32 %v2024_v32  ;;  %5513 = vmatpush3.msra.mxu1 %v2037_v26  ;;  %v2431_v32 = vld [vmem:[%s7083_s19 + $0x20] sm:$0xff] }
 0xc81   :  { %5515 = vmatmul.mubr.msk.f32.vlgmr.msra.gmra.mrb[24].mxu1 %vm594_vm4, %v2034_v6  ;;  %v2432_v6 = vld [vmem:[%s7083_s19 + $0x28] sm:$0xff] }
 0xc82   :  { %v5814_v26 = vpack.c.bf16 %v2432_v6, %v2431_v32  ;;  %v5094_v32 = vld [vmem:[%s7126_s29 + $0x28] sm:$0xff] }
 0xc8a   :  { %v5948_v7 = vpop.eup %5947 }
 0xc8b   :  { %v2029_v8 = vsel %vm594_vm4, %v5948_v7, 0.0 }
 0xc8c   :  { %2030 = vadd.xlane.f32.xlu0 %v2029_v8  ;;  %v2434_v8 = vld [vmem:[%s7083_s19 + $0x38] sm:$0xff] }
 0xca2   :  { %2112 = vrot.lane.b32.xlu0 %v6487_v36, %s6144_s10 }
 0xd19   :  { %v2031_v38 = vpop.xlane.xlu0 %2030 }
 0xd1a   :  { %5949 = vrcp.f32 %v2031_v38 }
 0xd1d   :  { %v2113_v11 = vpop.permute.xlu0 %2112 }
 0xd1e   :  { %5518 = vmatpush3.msra.mxu0 %v2113_v11 }
 0xd1f   :  { %5522 = vmatprep.subr.mxu0 %v328_v10 }
 0xd24   :  { %v5950_v12 = vpop.eup %5949 }
 0xd25   :  { %v2035_v13 = vmul.f32 %v5950_v12, %v5948_v7  ;;  %v2433_v7 = vld [vmem:[%s7083_s19 + $0x30] sm:$0xff] }
 0xd26   :  { %v5818_v38 = vpack.c.bf16 %v2434_v8, %v2433_v7 }
 0xd27   :  { %5520 = vmatmul.mubr.msk.f32.vlgmr.msra.gmra.mrb[14].mxu0 %vm594_vm4, %v2035_v13 }
 0xd28   :  { %5523 = vmatpush3.msra.mxu0 %v328_v10  ;;  %v5073_v10 = vld [vmem:[%s7082_s18] ss:$0 sm:$0xff] }
 0xd29   :  { %5807 = vmatprep.subr.bf16.mxu0 %v5806_v3 }
 0xd54   :  { %v2108_v15 = vpop.f32.mrb[24].mxu1 }
 0xd55   :  { %v5516_v16 = vpop.f32.mrb[25].mxu1  ;;  %5524 = vmatprep.mubr.msk.f32.mxu0 %vm594_vm4, %v2108_v15 }
 0xdfa   :  { %v2184_v17 = vpop.f32.mrb[14].mxu0 }
 0xdfb   :  { %v5521_v36 = vpop.f32.mrb[15].mxu0  ;;  %5525 = vmatmul.mubr.msk.f32.vlgmr.msra.gmra.mrb[4].mxu0 %vm594_vm4, %v2184_v17 }
 0xdfc   :  { %5809 = vmatpush3.bf16.msra.mxu0 %v5806_v3 }
 0xdfd   :  { %5811 = vmatprep.subr.bf16.mxu0 %v5810_v31 }
 0xe00   :  { %5813 = vmatpush3.bf16.msra.mxu0 %v5810_v31  ;;  %v5093_v31 = vld [vmem:[%s7126_s29 + $0x20] sm:$0xff] }
 0xe01   :  { %5815 = vmatprep.subr.bf16.mxu0 %v5814_v26  ;;  %v5830_v6 = vpack.c.bf16 %v5094_v32, %v5093_v31 }
 0xe04   :  { %5817 = vmatpush3.bf16.msra.mxu0 %v5814_v26 }
 0xe05   :  { %5819 = vmatprep.subr.bf16.mxu0 %v5818_v38 }
 0xe08   :  { %5821 = vmatpush3.bf16.msra.mxu0 %v5818_v38 }
 0xece   :  { %v5526_v19 = vpop.f32.mrb[4].mxu0 }
 0xecf   :  { %v5882_v20 = vadd.f32 %v5526_v19, %v5046_v18  ;;  %v2260_v21 = vpop.f32.mrb[5].mxu0 }
 0xed0   :  { %v5883_v23 = vadd.f32 %v5046_v18, %v2260_v21 }
 0xed1   :  { %v2272_v24 = vadd.f32 %v5882_v20, %v6429_v14 }
 0xed2   :  { %v2271_v25 = vadd.f32 %v5883_v23, %v6419_v9  ;;  %v2317_v9 = vld [vmem:[%s7081_s17] sm:$0xff] }
 0xed3   :  { %v2278_v28 = vsel %vm255_vm2, %v2272_v24, 0.0  ;;  %v5798_v44 = vpack.c.bf16 %v2318_v43, %v2317_v9 }
 0xed4   :  { %2279 = vadd.xlane.f32.xlu0 %v2278_v28  ;;  %v2275_v29 = vsel %vm255_vm2, %v2271_v25, 0.0 }
 0xed5   :  { %2276 = vadd.xlane.f32.xlu1 %v2275_v29  ;;  %5799 = vmatprep.subr.bf16.mxu1 %v5798_v44 }
 0xed6   :  { %5801 = vmatpush3.bf16.msra.mxu1 %v5798_v44 }
 0xed7   :  { %5803 = vmatprep.subr.bf16.mxu1 %v5802_v47 }
 0xeda   :  { %5805 = vmatpush3.bf16.msra.mxu1 %v5802_v47 }
 0xf61   :  { %v2280_v30 = vpop.xlane.xlu0 %2279 }
 0xf62   :  { %v2282_v33 = vmul.f32 0.03125, %v2280_v30  ;;  %v2277_v34 = vpop.xlane.xlu1 %2276 }
 0xf63   :  { %v2281_v37 = vmul.f32 0.03125, %v2277_v34 }
 0xf64   :  { %v2284_v39 = vsub.f32 %v2272_v24, %v2282_v33 }
 0xf65   :  { %v2283_v40 = vsub.f32 %v2271_v25, %v2281_v37 }
 0xf66   :  { %v2286_v35 = vmul.f32 %v2284_v39, %v2284_v39 }
 0xf67   :  { %v2285_v41 = vmul.f32 %v2283_v40, %v2283_v40 }
 0xf68   :  { %v2290_v42 = vsel %vm255_vm2, %v2286_v35, 0.0  ;;  %v5076_v35 = vld [vmem:[%s7084_s20] ss:$0 sm:$0xff] }
 0xf69   :  { %2291 = vadd.xlane.f32.xlu0 %v2290_v42  ;;  %v2287_v14 = vsel %vm255_vm2, %v2285_v41, 0.0 }
 0xf6a   :  { %2288 = vadd.xlane.f32.xlu1 %v2287_v14 }
 0xff6   :  { %v2292_v48 = vpop.xlane.xlu0 %2291 }
 0xff7   :  { %v2294_v49 = vmul.f32 0.03125, %v2292_v48  ;;  %v2289_v50 = vpop.xlane.xlu1 %2288 }
 0xff8   :  { %v2293_v51 = vmul.f32 0.03125, %v2289_v50 }
 0xff9   :  { %v2296_v53 = vadd.f32 1e-12, %v2294_v49 }
 0xffa   :  { %v2295_v54 = vadd.f32 1e-12, %v2293_v51 }
 0xffb   :  { %5951 = vrsqrt.f32 %v2296_v53 }
 0xffc   :  { %5953 = vrsqrt.f32 %v2295_v54 }
0x1005   :  { %v5952_v55 = vpop.eup %5951 }
0x1006   :  { %v5954_v58 = vpop.eup %5953  ;;  %v2300_v59 = vmul.f32 %v5952_v55, %v2284_v39 }
0x1007   :  { %v2299_v60 = vmul.f32 %v5954_v58, %v2283_v40 }
0x1008   :  { %v2308_v61 = vmul.f32 %v5071_v57, %v2300_v59  ;;  %v5085_v59 = vld [vmem:[%s7125_s28 + $0x20] sm:$0xff] }
0x1009   :  { %v2307_v62 = vmul.f32 %v5071_v57, %v2299_v60  ;;  %v5086_v60 = vld [vmem:[%s7125_s28 + $0x28] sm:$0xff] }
0x100a   :  { %v2316_v0 = vadd.f32 %v5072_v27, %v2308_v61  ;;  %v5101_v61 = vld [vmem:[%s7127_s11 + $0x20] sm:$0xff] }
0x100b   :  { %v2315_v63 = vadd.f32 %v5072_v27, %v2307_v62  ;;  %v5822_v27 = vpack.c.bf16 %v5086_v60, %v5085_v59  ;;  %v5102_v62 = vld [vmem:[%s7127_s11 + $0x28] sm:$0xff] }
0x100d   :  { %5535 = vmatprep.mubr.msk.f32.mxu1 %vm255_vm2, %v2315_v63  ;;  %5823 = vmatprep.subr.bf16.mxu1 %v5822_v27 }
0x100e   :  { %5536 = vmatmul.mubr.msk.f32.vlgmr.msra.gmra.mrb[26].mxu1 %vm255_vm2, %v2316_v0 }
0x100f   :  { %5825 = vmatpush3.bf16.msra.mxu1 %v5822_v27 }
0x10e1   :  { %v5537_v11 = vpop.f32.mrb[26].mxu1 }
0x10e2   :  { %v2406_v12 = vadd.f32 %v5537_v11, %v5073_v10  ;;  %v2400_v13 = vpop.f32.mrb[27].mxu1 }
0x10e3   :  { %v2401_v15 = vadd.f32 %v5073_v10, %v2400_v13  ;;  %v5079_v13 = vld [vmem:[%s7085_s21] ss:$0 sm:$0xff] }
0x10e4   :  { %v2412_v16 = vmul.f32 0.044715, %v2406_v12  ;;  %v2410_v37 = vmul.f32 0.5, %v2406_v12 }
0x10e5   :  { %v2411_v17 = vmul.f32 0.044715, %v2401_v15  ;;  %v2409_v33 = vmul.f32 0.5, %v2401_v15 }
0x10e6   :  { %v2414_v36 = vmul.f32 %v2412_v16, %v2406_v12 }
0x10e7   :  { %v2413_v18 = vmul.f32 %v2411_v17, %v2401_v15 }
0x10e8   :  { %v2416_v19 = vmul.f32 %v2414_v36, %v2406_v12  ;;  %v5080_v36 = vld [vmem:[%s7086_s22] ss:$0 sm:$0xff] }
0x10e9   :  { %v2415_v20 = vmul.f32 %v2413_v18, %v2401_v15 }
0x10ea   :  { %v2418_v21 = vadd.f32 %v2416_v19, %v2406_v12 }
0x10eb   :  { %v2417_v23 = vadd.f32 %v2415_v20, %v2401_v15  ;;  %v5095_v20 = vld [vmem:[%s7126_s29 + $0x30] sm:$0xff] }
0x10ec   :  { %v2420_v24 = vmul.f32 0.7978846, %v2418_v21  ;;  %v5096_v21 = vld [vmem:[%s7126_s29 + $0x38] sm:$0xff] }
0x10ed   :  { %v2419_v25 = vmul.f32 0.7978846, %v2417_v23 }
0x10ee   :  { %5955 = vtanh.f32 %v2420_v24 }
0x10ef   :  { %5957 = vtanh.f32 %v2419_v25  ;;  %v5834_v25 = vpack.c.bf16 %v5096_v21, %v5095_v20 }
0x10f8   :  { %v5956_v28 = vpop.eup %5955 }
0x10f9   :  { %v5958_v29 = vpop.eup %5957  ;;  %v2424_v30 = vadd.f32 1.0, %v5956_v28  ;;  %v5106_v28 = vld [vmem:[%s7076_s12 + $0x1] ss:$0 sm:$0xff] }
0x10fa   :  { %v2423_v34 = vadd.f32 1.0, %v5958_v29 }
0x10fb   :  { %v2426_v40 = vmul.f32 %v2424_v30, %v2410_v37 }
0x10fc   :  { %v2425_v39 = vmul.f32 %v2423_v34, %v2409_v33 }
0x10fe   :  { %5554 = vmatprep.mubr.msk.f32.mxu0 %vm2442_vm5, %v2425_v39  ;;  %v5098_v39 = vld [vmem:[%s7129_s9 + $0x1] ss:$0 sm:$0xff] }
0x10ff   :  { %5555 = vmatmul.mubr.msk.f32.vlgmr.msra.gmra.mrb[16].mxu0 %vm2442_vm5, %v2426_v40 }
0x11d2   :  { %v5556_v41 = vpop.f32.mrb[16].mxu0 }
0x11d3   :  { %v2521_v42 = vadd.f32 %v5556_v41, %v5076_v35  ;;  %v2515_v14 = vpop.f32.mrb[17].mxu0  ;;  %v5090_v41 = vld [vmem:[%s7128_s7 + $0x1] ss:$0 sm:$0xff] }
0x11d4   :  { %v2516_v9 = vadd.f32 %v5076_v35, %v2515_v14 }
0x11d5   :  { %v2525_v43 = vadd.f32 %v2521_v42, %v2316_v0  ;;  %v5087_v0 = vld [vmem:[%s7125_s28 + $0x30] sm:$0xff] }
0x11d6   :  { %v2524_v44 = vadd.f32 %v2516_v9, %v2315_v63  ;;  %v5838_v63 = vpack.c.bf16 %v5102_v62, %v5101_v61  ;;  %v5826_v3 = vpack.c.bf16 %v5088_v1, %v5087_v0 }
0x11d7   :  { %v2531_v45 = vsel %vm255_vm2, %v2525_v43, 0.0 }
0x11d8   :  { %2532 = vadd.xlane.f32.xlu0 %v2531_v45  ;;  %v2528_v46 = vsel %vm255_vm2, %v2524_v44, 0.0  ;;  %5839 = vmatprep.subr.bf16.mxu0 %v5838_v63 }
0x11d9   :  { %2529 = vadd.xlane.f32.xlu1 %v2528_v46  ;;  %5841 = vmatpush3.bf16.msra.mxu0 %v5838_v63 }
0x11da   :  { %5827 = vmatprep.subr.bf16.mxu1 %v5826_v3  ;;  %5843 = vmatprep.subr.bf16.mxu0 %v5842_v5 }
0x11db   :  { %5829 = vmatpush3.bf16.msra.mxu1 %v5826_v3 }
0x11dc   :  { %5831 = vmatprep.subr.bf16.mxu1 %v5830_v6 }
0x11dd   :  { %5845 = vmatpush3.bf16.msra.mxu0 %v5842_v5 }
0x11de   :  { %5600 = vmatprep.subr.mxu0 %v6139_v22 }
0x1265   :  { %v2533_v47 = vpop.xlane.xlu0 %2532 }
0x1266   :  { %v2535_v48 = vmul.f32 0.03125, %v2533_v47  ;;  %v2530_v49 = vpop.xlane.xlu1 %2529 }
0x1267   :  { %v2534_v50 = vmul.f32 0.03125, %v2530_v49 }
0x1268   :  { %v2537_v51 = vsub.f32 %v2525_v43, %v2535_v48 }
0x1269   :  { %v2536_v53 = vsub.f32 %v2524_v44, %v2534_v50 }
0x126a   :  { %v2539_v54 = vmul.f32 %v2537_v51, %v2537_v51 }
0x126b   :  { %v2538_v55 = vmul.f32 %v2536_v53, %v2536_v53 }
0x126c   :  { %v2543_v57 = vsel %vm255_vm2, %v2539_v54, 0.0 }
0x126d   :  { %2544 = vadd.xlane.f32.xlu0 %v2543_v57  ;;  %v2540_v58 = vsel %vm255_vm2, %v2538_v55, 0.0 }
0x126e   :  { %2541 = vadd.xlane.f32.xlu1 %v2540_v58 }
0x12fa   :  { %v2545_v26 = vpop.xlane.xlu0 %2544 }
0x12fb   :  { %v2547_v7 = vmul.f32 0.03125, %v2545_v26  ;;  %v2542_v8 = vpop.xlane.xlu1 %2541 }
0x12fc   :  { %v2546_v38 = vmul.f32 0.03125, %v2542_v8 }
0x12fd   :  { %v2549_v10 = vadd.f32 1e-12, %v2547_v7 }
0x12fe   :  { %v2548_v11 = vadd.f32 1e-12, %v2546_v38 }
0x12ff   :  { %5959 = vrsqrt.f32 %v2549_v10 }
0x1300   :  { %5961 = vrsqrt.f32 %v2548_v11 }
0x1309   :  { %v5960_v12 = vpop.eup %5959 }
0x130a   :  { %v5962_v15 = vpop.eup %5961  ;;  %v2553_v16 = vmul.f32 %v5960_v12, %v2537_v51 }
0x130b   :  { %v2552_v17 = vmul.f32 %v5962_v15, %v2536_v53 }
0x130c   :  { %v2561_v18 = vmul.f32 %v5079_v13, %v2553_v16 }
0x130d   :  { %v2560_v19 = vmul.f32 %v5079_v13, %v2552_v17 }
0x130e   :  { %v6750_v24 = vadd.f32 %v5080_v36, %v2561_v18 }
0x130f   :  { %v6748_v23 = vadd.f32 %v5080_v36, %v2560_v19 }
0x1311   :  { %5565 = vmatprep.mubr.msk.f32.mxu1 %vm255_vm2, %v6748_v23  ;;  %5587 = vmatprep.mubr.msk.f32.mxu0 %vm255_vm2, %v6748_v23 }
0x1312   :  { %5566 = vmatmul.mubr.msk.f32.vlgmr.msra.gmra.mrb[28].mxu1 %vm255_vm2, %v6750_v24  ;;  %5588 = vmatmul.mubr.msk.f32.vlgmr.msra.gmra.mrb[18].mxu0 %vm255_vm2, %v6750_v24 }
0x1313   :  { %5833 = vmatpush3.bf16.msra.mxu1 %v5830_v6  ;;  %5576 = vmatprep.mubr.msk.f32.mxu1 %vm255_vm2, %v6748_v23 }
0x1314   :  { %5835 = vmatprep.subr.bf16.mxu1 %v5834_v25  ;;  %5602 = vmatprep.mubr.msk.f32.mxu0 %vm6140_vm3, %v6139_v22 }
0x1317   :  { %5837 = vmatpush3.bf16.msra.mxu1 %v5834_v25 }
0x1318   :  { %5590 = vmatprep.subr.mxu1 %v6139_v22 }
0x131a   :  { %5577 = vmatmul.mubr.msk.f32.vlgmr.msra.gmra.mrb[30].mxu1 %vm255_vm2, %v6750_v24 }
0x131b   :  { %5592 = vmatprep.mubr.msk.f32.mxu1 %vm6140_vm3, %v6139_v22 }
0x13e5   :  { %v5567_v29 = vpop.f32.mrb[28].mxu1  ;;  %v5589_v30 = vpop.f32.mrb[18].mxu0 }
0x13e6   :  { %v2660_v33 = vpop.f32.mrb[29].mxu1  ;;  %v2836_v34 = vpop.f32.mrb[19].mxu0  ;;  %v6796_v43 = vadd.f32 %v5567_v29, %v5090_v41  ;;  %v6799_v44 = vadd.f32 %v5589_v30, %v5106_v28 }
0x13e7   :  { %v6772_v37 = vadd.f32 %v5106_v28, %v2836_v34  ;;  %v6785_v14 = vadd.f32 %v5090_v41, %v2660_v33 }
0x13e9   :  { %5601 = vmatpush3.msra.mxu0 %v6772_v37 }
0x13ea   :  { %5610 = vmatprep.subr.mxu0 %v5081_v2 }
0x13ed   :  { %v5578_v40 = vpop.f32.mrb[30].mxu1 }
0x13ee   :  { %v2748_v35 = vpop.f32.mrb[31].mxu1  ;;  %v6788_v9 = vadd.f32 %v5578_v40, %v5098_v39 }
0x13ef   :  { %v6781_v42 = vadd.f32 %v5098_v39, %v2748_v35 }
0x13f1   :  { %5591 = vmatpush3.xpose.msk.msra.mxu1 %vm594_vm4, %v6781_v42 }
0x13f2   :  { %5595 = vmatprep.subr.mxu1 %v6139_v22 }
0x13f4   :  { %5593 = vmatmul.mubr.msk.f32.vlgmr.msra.gmra.mrb[32].mxu1 %vm594_vm4, %v6785_v14 }
0x13f5   :  { %5596 = vmatpush3.xpose.msk.msra.mxu1 %vm594_vm4, %v6788_v9  ;;  %5597 = vmatprep.mubr.msk.f32.mxu1 %vm6140_vm3, %v6139_v22 }
0x13f6   :  { %5605 = vmatprep.subr.mxu1 %v6139_v22 }
0x13f8   :  { %5598 = vmatmul.mubr.msk.f32.vlgmr.msra.gmra.mrb[34].mxu1 %vm594_vm4, %v6796_v43 }
0x13f9   :  { %5606 = vmatpush3.msra.mxu1 %v6799_v44  ;;  %5607 = vmatprep.mubr.msk.f32.mxu1 %vm6140_vm3, %v6139_v22 }
0x13fa   :  { %5615 = vmatprep.subr.mxu1 %v6139_v22 }
0x14c7   :  { %v2919_v45 = vpop.f32.mrb[32].mxu1 }
0x14c8   :  { %v2999_v46 = vmul.f32 0.35355338, %v2919_v45  ;;  %v5594_v47 = vpop.f32.mrb[33].mxu1 }
0x14ca   :  { %v3001_v48 = vadd.f32 %v2999_v46, %v6503_v52 }
0x14cb   :  { %v2995_v49 = vpop.f32.mrb[34].mxu1 }
0x14cc   :  { %v3000_v50 = vmul.f32 0.35355338, %v2995_v49  ;;  %v5599_v51 = vpop.f32.mrb[35].mxu1  ;;  %v3003_v53 = vsel %vm594_vm4, %v3001_v48, -inf }
0x14cd   :  { %3004 = vmax.xlane.f32.xlu1 %v3003_v53 }
0x14ce   :  { %v3002_v54 = vadd.f32 %v3000_v50, %v6505_v56 }
0x14d0   :  { %v3006_v55 = vsel %vm594_vm4, %v3002_v54, -inf }
0x14d1   :  { %3007 = vmax.xlane.f32.xlu0 %v3006_v55 }
0x155a   :  { %v3005_v57 = vpop.xlane.xlu1 %3004 }
0x155b   :  { %v3009_v58 = vsub.f32 %v3001_v48, %v3005_v57 }
0x155d   :  { %v3011_v59 = vmul.f32 1.442695, %v3009_v58 }
0x155e   :  { %v3008_v60 = vpop.xlane.xlu0 %3007 }
0x155f   :  { %5963 = vpow2.f32 %v3011_v59  ;;  %v3010_v27 = vsub.f32 %v3002_v54, %v3008_v60 }
0x1561   :  { %v3013_v61 = vmul.f32 1.442695, %v3010_v27 }
0x1563   :  { %5965 = vpow2.f32 %v3013_v61 }
0x1569   :  { %v5964_v62 = vpop.eup %5963 }
0x156a   :  { %v3015_v63 = vsel %vm594_vm4, %v5964_v62, 0.0 }
0x156b   :  { %3016 = vadd.xlane.f32.xlu1 %v3015_v63 }
0x156d   :  { %v5966_v0 = vpop.eup %5965 }
0x156e   :  { %v3018_v1 = vsel %vm594_vm4, %v5966_v0, 0.0 }
0x156f   :  { %3019 = vadd.xlane.f32.xlu0 %v3018_v1 }
0x157c   :  { %3262 = vrot.lane.b32.xlu1 %v6781_v42, %s6141_s0 }
0x1580   :  { %3340 = vrot.lane.b32.xlu1 %v6788_v9, %s6141_s0 }
0x1584   :  { %3338 = vrot.lane.b32.xlu1 %v6796_v43, %s6141_s0 }
0x1585   :  { %3260 = vrot.lane.b32.xlu0 %v6785_v14, %s6141_s0 }
0x1588   :  { %3681 = vrot.lane.b32.xlu1 %v6781_v42, %s6143_s8 }
0x15f8   :  { %v3017_v3 = vpop.xlane.xlu1 %3016 }
0x15f9   :  { %5967 = vrcp.f32 %v3017_v3 }
0x15fc   :  { %v3020_v4 = vpop.xlane.xlu0 %3019  ;;  %v3263_v26 = vpop.permute.xlu1 %3262 }
0x15fd   :  { %5969 = vrcp.f32 %v3020_v4 }
0x1600   :  { %v3261_v7 = vpop.permute.xlu0 %3260  ;;  %v3341_v10 = vpop.permute.xlu1 %3340 }
0x1603   :  { %v5968_v5 = vpop.eup %5967 }
0x1604   :  { %v3023_v31 = vmul.f32 %v5968_v5, %v5964_v62  ;;  %v3339_v13 = vpop.permute.xlu1 %3338 }
0x1606   :  { %5603 = vmatmul.mubr.msk.f32.vlgmr.msra.gmra.mrb[20].mxu0 %vm594_vm4, %v3023_v31  ;;  %v5082_v31 = vld [vmem:[%s7077_s13 + $0x28] sm:$0xff] }
0x1607   :  { %v5970_v32 = vpop.eup %5969  ;;  %5611 = vmatpush3.msra.mxu0 %v5081_v2 }
0x1608   :  { %v3024_v6 = vmul.f32 %v5970_v32, %v5966_v0  ;;  %5620 = vmatprep.subr.mxu0 %v6139_v22  ;;  %v3682_v35 = vpop.permute.xlu1 %3681 }
0x160a   :  { %5608 = vmatmul.mubr.msk.f32.vlgmr.msra.gmra.mrb[36].mxu1 %vm594_vm4, %v3024_v6 }
0x160b   :  { %5616 = vmatpush3.xpose.msk.msra.mxu1 %vm594_vm4, %v3263_v26  ;;  %5617 = vmatprep.mubr.msk.f32.mxu1 %vm6140_vm3, %v6139_v22 }
0x160c   :  { %5625 = vmatprep.subr.mxu1 %v6139_v22 }
0x160e   :  { %5618 = vmatmul.mubr.msk.f32.vlgmr.msra.gmra.mrb[38].mxu1 %vm594_vm4, %v3261_v7 }
0x160f   :  { %5627 = vmatprep.mubr.msk.f32.mxu1 %vm6140_vm3, %v6139_v22 }
0x16d9   :  { %v3094_v8 = vpop.f32.mrb[20].mxu0 }
0x16da   :  { %v5604_v38 = vpop.f32.mrb[21].mxu0  ;;  %5612 = vmatprep.mubr.msk.f32.mxu0 %vm594_vm4, %v3094_v8 }
0x16dd   :  { %v3167_v11 = vpop.f32.mrb[36].mxu1 }
0x16de   :  { %v5609_v12 = vpop.f32.mrb[37].mxu1  ;;  %5613 = vmatmul.mubr.msk.f32.vlgmr.msra.gmra.mrb[22].mxu0 %vm594_vm4, %v3167_v11 }
0x16df   :  { %5621 = vmatpush3.xpose.msk.msra.mxu0 %vm594_vm4, %v3341_v10  ;;  %5622 = vmatprep.mubr.msk.f32.mxu0 %vm6140_vm3, %v6139_v22 }
0x16e0   :  { %5630 = vmatprep.subr.mxu0 %v6139_v22 }
0x16e1   :  { %v3334_v15 = vpop.f32.mrb[38].mxu1 }
0x16e2   :  { %v3416_v16 = vmul.f32 0.35355338, %v3334_v15  ;;  %v5619_v17 = vpop.f32.mrb[39].mxu1  ;;  %5623 = vmatmul.mubr.msk.f32.vlgmr.msra.gmra.mrb[24].mxu0 %vm594_vm4, %v3339_v13 }
0x16e3   :  { %5632 = vmatprep.mubr.msk.f32.mxu0 %vm6140_vm3, %v6139_v22 }
0x16e4   :  { %v3418_v36 = vadd.f32 %v3416_v16, %v6503_v52 }
0x16e6   :  { %v3420_v18 = vsel %vm594_vm4, %v3418_v36, -inf }
0x16e7   :  { %3421 = vmax.xlane.f32.xlu0 %v3420_v18  ;;  %v5083_v18 = vld [vmem:[%s7077_s13 + $0x30] sm:$0xff] }
0x16fd   :  { %3443 = vrot.lane.b32.xlu0 %v6772_v37, %s6141_s0 }
0x1701   :  { %3679 = vrot.lane.b32.xlu0 %v6785_v14, %s6143_s8 }
0x1705   :  { %3757 = vrot.lane.b32.xlu0 %v6796_v43, %s6143_s8 }
0x1774   :  { %v3422_v19 = vpop.xlane.xlu0 %3421 }
0x1775   :  { %v3426_v20 = vsub.f32 %v3418_v36, %v3422_v19 }
0x1777   :  { %v3428_v21 = vmul.f32 1.442695, %v3426_v20 }
0x1778   :  { %v3444_v25 = vpop.permute.xlu0 %3443 }
0x1779   :  { %5971 = vpow2.f32 %v3428_v21  ;;  %5626 = vmatpush3.msra.mxu1 %v3444_v25 }
0x177a   :  { %5640 = vmatprep.subr.mxu1 %v6139_v22 }
0x177c   :  { %v3680_v47 = vpop.permute.xlu0 %3679 }
0x1780   :  { %v3758_v49 = vpop.permute.xlu0 %3757 }
0x1783   :  { %v5972_v28 = vpop.eup %5971 }
0x1784   :  { %v3432_v29 = vsel %vm594_vm4, %v5972_v28, 0.0 }
0x1785   :  { %3433 = vadd.xlane.f32.xlu1 %v3432_v29 }
0x1796   :  { %3759 = vrot.lane.b32.xlu1 %v6788_v9, %s6143_s8 }
0x17b5   :  { %v3412_v30 = vpop.f32.mrb[24].mxu0 }
0x17b6   :  { %v3417_v33 = vmul.f32 0.35355338, %v3412_v30  ;;  %v5624_v34 = vpop.f32.mrb[25].mxu0 }
0x17b8   :  { %v3419_v39 = vadd.f32 %v3417_v33, %v6505_v56 }
0x17ba   :  { %v3423_v40 = vsel %vm594_vm4, %v3419_v39, -inf }
0x17bb   :  { %3424 = vmax.xlane.f32.xlu1 %v3423_v40 }
0x1812   :  { %v3434_v41 = vpop.xlane.xlu1 %3433 }
0x1813   :  { %5973 = vrcp.f32 %v3434_v41 }
0x1816   :  { %v3760_v48 = vpop.permute.xlu1 %3759 }
0x181d   :  { %v5974_v45 = vpop.eup %5973 }
0x181e   :  { %v3440_v46 = vmul.f32 %v5974_v45, %v5972_v28 }
0x1820   :  { %5628 = vmatmul.mubr.msk.f32.vlgmr.msra.gmra.mrb[40].mxu1 %vm594_vm4, %v3440_v46 }
0x1821   :  { %5641 = vmatpush3.xpose.msk.msra.mxu1 %vm594_vm4, %v3682_v35  ;;  %5642 = vmatprep.mubr.msk.f32.mxu1 %vm6140_vm3, %v6139_v22 }
0x1822   :  { %5645 = vmatprep.subr.mxu1 %v6139_v22 }
0x1824   :  { %5643 = vmatmul.mubr.msk.f32.vlgmr.msra.gmra.mrb[42].mxu1 %vm594_vm4, %v3680_v47 }
0x1825   :  { %5646 = vmatpush3.xpose.msk.msra.mxu1 %vm594_vm4, %v3760_v48  ;;  %5647 = vmatprep.mubr.msk.f32.mxu1 %vm6140_vm3, %v6139_v22 }
0x1826   :  { %5655 = vmatprep.subr.mxu1 %v6139_v22 }
0x1828   :  { %5648 = vmatmul.mubr.msk.f32.vlgmr.msra.gmra.mrb[44].mxu1 %vm594_vm4, %v3758_v49 }
0x1829   :  { %5657 = vmatprep.mubr.msk.f32.mxu1 %vm6140_vm3, %v6139_v22 }
0x1848   :  { %v3425_v50 = vpop.xlane.xlu1 %3424 }
0x1849   :  { %v3427_v51 = vsub.f32 %v3419_v39, %v3425_v50 }
0x184b   :  { %v3430_v53 = vmul.f32 1.442695, %v3427_v51 }
0x184d   :  { %5975 = vpow2.f32 %v3430_v53 }
0x1857   :  { %v5976_v54 = vpop.eup %5975 }
0x1858   :  { %v3435_v55 = vsel %vm594_vm4, %v5976_v54, 0.0 }
0x1859   :  { %3436 = vadd.xlane.f32.xlu0 %v3435_v55 }
0x186f   :  { %3520 = vrot.lane.b32.xlu0 %v6799_v44, %s6141_s0 }
0x1873   :  { %3937 = vrot.lane.b32.xlu0 %v6799_v44, %s6143_s8 }
0x1877   :  { %4098 = vrot.lane.b32.xlu0 %v6781_v42, %s6144_s10 }
0x187b   :  { %4176 = vrot.lane.b32.xlu0 %v6788_v9, %s6144_s10 }
0x187f   :  { %4096 = vrot.lane.b32.xlu0 %v6785_v14, %s6144_s10 }
0x18e6   :  { %v3437_v57 = vpop.xlane.xlu0 %3436 }
0x18e7   :  { %5977 = vrcp.f32 %v3437_v57 }
0x18ea   :  { %v3521_v58 = vpop.permute.xlu0 %3520 }
0x18eb   :  { %5631 = vmatpush3.msra.mxu0 %v3521_v58 }
0x18ec   :  { %5635 = vmatprep.subr.mxu0 %v5082_v31 }
0x18ee   :  { %v3938_v59 = vpop.permute.xlu0 %3937 }
0x18ef   :  { %5656 = vmatpush3.msra.mxu1 %v3938_v59 }
0x18f0   :  { %5665 = vmatprep.subr.mxu1 %v6139_v22 }
0x18f1   :  { %v5978_v60 = vpop.eup %5977 }
0x18f2   :  { %v3441_v27 = vmul.f32 %v5978_v60, %v5976_v54  ;;  %v4099_v20 = vpop.permute.xlu0 %4098 }
0x18f3   :  { %v3515_v61 = vpop.f32.mrb[40].mxu1 }
0x18f4   :  { %v5629_v62 = vpop.f32.mrb[41].mxu1  ;;  %5633 = vmatmul.mubr.msk.f32.vlgmr.msra.gmra.mrb[26].mxu0 %vm594_vm4, %v3441_v27 }
0x18f5   :  { %5637 = vmatprep.mubr.msk.f32.mxu0 %vm594_vm4, %v3515_v61  ;;  %5636 = vmatpush3.msra.mxu0 %v5082_v31 }
0x18f6   :  { %5650 = vmatprep.subr.mxu0 %v6139_v22  ;;  %v4177_v28 = vpop.permute.xlu0 %4176 }
0x18f7   :  { %v3753_v42 = vpop.f32.mrb[42].mxu1 }
0x18f8   :  { %v3835_v9 = vmul.f32 0.35355338, %v3753_v42  ;;  %v5644_v63 = vpop.f32.mrb[43].mxu1 }
0x18fa   :  { %v3837_v14 = vadd.f32 %v3835_v9, %v6503_v52  ;;  %v4097_v30 = vpop.permute.xlu0 %4096 }
0x18fb   :  { %v3831_v0 = vpop.f32.mrb[44].mxu1 }
0x18fc   :  { %v3836_v1 = vmul.f32 0.35355338, %v3831_v0  ;;  %v5649_v2 = vpop.f32.mrb[45].mxu1  ;;  %v3839_v3 = vsel %vm594_vm4, %v3837_v14, -inf  ;;  %v5084_v0 = vld [vmem:[%s7077_s13 + $0x38] sm:$0xff]  ;;  %s7131_s13 = sld [smem:[#allocation27_spill]] }
0x18fd   :  { %3840 = vmax.xlane.f32.xlu1 %v3839_v3 }
0x18fe   :  { %v3838_v4 = vadd.f32 %v3836_v1, %v6505_v56 }
0x1900   :  { %v3842_v5 = vsel %vm594_vm4, %v3838_v4, -inf }
0x1901   :  { %3843 = vmax.xlane.f32.xlu1 %v3842_v5 }
0x198a   :  { %v3841_v32 = vpop.xlane.xlu1 %3840 }
0x198b   :  { %v3845_v6 = vsub.f32 %v3837_v14, %v3841_v32  ;;  %v5118_v32 = vld [vmem:[%s7078_s14 + $0x1] ss:$0 sm:$0xff] }
0x198d   :  { %v3847_v26 = vmul.f32 1.442695, %v3845_v6 }
0x198e   :  { %v3844_v7 = vpop.xlane.xlu1 %3843 }
0x198f   :  { %5979 = vpow2.f32 %v3847_v26  ;;  %v3846_v8 = vsub.f32 %v3838_v4, %v3844_v7 }
0x1991   :  { %v3849_v38 = vmul.f32 1.442695, %v3846_v8 }
0x1993   :  { %5981 = vpow2.f32 %v3849_v38 }
0x1999   :  { %v5980_v10 = vpop.eup %5979 }
0x199a   :  { %v3851_v11 = vsel %vm594_vm4, %v5980_v10, 0.0 }
0x199b   :  { %3852 = vadd.xlane.f32.xlu1 %v3851_v11 }
0x199d   :  { %v5982_v12 = vpop.eup %5981 }
0x199e   :  { %v3854_v13 = vsel %vm594_vm4, %v5982_v12, 0.0 }
0x199f   :  { %3855 = vadd.xlane.f32.xlu1 %v3854_v13 }
0x19b0   :  { %3861 = vrot.lane.b32.xlu1 %v6772_v37, %s6143_s8 }
0x19b4   :  { %4174 = vrot.lane.b32.xlu1 %v6796_v43, %s6144_s10 }
0x19c7   :  { %v3592_v15 = vpop.f32.mrb[26].mxu0 }
0x19c8   :  { %v5634_v16 = vpop.f32.mrb[27].mxu0  ;;  %5638 = vmatmul.mubr.msk.f32.vlgmr.msra.gmra.mrb[22].mxu0 %vm594_vm4, %v3592_v15 }
0x19c9   :  { %5652 = vmatprep.mubr.msk.f32.mxu0 %vm6140_vm3, %v6139_v22 }
0x1a28   :  { %v3853_v17 = vpop.xlane.xlu1 %3852 }
0x1a29   :  { %5983 = vrcp.f32 %v3853_v17 }
0x1a2c   :  { %v3856_v36 = vpop.xlane.xlu1 %3855 }
0x1a2d   :  { %5985 = vrcp.f32 %v3856_v36 }
0x1a30   :  { %v3862_v19 = vpop.permute.xlu1 %3861 }
0x1a31   :  { %5651 = vmatpush3.msra.mxu0 %v3862_v19 }
0x1a32   :  { %5660 = vmatprep.subr.mxu0 %v5083_v18 }
0x1a33   :  { %v5984_v43 = vpop.eup %5983 }
0x1a34   :  { %v3859_v21 = vmul.f32 %v5984_v43, %v5980_v10  ;;  %v4175_v35 = vpop.permute.xlu1 %4174 }
0x1a36   :  { %5653 = vmatmul.mubr.msk.f32.vlgmr.msra.gmra.mrb[28].mxu0 %vm594_vm4, %v3859_v21  ;;  %v5148_v21 = vld [vmem:[%s7081_s17 + $0x28] sm:$0xff] }
0x1a37   :  { %v5986_v25 = vpop.eup %5985  ;;  %5661 = vmatpush3.msra.mxu0 %v5083_v18 }
0x1a38   :  { %v3860_v29 = vmul.f32 %v5986_v25, %v5982_v12  ;;  %5670 = vmatprep.subr.mxu0 %v6139_v22 }
0x1a3a   :  { %5658 = vmatmul.mubr.msk.f32.vlgmr.msra.gmra.mrb[46].mxu1 %vm594_vm4, %v3860_v29  ;;  %v5150_v29 = vld [vmem:[%s7081_s17 + $0x38] sm:$0xff] }
0x1a3b   :  { %5666 = vmatpush3.xpose.msk.msra.mxu1 %vm594_vm4, %v4099_v20  ;;  %5667 = vmatprep.mubr.msk.f32.mxu1 %vm6140_vm3, %v6139_v22 }
0x1a3c   :  { %5675 = vmatprep.subr.mxu1 %v6139_v22 }
0x1a3e   :  { %5668 = vmatmul.mubr.msk.f32.vlgmr.msra.gmra.mrb[48].mxu1 %vm594_vm4, %v4097_v30 }
0x1a3f   :  { %5677 = vmatprep.mubr.msk.f32.mxu1 %vm6140_vm3, %v6139_v22 }
0x1b09   :  { %v3933_v33 = vpop.f32.mrb[28].mxu0 }
0x1b0a   :  { %v5654_v34 = vpop.f32.mrb[29].mxu0  ;;  %5662 = vmatprep.mubr.msk.f32.mxu0 %vm594_vm4, %v3933_v33 }
0x1b0d   :  { %v4009_v39 = vpop.f32.mrb[46].mxu1 }
0x1b0e   :  { %v5659_v40 = vpop.f32.mrb[47].mxu1  ;;  %5663 = vmatmul.mubr.msk.f32.vlgmr.msra.gmra.mrb[22].mxu0 %vm594_vm4, %v4009_v39 }
0x1b0f   :  { %5671 = vmatpush3.xpose.msk.msra.mxu0 %vm594_vm4, %v4177_v28  ;;  %5672 = vmatprep.mubr.msk.f32.mxu0 %vm6140_vm3, %v6139_v22  ;;  %v5149_v28 = vld [vmem:[%s7081_s17 + $0x30] sm:$0xff] }
0x1b10   :  { %5680 = vmatprep.subr.mxu0 %v6139_v22  ;;  %v5850_v30 = vpack.c.bf16 %v5150_v29, %v5149_v28 }
0x1b11   :  { %v4170_v41 = vpop.f32.mrb[48].mxu1 }
0x1b12   :  { %v4252_v45 = vmul.f32 0.35355338, %v4170_v41  ;;  %v5669_v46 = vpop.f32.mrb[49].mxu1  ;;  %5673 = vmatmul.mubr.msk.f32.vlgmr.msra.gmra.mrb[30].mxu0 %vm594_vm4, %v4175_v35 }
0x1b13   :  { %5682 = vmatprep.mubr.msk.f32.mxu0 %vm6140_vm3, %v6139_v22  ;;  %v5145_v46 = vld [vmem:[%s7079_s15 + $0x1] ss:$0 sm:$0xff] }
0x1b14   :  { %v4254_v47 = vadd.f32 %v4252_v45, %v6503_v52 }
0x1b16   :  { %v4256_v48 = vsel %vm594_vm4, %v4254_v47, -inf }
0x1b17   :  { %4257 = vmax.xlane.f32.xlu0 %v4256_v48 }
0x1ba4   :  { %v4258_v49 = vpop.xlane.xlu0 %4257 }
0x1ba5   :  { %v4262_v50 = vsub.f32 %v4254_v47, %v4258_v49 }
0x1ba7   :  { %v4264_v51 = vmul.f32 1.442695, %v4262_v50  ;;  %v5146_v50 = vld [vmem:[%s7080_s16 + $0x1] ss:$0 sm:$0xff] }
0x1ba9   :  { %5987 = vpow2.f32 %v4264_v51 }
0x1bb3   :  { %v5988_v53 = vpop.eup %5987 }
0x1bb4   :  { %v4268_v54 = vsel %vm594_vm4, %v5988_v53, 0.0 }
0x1bb5   :  { %4269 = vadd.xlane.f32.xlu0 %v4268_v54 }
0x1be5   :  { %v4248_v55 = vpop.f32.mrb[30].mxu0 }
0x1be6   :  { %v4253_v57 = vmul.f32 0.35355338, %v4248_v55  ;;  %v5674_v58 = vpop.f32.mrb[31].mxu0 }
0x1be7   :  { %v5156_v58 = vld [vmem:[%s7083_s19 + $0x48] sm:$0xff] }
0x1be8   :  { %v4255_v59 = vadd.f32 %v4253_v57, %v6505_v56  ;;  %v5155_v57 = vld [vmem:[%s7083_s19 + $0x40] sm:$0xff] }
0x1bea   :  { %v4259_v60 = vsel %vm594_vm4, %v4255_v59, -inf }
0x1beb   :  { %4260 = vmax.xlane.f32.xlu1 %v4259_v60  ;;  %v5157_v60 = vld [vmem:[%s7083_s19 + $0x50] sm:$0xff] }
0x1bfc   :  { %4278 = vrot.lane.b32.xlu1 %v6772_v37, %s6144_s10 }
0x1c42   :  { %v4270_v52 = vpop.xlane.xlu0 %4269 }
0x1c43   :  { %5989 = vrcp.f32 %v4270_v52  ;;  %v5158_v52 = vld [vmem:[%s7083_s19 + $0x58] sm:$0xff] }
0x1c4d   :  { %v5990_v61 = vpop.eup %5989 }
0x1c4e   :  { %v4276_v9 = vmul.f32 %v5990_v61, %v5988_v53  ;;  %v5159_v61 = vld [vmem:[%s7083_s19 + $0x60] sm:$0xff] }
0x1c78   :  { %v4261_v27 = vpop.xlane.xlu1 %4260 }
0x1c79   :  { %v4263_v62 = vsub.f32 %v4255_v59, %v4261_v27  ;;  %v5854_v59 = vpack.c.bf16 %v5156_v58, %v5155_v57  ;;  %v5858_v27 = vpack.c.bf16 %v5158_v52, %v5157_v60 }
0x1c7b   :  { %v4266_v42 = vmul.f32 1.442695, %v4263_v62  ;;  %v5160_v62 = vld [vmem:[%s7083_s19 + $0x68] sm:$0xff] }
0x1c7c   :  { %v4279_v63 = vpop.permute.xlu1 %4278 }
0x1c7d   :  { %5991 = vpow2.f32 %v4266_v42  ;;  %5676 = vmatpush3.msra.mxu1 %v4279_v63  ;;  %v5862_v42 = vpack.c.bf16 %v5160_v62, %v5159_v61  ;;  %v5162_v63 = vld [vmem:[%s7083_s19 + $0x78] sm:$0xff] }
0x1c7e   :  { %5678 = vmatmul.mubr.msk.f32.vlgmr.msra.gmra.mrb[50].mxu1 %vm594_vm4, %v4276_v9  ;;  %v5161_v9 = vld [vmem:[%s7083_s19 + $0x70] sm:$0xff] }
0x1c87   :  { %v5992_v14 = vpop.eup %5991 }
0x1c88   :  { %v4271_v56 = vsel %vm594_vm4, %v5992_v14, 0.0 }
0x1c89   :  { %4272 = vadd.xlane.f32.xlu0 %v4271_v56  ;;  %v5152_v56 = vld [vmem:[%s7082_s18 + $0x1] ss:$0 sm:$0xff] }
0x1c9f   :  { %4354 = vrot.lane.b32.xlu0 %v6799_v44, %s6144_s10 }
0x1d16   :  { %v4273_v37 = vpop.xlane.xlu0 %4272 }
0x1d17   :  { %5993 = vrcp.f32 %v4273_v37 }
0x1d1a   :  { %v4355_v1 = vpop.permute.xlu0 %4354 }
0x1d1b   :  { %5681 = vmatpush3.msra.mxu0 %v4355_v1 }
0x1d1c   :  { %5685 = vmatprep.subr.mxu0 %v5084_v0 }
0x1d21   :  { %v5994_v2 = vpop.eup %5993 }
0x1d22   :  { %v4277_v3 = vmul.f32 %v5994_v2, %v5992_v14  ;;  %v5866_v14 = vpack.c.bf16 %v5162_v63, %v5161_v9  ;;  %v5170_v9 = vld [vmem:[%s7086_s22 + $0x1] ss:$0 sm:$0xff] }
0x1d24   :  { %5683 = vmatmul.mubr.msk.f32.vlgmr.msra.gmra.mrb[32].mxu0 %vm594_vm4, %v4277_v3 }
0x1d25   :  { %5686 = vmatpush3.msra.mxu0 %v5084_v0 }
0x1d26   :  { %5855 = vmatprep.subr.bf16.mxu0 %v5854_v59 }
0x1d51   :  { %v4350_v4 = vpop.f32.mrb[50].mxu1 }
0x1d52   :  { %v5679_v5 = vpop.f32.mrb[51].mxu1  ;;  %5687 = vmatprep.mubr.msk.f32.mxu0 %vm594_vm4, %v4350_v4 }
0x1df7   :  { %v4426_v31 = vpop.f32.mrb[32].mxu0 }
0x1df8   :  { %v5684_v44 = vpop.f32.mrb[33].mxu0  ;;  %5688 = vmatmul.mubr.msk.f32.vlgmr.msra.gmra.mrb[22].mxu0 %vm594_vm4, %v4426_v31 }
0x1df9   :  { %5857 = vmatpush3.bf16.msra.mxu0 %v5854_v59 }
0x1dfa   :  { %5859 = vmatprep.subr.bf16.mxu0 %v5858_v27 }
0x1dfd   :  { %5861 = vmatpush3.bf16.msra.mxu0 %v5858_v27  ;;  %v5169_v27 = vld [vmem:[%s7085_s21 + $0x1] ss:$0 sm:$0xff] }
0x1dfe   :  { %5863 = vmatprep.subr.bf16.mxu0 %v5862_v42 }
0x1e01   :  { %5865 = vmatpush3.bf16.msra.mxu0 %v5862_v42 }
0x1e02   :  { %5867 = vmatprep.subr.bf16.mxu0 %v5866_v14 }
0x1e05   :  { %5869 = vmatpush3.bf16.msra.mxu0 %v5866_v14 }
0x1ecb   :  { %v5689_v6 = vpop.f32.mrb[22].mxu0 }
0x1ecc   :  { %v5884_v26 = vadd.f32 %v5689_v6, %v5118_v32  ;;  %v4502_v7 = vpop.f32.mrb[23].mxu0 }
0x1ecd   :  { %v5885_v8 = vadd.f32 %v5118_v32, %v4502_v7 }
0x1ece   :  { %v4514_v38 = vadd.f32 %v5884_v26, %v6750_v24 }
0x1ecf   :  { %v4513_v10 = vadd.f32 %v5885_v8, %v6748_v23  ;;  %v5147_v23 = vld [vmem:[%s7081_s17 + $0x20] sm:$0xff] }
0x1ed0   :  { %v4522_v11 = vsel %vm255_vm2, %v4514_v38, 0.0  ;;  %v5846_v25 = vpack.c.bf16 %v5148_v21, %v5147_v23 }
0x1ed1   :  { %4523 = vadd.xlane.f32.xlu0 %v4522_v11  ;;  %v4519_v12 = vsel %vm255_vm2, %v4513_v10, 0.0 }
0x1ed2   :  { %4520 = vadd.xlane.f32.xlu1 %v4519_v12  ;;  %5847 = vmatprep.subr.bf16.mxu1 %v5846_v25 }
0x1ed3   :  { %5849 = vmatpush3.bf16.msra.mxu1 %v5846_v25 }
0x1ed4   :  { %5851 = vmatprep.subr.bf16.mxu1 %v5850_v30 }
0x1ed7   :  { %5853 = vmatpush3.bf16.msra.mxu1 %v5850_v30 }
0x1f5e   :  { %v4524_v13 = vpop.xlane.xlu0 %4523 }
0x1f5f   :  { %v4526_v15 = vmul.f32 0.03125, %v4524_v13  ;;  %v4521_v16 = vpop.xlane.xlu1 %4520 }
0x1f60   :  { %v4525_v17 = vmul.f32 0.03125, %v4521_v16 }
0x1f61   :  { %v4528_v36 = vsub.f32 %v4514_v38, %v4526_v15 }
0x1f62   :  { %v4527_v18 = vsub.f32 %v4513_v10, %v4525_v17 }
0x1f63   :  { %v4530_v19 = vmul.f32 %v4528_v36, %v4528_v36 }
0x1f64   :  { %v4529_v20 = vmul.f32 %v4527_v18, %v4527_v18 }
0x1f65   :  { %v4534_v43 = vsel %vm255_vm2, %v4530_v19, 0.0 }
0x1f66   :  { %4535 = vadd.xlane.f32.xlu0 %v4534_v43  ;;  %v4531_v24 = vsel %vm255_vm2, %v4529_v20, 0.0 }
0x1f67   :  { %4532 = vadd.xlane.f32.xlu1 %v4531_v24 }
0x1ff3   :  { %v4536_v33 = vpop.xlane.xlu0 %4535 }
0x1ff4   :  { %v4538_v34 = vmul.f32 0.03125, %v4536_v33  ;;  %v4533_v39 = vpop.xlane.xlu1 %4532 }
0x1ff5   :  { %v4537_v40 = vmul.f32 0.03125, %v4533_v39 }
0x1ff6   :  { %v4540_v35 = vadd.f32 1e-12, %v4538_v34 }
0x1ff7   :  { %v4539_v41 = vadd.f32 1e-12, %v4537_v40 }
0x1ff8   :  { %5995 = vrsqrt.f32 %v4540_v35 }
0x1ff9   :  { %5997 = vrsqrt.f32 %v4539_v41 }
0x2002   :  { %v5996_v45 = vpop.eup %5995 }
0x2003   :  { %v5998_v47 = vpop.eup %5997  ;;  %v4544_v48 = vmul.f32 %v5996_v45, %v4528_v36  ;;  %v5164_v36 = vld [vmem:[%s7084_s20 + $0x1] ss:$0 sm:$0xff] }
0x2004   :  { %v4543_v49 = vmul.f32 %v5998_v47, %v4527_v18  ;;  %v4820_v47 = vld [vmem:[%s7087_s23 + $0x8] sm:$0xff] }
0x2005   :  { %v4552_v51 = vmul.f32 %v5145_v46, %v4544_v48 }
0x2006   :  { %v4551_v53 = vmul.f32 %v5145_v46, %v4543_v49  ;;  %v4819_v46 = vld [vmem:[%s7087_s23] sm:$0xff]  ;;  %v4821_v49 = vld [vmem:[%s7087_s23 + $0x10] sm:$0xff] }
0x2007   :  { %v4560_v55 = vadd.f32 %v5146_v50, %v4552_v51  ;;  %v5871_v48 = vpack.c.bf16 %v4820_v47, %v4819_v46  ;;  %v6145_v51 = vmov 0.0|0.0  }
0x2008   :  { %v4559_v54 = vadd.f32 %v5146_v50, %v4551_v53  ;;  %v4822_v50 = vld [vmem:[%s7087_s23 + $0x18] sm:$0xff]  ;;  %5870 = vmatprep.subr.bf16.mxu1 %v6145_v51 }
0x2009   :  { %v5874_v53 = vpack.c.bf16 %v4822_v50, %v4821_v49 }
0x200a   :  { %5698 = vmatprep.mubr.msk.f32.mxu1 %vm255_vm2, %v4559_v54 }
0x200b   :  { %5699 = vmatmul.mubr.msk.f32.vlgmr.msra.gmra.mrb[52].mxu1 %vm255_vm2, %v4560_v55 }
0x200c   :  { %5728 = vmatprep.mubr.msk.f32.mxu1 %vm6140_vm3, %v6139_v22  ;;  %5872 = vmatpush3.bf16.msra.mxu1 %v5871_v48 }
0x200d   :  { %5873 = vmatprep.subr.bf16.mxu1 %v6145_v51 }
0x2010   :  { %5875 = vmatpush3.bf16.msra.mxu1 %v5874_v53 }
0x2011   :  { %5876 = vmatprep.subr.bf16.mxu1 %v6145_v51 }
0x20de   :  { %v5700_v37 = vpop.f32.mrb[52].mxu1 }
0x20df   :  { %v4652_v0 = vadd.f32 %v5700_v37, %v5152_v56  ;;  %v4646_v1 = vpop.f32.mrb[53].mxu1 }
0x20e0   :  { %v4647_v2 = vadd.f32 %v5152_v56, %v4646_v1 }
0x20e1   :  { %v4658_v3 = vmul.f32 0.044715, %v4652_v0  ;;  %v4656_v15 = vmul.f32 0.5, %v4652_v0 }
0x20e2   :  { %v4657_v4 = vmul.f32 0.044715, %v4647_v2  ;;  %v4655_v12 = vmul.f32 0.5, %v4647_v2 }
0x20e3   :  { %v4660_v5 = vmul.f32 %v4658_v3, %v4652_v0  ;;  %v4909_v3 = vld [vmem:[%s7089_s25 + $0x8] sm:$0xff] }
0x20e4   :  { %v4659_v31 = vmul.f32 %v4657_v4, %v4647_v2  ;;  %v4910_v4 = vld [vmem:[%s7089_s25 + $0x10] sm:$0xff] }
0x20e5   :  { %v4662_v44 = vmul.f32 %v4660_v5, %v4652_v0 }
0x20e6   :  { %v4661_v32 = vmul.f32 %v4659_v31, %v4647_v2  ;;  %v4911_v31 = vld [vmem:[%s7089_s25 + $0x18] sm:$0xff] }
0x20e7   :  { %v4664_v6 = vadd.f32 %v4662_v44, %v4652_v0  ;;  %v5880_v44 = vpack.c.bf16 %v4911_v31, %v4910_v4 }
0x20e8   :  { %v4663_v26 = vadd.f32 %v4661_v32, %v4647_v2  ;;  %v4908_v2 = vld [vmem:[%s7089_s25] sm:$0xff]  ;;  %s6146_s25 = smov [#allocation10]  }
0x20e9   :  { %v4666_v7 = vmul.f32 0.7978846, %v4664_v6  ;;  %v5877_v5 = vpack.c.bf16 %v4909_v3, %v4908_v2  ;;  %s5011_s3 = sshll.u32 %s6146_s25, 4  ;;  %s5012_s3 = int_to_ptr.vmem [resolvable:$true] %s5011_s3 }
0x20ea   :  { %v4665_v8 = vmul.f32 0.7978846, %v4663_v26  ;;  %s6101_s29 = scalar_lea.vmem %s5012_s3, 32  ;;  %p6106_p5 = scmp.lt.s32.totalorder %s5012_s3, %s5012_s3 }
0x20eb   :  { %5999 = vtanh.f32 %v4666_v7  ;;  %p6102_p4 = scmp.ne.s32.totalorder %s5012_s3, %s6101_s29  ;;  %p6107_p6 = scmp.lt.s32.totalorder %s6101_s29, %s6101_s29 }
0x20ec   :  { %6001 = vtanh.f32 %v4665_v8  ;;  %v5173_v8 = vld [vmem:[%s7132_s4] ss:$0 sm:$0xff] }
0x20ed   :  { %p6108_p7 = por %p6107_p6, %p6106_p5 }
0x20ef   :  { %p6109_p8 = pnand %p6108_p7, %p6102_p4 }
0x20f5   :  { %v6000_v38 = vpop.eup %5999 }
0x20f6   :  { %v6002_v10 = vpop.eup %6001  ;;  %v4670_v11 = vadd.f32 1.0, %v6000_v38 }
0x20f7   :  { %v4669_v13 = vadd.f32 1.0, %v6002_v10 }
0x20f8   :  { %v4672_v17 = vmul.f32 %v4670_v11, %v4656_v15 }
0x20f9   :  { %v4671_v16 = vmul.f32 %v4669_v13, %v4655_v12 }
0x20fb   :  { %5717 = vmatprep.mubr.msk.f32.mxu0 %vm2442_vm5, %v4671_v16 }
0x20fc   :  { %5718 = vmatmul.mubr.msk.f32.vlgmr.msra.gmra.mrb[34].mxu0 %vm2442_vm5, %v4672_v17 }
0x21cf   :  { %v5719_v18 = vpop.f32.mrb[34].mxu0 }
0x21d0   :  { %v4768_v19 = vadd.f32 %v5719_v18, %v5164_v36  ;;  %v4762_v20 = vpop.f32.mrb[35].mxu0 }
0x21d1   :  { %v4763_v43 = vadd.f32 %v5164_v36, %v4762_v20 }
0x21d2   :  { %v4772_v24 = vadd.f32 %v4768_v19, %v4560_v55 }
0x21d3   :  { %v4771_v23 = vadd.f32 %v4763_v43, %v4559_v54 }
0x21d4   :  { %v4780_v21 = vsel %vm255_vm2, %v4772_v24, 0.0 }
0x21d5   :  { %4781 = vadd.xlane.f32.xlu1 %v4780_v21  ;;  %v4777_v25 = vsel %vm255_vm2, %v4771_v23, 0.0 }
0x21d6   :  { %4778 = vadd.xlane.f32.xlu0 %v4777_v25 }
0x2262   :  { %v4782_v28 = vpop.xlane.xlu1 %4781 }
0x2263   :  { %v4784_v29 = vmul.f32 0.03125, %v4782_v28  ;;  %v4779_v30 = vpop.xlane.xlu0 %4778 }
0x2264   :  { %v4783_v33 = vmul.f32 0.03125, %v4779_v30 }
0x2265   :  { %v4786_v34 = vsub.f32 %v4772_v24, %v4784_v29 }
0x2266   :  { %v4785_v39 = vsub.f32 %v4771_v23, %v4783_v33 }
0x2267   :  { %v4788_v40 = vmul.f32 %v4786_v34, %v4786_v34 }
0x2268   :  { %v4787_v35 = vmul.f32 %v4785_v39, %v4785_v39 }
0x2269   :  { %v4792_v41 = vsel %vm255_vm2, %v4788_v40, 0.0 }
0x226a   :  { %4793 = vadd.xlane.f32.xlu1 %v4792_v41  ;;  %v4789_v45 = vsel %vm255_vm2, %v4787_v35, 0.0 }
0x226b   :  { %4790 = vadd.xlane.f32.xlu0 %v4789_v45 }
0x22f7   :  { %v4794_v54 = vpop.xlane.xlu1 %4793 }
0x22f8   :  { %v4796_v55 = vmul.f32 0.03125, %v4794_v54  ;;  %v4791_v57 = vpop.xlane.xlu0 %4790 }
0x22f9   :  { %v4795_v58 = vmul.f32 0.03125, %v4791_v57 }
0x22fa   :  { %v4798_v59 = vadd.f32 1e-12, %v4796_v55 }
0x22fb   :  { %v4797_v60 = vadd.f32 1e-12, %v4795_v58 }
0x22fc   :  { %6003 = vrsqrt.f32 %v4798_v59 }
0x22fd   :  { %6005 = vrsqrt.f32 %v4797_v60 }
0x2306   :  { %v6004_v52 = vpop.eup %6003 }
0x2307   :  { %v6006_v61 = vpop.eup %6005  ;;  %v4802_v62 = vmul.f32 %v6004_v52, %v4786_v34 }
0x2308   :  { %v4801_v42 = vmul.f32 %v6006_v61, %v4785_v39 }
0x2309   :  { %v4810_v63 = vmul.f32 %v5169_v27, %v4802_v62 }
0x230a   :  { %v4809_v14 = vmul.f32 %v5169_v27, %v4801_v42 }
0x230b   :  { %v4818_v56 = vadd.f32 %v5170_v9, %v4810_v63 }
0x230c   :  { %v4817_v37 = vadd.f32 %v5170_v9, %v4809_v14 }
0x230d   :  { %v4832_v0 = vrot.slane %v4818_v56, 7 }
0x230f   :  { %v4834_v1 = vsel %vm4833_vm6, %v4832_v0, %v4817_v37 }
0x2310   :  { %5729 = vmatmul.mubr.msk.f32.vlgmr.msra.gmra.mrb[54].mxu1 %vm255_vm2, %v4834_v1 }
0x2311   :  { %5739 = vmatprep.mubr.msk.f32.mxu1 %vm6140_vm3, %v6139_v22  ;;  %5878 = vmatpush3.bf16.msra.mxu1 %v5877_v5  ;;  %v5171_v22 = vld [vmem:[%s7131_s13] ss:$0 sm:$0xff] }
0x2312   :  { %5879 = vmatprep.subr.bf16.mxu1 %v6145_v51 }
0x2315   :  { %5881 = vmatpush3.bf16.msra.mxu1 %v5880_v44 }
0x23e3   :  { %v4903_v32 = vpop.f32.mrb[54].mxu1 }
0x23e4   :  { %v4904_v6 = vadd.f32 %v5171_v22, %v4903_v32  ;;  %v5730_v26 = vpop.f32.mrb[55].mxu1 }
0x23e6   :  { %6007 = vtanh.f32 %v4904_v6 }
0x23f0   :  { %v6008_v7 = vpop.eup %6007 }
0x23f1   :  { %5740 = vmatmul.mubr.msk.f32.vlgmr.msra.gmra.mrb[56].mxu1 %vm255_vm2, %v6008_v7 }
0x24c4   :  { %v4988_v38 = vpop.f32.mrb[56].mxu1 }
0x24c5   :  { %v4989_v10 = vadd.f32 %v5173_v8, %v4988_v38  ;;  %v5741_v11 = vpop.f32.mrb[57].mxu1 }
0x24c7   :  { %v4993_v12 = vsel %vm4992_vm7, %v4989_v10, -inf }
0x24c8   :  { %4994 = vmax.xlane.f32.xlu1 %v4993_v12 }
0x2555   :  { %v4995_v13 = vpop.xlane.xlu1 %4994 }
0x2556   :  { %v4996_v15 = vsub.f32 %v4989_v10, %v4995_v13 }
0x2558   :  { %v4997_v16 = vmul.f32 1.442695, %v4996_v15 }
0x255a   :  { %6009 = vpow2.f32 %v4997_v16 }
0x2564   :  { %v6010_v17 = vpop.eup %6009 }
0x2565   :  { %v4999_v36 = vsel %vm4992_vm7, %v6010_v17, 0.0 }
0x2566   :  { %5000 = vadd.xlane.f32.xlu0 %v4999_v36 }
0x25f3   :  { %v5001_v18 = vpop.xlane.xlu0 %5000 }
0x25f4   :  { %6011 = vrcp.f32 %v5001_v18 }
0x25fe   :  { %v6012_v19 = vpop.eup %6011 }
0x25ff   :  { %v5003_v20 = vmul.f32 %v6012_v19, %v6010_v17 }
0x2601   :  { %5004 = vst.msk [vmem:[#allocation10] sm:$0x3] %vm4992_vm7, %v5003_v20 }
0x2602   :  { %6112 = shalt.err (!%p6109_p8)
}
0x2603   :  { %s7133_s20 = sld [smem:[#allocation29_spill]] }
0x2609   :  { %s6113_s5 = scalar_lea.hbm %s7133_s20, 32 }
0x260a   :  { %p6114_p9 = scmp.ne.s32.totalorder %s7133_s20, %s6113_s5  ;;  %p6117_p10 = scmp.lt.u32.totalorder %s6113_s5, %s7133_s20 }
0x260c   :  { %p6119_p11 = pnand %p6117_p10, %p6114_p9 }
0x260e   :  { %6122 = shalt.err (!%p6119_p11)
}
0x260f   :  { %5014 = dma.vmem_to_hbm [thread:$0]  %s5012_s3, 32, %s7133_s20, [#allocation4]  }
0x2610   :  { %6129 = dma.done.wait [#allocation4], 32  }
0x2611   :  { %6130 = vsyncadd [#allocation4], 4294967264 }
0x2612   :  { %5018 = vsyncpa [#allocation3], 1 }
0x2613   :  { %5019 = vsyncpa [#allocation6], 1 }
0x2614   :  { %5020 = vsyncpa [#allocation9], 1 }
0x2615   :  { %5021 = vsyncpa [#allocation4], 1 }

</bundles_post_ra>
